<compile_context>
chip_gen: v7x
topology: tpu7x:2x2x1
jax: 0.10.0
libtpu: 0.0.40
codegen_flags: <defaults>
</compile_context>

<pallas_src>
import math

import jax
import jax.numpy as jnp
from jax.experimental import pallas as pl
from jax.experimental.pallas import tpu as pltpu  # noqa: F401  (kept for scaling-up notes below)

# ---------------- synthetic "PhoBERT" config (tiny stand-in) ----------------
VOCAB = 100
HIDDEN = 32
NUM_HEADS = 2
HEAD_DIM = HIDDEN // NUM_HEADS
FFN = 64
NUM_LAYERS = 4
NUM_LAST_LAYERS = 4      # == NUM_LAYERS: the last-4 hidden states are exactly the 4 layer outputs
MAX_POS = 64
LN_EPS = 1e-5

NUM_POLARITIES = 4
ASPECT_CATEGORIES = ["FOOD#QUALITY", "SERVICE#GENERAL", "AMBIENCE#GENERAL"]
NUM_ASPECTS = len(ASPECT_CATEGORIES)
OUT_DIM = NUM_ASPECTS * NUM_POLARITIES   # 12
OUT_PAD = 128                            # lane-dense logit accumulator / output block

BATCH = 2
SEQ = 8
BS = BATCH * SEQ

# rows of the packed per-layer "small tensors" block, shape (NUM_LAYERS, 8, 128)
ROW_BQKV, ROW_BO, ROW_LN1G, ROW_LN1B, ROW_B1, ROW_B2, ROW_LN2G, ROW_LN2B = range(8)


# ---------------- in-kernel helpers (all f32 math) ----------------
def _layernorm(x, gamma, beta):
    mu = jnp.mean(x, axis=-1, keepdims=True)
    var = jnp.mean((x - mu) ** 2, axis=-1, keepdims=True)
    return (x - mu) * jax.lax.rsqrt(var + LN_EPS) * gamma + beta


def _gelu(x):
    # TODO(synk): torch nn.GELU defaults to exact erf; tanh approximation has tiny drift.
    return 0.5 * x * (1.0 + jnp.tanh(0.7978845608028654 * (x + 0.044715 * x * x * x)))


# ---------------- fused encoder + branch-head kernel (whole forward, one call) ----------------
def fused_encoder_kernel(x0_ref, mask_ref, wqkv_ref, wo_ref, w1_ref, w2_ref,
                         small_ref, brw_ref, brb_ref, out_ref):
    x = x0_ref[...]            # (BS, H) residual stream (embedding-LN'd in wrapper)
    mask = mask_ref[...]       # (BS, BS) additive mask: cross-sample pairs + padded keys

    acc = jnp.zeros((BATCH, OUT_PAD), jnp.float32)   # lane-dense branch-logit accumulator

    # Entire encoder unrolled in ONE invocation — no per-layer grid steps or HBM trips.
    for l in range(NUM_LAYERS):
        small = small_ref[l]                                        # (8, 128) packed vectors
        bqkv = small[ROW_BQKV:ROW_BQKV + 1, :3 * HIDDEN]
        bo   = small[ROW_BO:ROW_BO + 1, :HIDDEN]
        ln1g = small[ROW_LN1G:ROW_LN1G + 1, :HIDDEN]
        ln1b = small[ROW_LN1B:ROW_LN1B + 1, :HIDDEN]
        b1   = small[ROW_B1:ROW_B1 + 1, :FFN]
        b2   = small[ROW_B2:ROW_B2 + 1, :HIDDEN]
        ln2g = small[ROW_LN2G:ROW_LN2G + 1, :HIDDEN]
        ln2b = small[ROW_LN2B:ROW_LN2B + 1, :HIDDEN]

        # fused QKV projection; 1/sqrt(HEAD_DIM) is folded into the Q columns at init
        qkv = jnp.dot(x, wqkv_ref[l], preferred_element_type=jnp.float32) + bqkv

        # Per-head attention over the flat (B*S) token axis.  The additive mask sets
        # cross-sample pairs to -1e9, so one (BS, BS) score matrix per head reproduces
        # per-sample attention with NO head/batch transposes or axis-0 concatenations.
        ctx_heads = []
        for h in range(NUM_HEADS):
            qh = qkv[:, h * HEAD_DIM:(h + 1) * HEAD_DIM]
            kh = qkv[:, HIDDEN + h * HEAD_DIM:HIDDEN + (h + 1) * HEAD_DIM]
            vh = qkv[:, 2 * HIDDEN + h * HEAD_DIM:2 * HIDDEN + (h + 1) * HEAD_DIM]
            s = jnp.dot(qh, kh.T, preferred_element_type=jnp.float32) + mask
            s = s - jnp.max(s, axis=-1, keepdims=True)
            p = jnp.exp(s)
            p = p / jnp.sum(p, axis=-1, keepdims=True)              # exact divide
            ctx_heads.append(jnp.dot(p, vh, preferred_element_type=jnp.float32))
        ctx = jnp.concatenate(ctx_heads, axis=-1)                   # (BS, H), heads lane-contiguous

        # single output projection (heads contiguous along the feature axis)
        attn = jnp.dot(ctx, wo_ref[l], preferred_element_type=jnp.float32) + bo
        h1 = _layernorm(x + attn, ln1g, ln1b)                       # post-LN

        ffn = jnp.dot(h1, w1_ref[l], preferred_element_type=jnp.float32) + b1
        ffn = _gelu(ffn)
        ffn = jnp.dot(ffn, w2_ref[l], preferred_element_type=jnp.float32) + b2
        x = _layernorm(h1 + ffn, ln2g, ln2b)                        # carry to next layer

        # concat(last-4 CLS) @ W  ==  sum_l CLS_l @ W[l*H:(l+1)*H] — accumulate in registers
        cls = jnp.concatenate([x[b * SEQ:b * SEQ + 1, :] for b in range(BATCH)], axis=0)  # (B, H)
        acc = acc + jnp.dot(cls, brw_ref[l], preferred_element_type=jnp.float32)
        # TODO(synk): dropout on the CLS embedding omitted (eval-mode identity).

    out_ref[...] = acc + brb_ref[...]                               # single lane-dense store


# ---------------- wrapper ----------------
def run_fused_encoder(x0, mask_add, p):
    args = (x0, mask_add, p["wqkv"], p["wo"], p["w1"], p["w2"],
            p["small"], p["branch_w"], p["branch_b"])

    flops_layer = (2 * BS * HIDDEN * 3 * HIDDEN                 # qkv proj
                   + NUM_HEADS * 2 * (2 * BS * BS * HEAD_DIM)   # scores + context
                   + 2 * BS * HIDDEN * HIDDEN                   # output proj
                   + 2 * (2 * BS * HIDDEN * FFN)                # ffn
                   + 2 * BATCH * HIDDEN * OUT_PAD)              # branch slice
    cost = pl.CostEstimate(
        flops=NUM_LAYERS * flops_layer,
        transcendentals=NUM_LAYERS * (NUM_HEADS * BS * BS + BS * FFN + 4 * BS),
        bytes_accessed=int(sum(int(a.size) * a.dtype.itemsize for a in args)
                           + BATCH * OUT_PAD * 4))

    # No grid: all weights (~150 KB f32) fit VMEM, so the layer loop runs fully
    # unrolled in one kernel invocation (zero per-layer grid / DMA overhead).
    # TODO(synk): at real PhoBERT sizes (H=768, FFN=3072) reintroduce a layer grid
    # with stacked-weight BlockSpecs, bf16 weights (f32 accumulation), an explicit
    # pltpu.CompilerParams(vmem_limit_bytes=...), and a "parallel" batch axis so
    # v7x's two TensorCores can split the work.
    return pl.pallas_call(
        fused_encoder_kernel,
        out_shape=jax.ShapeDtypeStruct((BATCH, OUT_PAD), jnp.float32),
        cost_estimate=cost,
    )(*args)


# ---------------- parameter init (deterministic, synthetic, layer-stacked) ----------------
def init_params(key):
    def nrm(k, shape, scale=0.02):
        return jax.random.normal(k, shape, jnp.float32) * scale

    ks = jax.random.split(key, 8)
    # TODO(synk): at real PhoBERT sizes store matmul weights in bfloat16 (keep LN/softmax f32).

    # fold the 1/sqrt(HEAD_DIM) query scale into the Q columns of wqkv
    q_scale = jnp.concatenate([jnp.full((HIDDEN,), 1.0 / math.sqrt(HEAD_DIM), jnp.float32),
                               jnp.ones((2 * HIDDEN,), jnp.float32)])
    wqkv = nrm(ks[3], (NUM_LAYERS, HIDDEN, 3 * HIDDEN)) * q_scale[None, None, :]

    # packed per-layer small tensors (biases zero, LN gammas one); a nonzero q-bias
    # would also be pre-scaled by 1/sqrt(HEAD_DIM) to match the folded query scale.
    small = jnp.zeros((NUM_LAYERS, 8, 128), jnp.float32)
    small = small.at[:, ROW_LN1G, :HIDDEN].set(1.0)
    small = small.at[:, ROW_LN2G, :HIDDEN].set(1.0)

    # per-aspect nn.Linear(4H, 4) fused into (4H, A*4), lane-padded to OUT_PAD and
    # reshaped so layer l's CLS contribution uses weight rows l*H:(l+1)*H
    branch_w = nrm(ks[7], (NUM_LAST_LAYERS * HIDDEN, OUT_DIM))
    branch_w = jnp.zeros((NUM_LAST_LAYERS * HIDDEN, OUT_PAD), jnp.float32
                         ).at[:, :OUT_DIM].set(branch_w)
    branch_w = branch_w.reshape(NUM_LAST_LAYERS, HIDDEN, OUT_PAD)

    return {
        "word_emb": nrm(ks[0], (VOCAB, HIDDEN)),
        "pos_emb": nrm(ks[1], (MAX_POS, HIDDEN)),
        "type_emb": nrm(ks[2], (1, HIDDEN)),
        "emb_ln_g": jnp.ones((1, HIDDEN), jnp.float32),
        "emb_ln_b": jnp.zeros((1, HIDDEN), jnp.float32),
        "wqkv": wqkv,
        "wo": nrm(ks[4], (NUM_LAYERS, HIDDEN, HIDDEN)),
        "w1": nrm(ks[5], (NUM_LAYERS, HIDDEN, FFN)),
        "w2": nrm(ks[6], (NUM_LAYERS, FFN, HIDDEN)),
        "small": small,
        "branch_w": branch_w,
        "branch_b": jnp.zeros((1, OUT_PAD), jnp.float32),
    }


# ---------------- forward (gather + mask prep in XLA, everything else in one kernel) ----------------
def forward(input_ids, attention_mask, params):
    """Returns a list of [batch, 4] logits, one per aspect (matches the torch module)."""
    # token/pos/type embedding gather + embedding LayerNorm stay in XLA (one-off, tiny)
    # TODO(synk): PhoBERT/RoBERTa position ids start at padding_idx+1 and skip pads;
    # this synthetic stand-in uses positions 0..S-1.
    we = params["word_emb"][input_ids]                                  # (B, S, H)
    pe = params["pos_emb"][jnp.arange(SEQ)][None, :, :]
    te = params["type_emb"][0][None, None, :]
    emb = we + pe + te
    mu = jnp.mean(emb, axis=-1, keepdims=True)
    var = jnp.mean((emb - mu) ** 2, axis=-1, keepdims=True)
    x0 = ((emb - mu) * jax.lax.rsqrt(var + LN_EPS) * params["emb_ln_g"]
          + params["emb_ln_b"]).reshape(BS, HIDDEN)

    # additive (BS, BS) mask, precomputed once: blocks cross-sample pairs and padded keys.
    # NOTE: padded *query* rows still get a valid softmax over their own sample's keys;
    # only the CLS row feeds the head, so they are never consumed.
    bidx = jnp.arange(BS) // SEQ
    key_ok = attention_mask.reshape(BS) > 0
    mask_add = jnp.where((bidx[:, None] == bidx[None, :]) & key_ok[None, :],
                         0.0, -1e9).astype(jnp.float32)

    logits = run_fused_encoder(x0, mask_add, params)[:, :OUT_DIM]       # (B, A*4)
    return [logits[:, j * NUM_POLARITIES:(j + 1) * NUM_POLARITIES]
            for j in range(NUM_ASPECTS)]


if __name__ == "__main__":
    key = jax.random.PRNGKey(0)
    k_param, k_ids = jax.random.split(key)
    params = init_params(k_param)

    input_ids = jax.random.randint(k_ids, (BATCH, SEQ), 0, VOCAB, dtype=jnp.int32)
    attention_mask = jnp.ones((BATCH, SEQ), jnp.int32).at[1, SEQ - 2:].set(0)  # pad tail of sample 1

    outs = jax.jit(lambda i, m: forward(i, m, params))(input_ids, attention_mask)
    outs = [jax.block_until_ready(o) for o in outs]

    assert len(outs) == NUM_ASPECTS
    for o in outs:
        assert o.shape == (BATCH, NUM_POLARITIES)
        assert bool(jnp.all(jnp.isfinite(o)))
    print("KERNEL_OK")
</pallas_src>

<mosaic_0001>
module attributes {stable_mosaic.version = 11 : i64} {
  func.func @fused_encoder_kernel(%arg0: memref<16x32xf32, #tpu.memory_space<vmem>>, %arg1: memref<16x16xf32, #tpu.memory_space<vmem>>, %arg2: memref<4x32x96xf32, #tpu.memory_space<vmem>>, %arg3: memref<4x32x32xf32, #tpu.memory_space<vmem>>, %arg4: memref<4x32x64xf32, #tpu.memory_space<vmem>>, %arg5: memref<4x64x32xf32, #tpu.memory_space<vmem>>, %arg6: memref<4x8x128xf32, #tpu.memory_space<vmem>>, %arg7: memref<4x32x128xf32, #tpu.memory_space<vmem>>, %arg8: memref<1x128xf32, #tpu.memory_space<vmem>>, %arg9: memref<2x128xf32, #tpu.memory_space<vmem>>) attributes {dimension_semantics = [], scalar_prefetch = 0 : i64, scratch_operands = 0 : i64, tpu.core_type = #tpu.core_type<tc>} {
    %c0 = arith.constant 0 : index
    %c0_0 = arith.constant 0 : index
    %0 = vector.load %arg0[%c0, %c0_0] : memref<16x32xf32, #tpu.memory_space<vmem>>, vector<16x32xf32>
    %c0_1 = arith.constant 0 : index
    %c0_2 = arith.constant 0 : index
    %1 = vector.load %arg1[%c0_1, %c0_2] : memref<16x16xf32, #tpu.memory_space<vmem>>, vector<16x16xf32>
    %cst = arith.constant 0.000000e+00 : f32
    %2 = vector.broadcast %cst : f32 to vector<2x128xf32>
    %c0_3 = arith.constant 0 : index
    %c0_4 = arith.constant 0 : index
    %c0_5 = arith.constant 0 : index
    %3 = vector.load %arg6[%c0_3, %c0_4, %c0_5] : memref<4x8x128xf32, #tpu.memory_space<vmem>>, vector<1x8x128xf32>
    %4 = vector.shape_cast %3 : vector<1x8x128xf32> to vector<8x128xf32>
    %5 = vector.extract_strided_slice %4 {offsets = [0, 0], sizes = [1, 96], strides = [1, 1]} : vector<8x128xf32> to vector<1x96xf32>
    %6 = vector.extract_strided_slice %4 {offsets = [1, 0], sizes = [1, 32], strides = [1, 1]} : vector<8x128xf32> to vector<1x32xf32>
    %7 = vector.extract_strided_slice %4 {offsets = [2, 0], sizes = [1, 32], strides = [1, 1]} : vector<8x128xf32> to vector<1x32xf32>
    %8 = vector.extract_strided_slice %4 {offsets = [3, 0], sizes = [1, 32], strides = [1, 1]} : vector<8x128xf32> to vector<1x32xf32>
    %9 = vector.extract_strided_slice %4 {offsets = [4, 0], sizes = [1, 64], strides = [1, 1]} : vector<8x128xf32> to vector<1x64xf32>
    %10 = vector.extract_strided_slice %4 {offsets = [5, 0], sizes = [1, 32], strides = [1, 1]} : vector<8x128xf32> to vector<1x32xf32>
    %11 = vector.extract_strided_slice %4 {offsets = [6, 0], sizes = [1, 32], strides = [1, 1]} : vector<8x128xf32> to vector<1x32xf32>
    %12 = vector.extract_strided_slice %4 {offsets = [7, 0], sizes = [1, 32], strides = [1, 1]} : vector<8x128xf32> to vector<1x32xf32>
    %c0_6 = arith.constant 0 : index
    %c0_7 = arith.constant 0 : index
    %c0_8 = arith.constant 0 : index
    %13 = vector.load %arg2[%c0_6, %c0_7, %c0_8] : memref<4x32x96xf32, #tpu.memory_space<vmem>>, vector<1x32x96xf32>
    %14 = vector.shape_cast %13 : vector<1x32x96xf32> to vector<32x96xf32>
    %cst_9 = arith.constant dense<0.000000e+00> : vector<16x96xf32>
    %15 = tpu.matmul %0, %14, %cst_9 {dimension_numbers = #tpu.dot_dimension_numbers<[1], [0], [0], [1], [0, 0, 1, 1], [], []>} : vector<16x32xf32>, vector<32x96xf32>, vector<16x96xf32> -> vector<16x96xf32>
    %16 = vector.broadcast %5 : vector<1x96xf32> to vector<16x96xf32>
    %17 = arith.addf %15, %16 : vector<16x96xf32>
    %18 = vector.extract_strided_slice %17 {offsets = [0, 0], sizes = [16, 16], strides = [1, 1]} : vector<16x96xf32> to vector<16x16xf32>
    %19 = vector.extract_strided_slice %17 {offsets = [0, 32], sizes = [16, 16], strides = [1, 1]} : vector<16x96xf32> to vector<16x16xf32>
    %20 = vector.extract_strided_slice %17 {offsets = [0, 64], sizes = [16, 16], strides = [1, 1]} : vector<16x96xf32> to vector<16x16xf32>
    %21 = tpu.transpose %19, [1, 0] : vector<16x16xf32> -> vector<16x16xf32>
    %cst_10 = arith.constant dense<0.000000e+00> : vector<16x16xf32>
    %22 = tpu.matmul %18, %21, %cst_10 {dimension_numbers = #tpu.dot_dimension_numbers<[1], [0], [0], [1], [0, 0, 1, 1], [], []>} : vector<16x16xf32>, vector<16x16xf32>, vector<16x16xf32> -> vector<16x16xf32>
    %23 = arith.addf %22, %1 : vector<16x16xf32>
    %cst_11 = arith.constant dense<0xFF800000> : vector<16xf32>
    %24 = vector.multi_reduction <maximumf>, %23, %cst_11 [1] : vector<16x16xf32> to vector<16xf32>
    %25 = vector.shape_cast %24 : vector<16xf32> to vector<16x1xf32>
    %26 = vector.broadcast %25 : vector<16x1xf32> to vector<16x16xf32>
    %27 = arith.subf %23, %26 : vector<16x16xf32>
    %28 = math.exp %27 : vector<16x16xf32>
    %cst_12 = arith.constant dense<0.000000e+00> : vector<16xf32>
    %29 = vector.multi_reduction <add>, %28, %cst_12 [1] : vector<16x16xf32> to vector<16xf32>
    %30 = vector.shape_cast %29 : vector<16xf32> to vector<16x1xf32>
    %31 = vector.broadcast %30 : vector<16x1xf32> to vector<16x16xf32>
    %32 = arith.divf %28, %31 : vector<16x16xf32>
    %cst_13 = arith.constant dense<0.000000e+00> : vector<16x16xf32>
    %33 = tpu.matmul %32, %20, %cst_13 {dimension_numbers = #tpu.dot_dimension_numbers<[1], [0], [0], [1], [0, 0, 1, 1], [], []>} : vector<16x16xf32>, vector<16x16xf32>, vector<16x16xf32> -> vector<16x16xf32>
    %34 = vector.extract_strided_slice %17 {offsets = [0, 16], sizes = [16, 16], strides = [1, 1]} : vector<16x96xf32> to vector<16x16xf32>
    %35 = vector.extract_strided_slice %17 {offsets = [0, 48], sizes = [16, 16], strides = [1, 1]} : vector<16x96xf32> to vector<16x16xf32>
    %36 = vector.extract_strided_slice %17 {offsets = [0, 80], sizes = [16, 16], strides = [1, 1]} : vector<16x96xf32> to vector<16x16xf32>
    %37 = tpu.transpose %35, [1, 0] : vector<16x16xf32> -> vector<16x16xf32>
    %cst_14 = arith.constant dense<0.000000e+00> : vector<16x16xf32>
    %38 = tpu.matmul %34, %37, %cst_14 {dimension_numbers = #tpu.dot_dimension_numbers<[1], [0], [0], [1], [0, 0, 1, 1], [], []>} : vector<16x16xf32>, vector<16x16xf32>, vector<16x16xf32> -> vector<16x16xf32>
    %39 = arith.addf %38, %1 : vector<16x16xf32>
    %cst_15 = arith.constant dense<0xFF800000> : vector<16xf32>
    %40 = vector.multi_reduction <maximumf>, %39, %cst_15 [1] : vector<16x16xf32> to vector<16xf32>
    %41 = vector.shape_cast %40 : vector<16xf32> to vector<16x1xf32>
    %42 = vector.broadcast %41 : vector<16x1xf32> to vector<16x16xf32>
    %43 = arith.subf %39, %42 : vector<16x16xf32>
    %44 = math.exp %43 : vector<16x16xf32>
    %cst_16 = arith.constant dense<0.000000e+00> : vector<16xf32>
    %45 = vector.multi_reduction <add>, %44, %cst_16 [1] : vector<16x16xf32> to vector<16xf32>
    %46 = vector.shape_cast %45 : vector<16xf32> to vector<16x1xf32>
    %47 = vector.broadcast %46 : vector<16x1xf32> to vector<16x16xf32>
    %48 = arith.divf %44, %47 : vector<16x16xf32>
    %cst_17 = arith.constant dense<0.000000e+00> : vector<16x16xf32>
    %49 = tpu.matmul %48, %36, %cst_17 {dimension_numbers = #tpu.dot_dimension_numbers<[1], [0], [0], [1], [0, 0, 1, 1], [], []>} : vector<16x16xf32>, vector<16x16xf32>, vector<16x16xf32> -> vector<16x16xf32>
    %50 = tpu.concatenate %33, %49 in 1 : vector<16x16xf32>, vector<16x16xf32> -> vector<16x32xf32>
    %c0_18 = arith.constant 0 : index
    %c0_19 = arith.constant 0 : index
    %c0_20 = arith.constant 0 : index
    %51 = vector.load %arg3[%c0_18, %c0_19, %c0_20] : memref<4x32x32xf32, #tpu.memory_space<vmem>>, vector<1x32x32xf32>
    %52 = vector.shape_cast %51 : vector<1x32x32xf32> to vector<32x32xf32>
    %cst_21 = arith.constant dense<0.000000e+00> : vector<16x32xf32>
    %53 = tpu.matmul %50, %52, %cst_21 {dimension_numbers = #tpu.dot_dimension_numbers<[1], [0], [0], [1], [0, 0, 1, 1], [], []>} : vector<16x32xf32>, vector<32x32xf32>, vector<16x32xf32> -> vector<16x32xf32>
    %54 = vector.broadcast %6 : vector<1x32xf32> to vector<16x32xf32>
    %55 = arith.addf %53, %54 : vector<16x32xf32>
    %56 = arith.addf %0, %55 : vector<16x32xf32>
    %cst_22 = arith.constant dense<0.000000e+00> : vector<16xf32>
    %57 = vector.multi_reduction <add>, %56, %cst_22 [1] : vector<16x32xf32> to vector<16xf32>
    %58 = vector.shape_cast %57 : vector<16xf32> to vector<16x1xf32>
    %cst_23 = arith.constant 3.200000e+01 : f32
    %59 = vector.broadcast %cst_23 : f32 to vector<16x1xf32>
    %60 = arith.divf %58, %59 : vector<16x1xf32>
    %61 = vector.broadcast %60 : vector<16x1xf32> to vector<16x32xf32>
    %62 = arith.subf %56, %61 : vector<16x32xf32>
    %63 = arith.mulf %62, %62 : vector<16x32xf32>
    %cst_24 = arith.constant dense<0.000000e+00> : vector<16xf32>
    %64 = vector.multi_reduction <add>, %63, %cst_24 [1] : vector<16x32xf32> to vector<16xf32>
    %65 = vector.shape_cast %64 : vector<16xf32> to vector<16x1xf32>
    %cst_25 = arith.constant 3.200000e+01 : f32
    %66 = vector.broadcast %cst_25 : f32 to vector<16x1xf32>
    %67 = arith.divf %65, %66 : vector<16x1xf32>
    %68 = vector.broadcast %60 : vector<16x1xf32> to vector<16x32xf32>
    %69 = arith.subf %56, %68 : vector<16x32xf32>
    %cst_26 = arith.constant 9.99999974E-6 : f32
    %70 = vector.broadcast %cst_26 : f32 to vector<16x1xf32>
    %71 = arith.addf %67, %70 : vector<16x1xf32>
    %72 = math.rsqrt %71 : vector<16x1xf32>
    %73 = vector.broadcast %72 : vector<16x1xf32> to vector<16x32xf32>
    %74 = arith.mulf %69, %73 : vector<16x32xf32>
    %75 = vector.broadcast %7 : vector<1x32xf32> to vector<16x32xf32>
    %76 = arith.mulf %74, %75 : vector<16x32xf32>
    %77 = vector.broadcast %8 : vector<1x32xf32> to vector<16x32xf32>
    %78 = arith.addf %76, %77 : vector<16x32xf32>
    %c0_27 = arith.constant 0 : index
    %c0_28 = arith.constant 0 : index
    %c0_29 = arith.constant 0 : index
    %79 = vector.load %arg4[%c0_27, %c0_28, %c0_29] : memref<4x32x64xf32, #tpu.memory_space<vmem>>, vector<1x32x64xf32>
    %80 = vector.shape_cast %79 : vector<1x32x64xf32> to vector<32x64xf32>
    %cst_30 = arith.constant dense<0.000000e+00> : vector<16x64xf32>
    %81 = tpu.matmul %78, %80, %cst_30 {dimension_numbers = #tpu.dot_dimension_numbers<[1], [0], [0], [1], [0, 0, 1, 1], [], []>} : vector<16x32xf32>, vector<32x64xf32>, vector<16x64xf32> -> vector<16x64xf32>
    %82 = vector.broadcast %9 : vector<1x64xf32> to vector<16x64xf32>
    %83 = arith.addf %81, %82 : vector<16x64xf32>
    %cst_31 = arith.constant 5.000000e-01 : f32
    %84 = vector.broadcast %cst_31 : f32 to vector<16x64xf32>
    %85 = arith.mulf %84, %83 : vector<16x64xf32>
    %cst_32 = arith.constant 4.471500e-02 : f32
    %86 = vector.broadcast %cst_32 : f32 to vector<16x64xf32>
    %87 = arith.mulf %86, %83 : vector<16x64xf32>
    %88 = arith.mulf %87, %83 : vector<16x64xf32>
    %89 = arith.mulf %88, %83 : vector<16x64xf32>
    %90 = arith.addf %83, %89 : vector<16x64xf32>
    %cst_33 = arith.constant 0.797884583 : f32
    %91 = vector.broadcast %cst_33 : f32 to vector<16x64xf32>
    %92 = arith.mulf %91, %90 : vector<16x64xf32>
    %93 = math.tanh %92 : vector<16x64xf32>
    %cst_34 = arith.constant 1.000000e+00 : f32
    %94 = vector.broadcast %cst_34 : f32 to vector<16x64xf32>
    %95 = arith.addf %94, %93 : vector<16x64xf32>
    %96 = arith.mulf %85, %95 : vector<16x64xf32>
    %c0_35 = arith.constant 0 : index
    %c0_36 = arith.constant 0 : index
    %c0_37 = arith.constant 0 : index
    %97 = vector.load %arg5[%c0_35, %c0_36, %c0_37] : memref<4x64x32xf32, #tpu.memory_space<vmem>>, vector<1x64x32xf32>
    %98 = vector.shape_cast %97 : vector<1x64x32xf32> to vector<64x32xf32>
    %cst_38 = arith.constant dense<0.000000e+00> : vector<16x32xf32>
    %99 = tpu.matmul %96, %98, %cst_38 {dimension_numbers = #tpu.dot_dimension_numbers<[1], [0], [0], [1], [0, 0, 1, 1], [], []>} : vector<16x64xf32>, vector<64x32xf32>, vector<16x32xf32> -> vector<16x32xf32>
    %100 = vector.broadcast %10 : vector<1x32xf32> to vector<16x32xf32>
    %101 = arith.addf %99, %100 : vector<16x32xf32>
    %102 = arith.addf %78, %101 : vector<16x32xf32>
    %cst_39 = arith.constant dense<0.000000e+00> : vector<16xf32>
    %103 = vector.multi_reduction <add>, %102, %cst_39 [1] : vector<16x32xf32> to vector<16xf32>
    %104 = vector.shape_cast %103 : vector<16xf32> to vector<16x1xf32>
    %cst_40 = arith.constant 3.200000e+01 : f32
    %105 = vector.broadcast %cst_40 : f32 to vector<16x1xf32>
    %106 = arith.divf %104, %105 : vector<16x1xf32>
    %107 = vector.broadcast %106 : vector<16x1xf32> to vector<16x32xf32>
    %108 = arith.subf %102, %107 : vector<16x32xf32>
    %109 = arith.mulf %108, %108 : vector<16x32xf32>
    %cst_41 = arith.constant dense<0.000000e+00> : vector<16xf32>
    %110 = vector.multi_reduction <add>, %109, %cst_41 [1] : vector<16x32xf32> to vector<16xf32>
    %111 = vector.shape_cast %110 : vector<16xf32> to vector<16x1xf32>
    %cst_42 = arith.constant 3.200000e+01 : f32
    %112 = vector.broadcast %cst_42 : f32 to vector<16x1xf32>
    %113 = arith.divf %111, %112 : vector<16x1xf32>
    %114 = vector.broadcast %106 : vector<16x1xf32> to vector<16x32xf32>
    %115 = arith.subf %102, %114 : vector<16x32xf32>
    %cst_43 = arith.constant 9.99999974E-6 : f32
    %116 = vector.broadcast %cst_43 : f32 to vector<16x1xf32>
    %117 = arith.addf %113, %116 : vector<16x1xf32>
    %118 = math.rsqrt %117 : vector<16x1xf32>
    %119 = vector.broadcast %118 : vector<16x1xf32> to vector<16x32xf32>
    %120 = arith.mulf %115, %119 : vector<16x32xf32>
    %121 = vector.broadcast %11 : vector<1x32xf32> to vector<16x32xf32>
    %122 = arith.mulf %120, %121 : vector<16x32xf32>
    %123 = vector.broadcast %12 : vector<1x32xf32> to vector<16x32xf32>
    %124 = arith.addf %122, %123 : vector<16x32xf32>
    %125 = vector.extract_strided_slice %124 {offsets = [0, 0], sizes = [1, 32], strides = [1, 1]} : vector<16x32xf32> to vector<1x32xf32>
    %126 = vector.extract_strided_slice %124 {offsets = [8, 0], sizes = [1, 32], strides = [1, 1]} : vector<16x32xf32> to vector<1x32xf32>
    %127 = tpu.concatenate %125, %126 in 0 : vector<1x32xf32>, vector<1x32xf32> -> vector<2x32xf32>
    %c0_44 = arith.constant 0 : index
    %c0_45 = arith.constant 0 : index
    %c0_46 = arith.constant 0 : index
    %128 = vector.load %arg7[%c0_44, %c0_45, %c0_46] : memref<4x32x128xf32, #tpu.memory_space<vmem>>, vector<1x32x128xf32>
    %129 = vector.shape_cast %128 : vector<1x32x128xf32> to vector<32x128xf32>
    %cst_47 = arith.constant dense<0.000000e+00> : vector<2x128xf32>
    %130 = tpu.matmul %127, %129, %cst_47 {dimension_numbers = #tpu.dot_dimension_numbers<[1], [0], [0], [1], [0, 0, 1, 1], [], []>} : vector<2x32xf32>, vector<32x128xf32>, vector<2x128xf32> -> vector<2x128xf32>
    %131 = arith.addf %2, %130 : vector<2x128xf32>
    %c1 = arith.constant 1 : index
    %c0_48 = arith.constant 0 : index
    %c0_49 = arith.constant 0 : index
    %132 = vector.load %arg6[%c1, %c0_48, %c0_49] : memref<4x8x128xf32, #tpu.memory_space<vmem>>, vector<1x8x128xf32>
    %133 = vector.shape_cast %132 : vector<1x8x128xf32> to vector<8x128xf32>
    %134 = vector.extract_strided_slice %133 {offsets = [0, 0], sizes = [1, 96], strides = [1, 1]} : vector<8x128xf32> to vector<1x96xf32>
    %135 = vector.extract_strided_slice %133 {offsets = [1, 0], sizes = [1, 32], strides = [1, 1]} : vector<8x128xf32> to vector<1x32xf32>
    %136 = vector.extract_strided_slice %133 {offsets = [2, 0], sizes = [1, 32], strides = [1, 1]} : vector<8x128xf32> to vector<1x32xf32>
    %137 = vector.extract_strided_slice %133 {offsets = [3, 0], sizes = [1, 32], strides = [1, 1]} : vector<8x128xf32> to vector<1x32xf32>
    %138 = vector.extract_strided_slice %133 {offsets = [4, 0], sizes = [1, 64], strides = [1, 1]} : vector<8x128xf32> to vector<1x64xf32>
    %139 = vector.extract_strided_slice %133 {offsets = [5, 0], sizes = [1, 32], strides = [1, 1]} : vector<8x128xf32> to vector<1x32xf32>
    %140 = vector.extract_strided_slice %133 {offsets = [6, 0], sizes = [1, 32], strides = [1, 1]} : vector<8x128xf32> to vector<1x32xf32>
    %141 = vector.extract_strided_slice %133 {offsets = [7, 0], sizes = [1, 32], strides = [1, 1]} : vector<8x128xf32> to vector<1x32xf32>
    %c1_50 = arith.constant 1 : index
    %c0_51 = arith.constant 0 : index
    %c0_52 = arith.constant 0 : index
    %142 = vector.load %arg2[%c1_50, %c0_51, %c0_52] : memref<4x32x96xf32, #tpu.memory_space<vmem>>, vector<1x32x96xf32>
    %143 = vector.shape_cast %142 : vector<1x32x96xf32> to vector<32x96xf32>
    %cst_53 = arith.constant dense<0.000000e+00> : vector<16x96xf32>
    %144 = tpu.matmul %124, %143, %cst_53 {dimension_numbers = #tpu.dot_dimension_numbers<[1], [0], [0], [1], [0, 0, 1, 1], [], []>} : vector<16x32xf32>, vector<32x96xf32>, vector<16x96xf32> -> vector<16x96xf32>
    %145 = vector.broadcast %134 : vector<1x96xf32> to vector<16x96xf32>
    %146 = arith.addf %144, %145 : vector<16x96xf32>
    %147 = vector.extract_strided_slice %146 {offsets = [0, 0], sizes = [16, 16], strides = [1, 1]} : vector<16x96xf32> to vector<16x16xf32>
    %148 = vector.extract_strided_slice %146 {offsets = [0, 32], sizes = [16, 16], strides = [1, 1]} : vector<16x96xf32> to vector<16x16xf32>
    %149 = vector.extract_strided_slice %146 {offsets = [0, 64], sizes = [16, 16], strides = [1, 1]} : vector<16x96xf32> to vector<16x16xf32>
    %150 = tpu.transpose %148, [1, 0] : vector<16x16xf32> -> vector<16x16xf32>
    %cst_54 = arith.constant dense<0.000000e+00> : vector<16x16xf32>
    %151 = tpu.matmul %147, %150, %cst_54 {dimension_numbers = #tpu.dot_dimension_numbers<[1], [0], [0], [1], [0, 0, 1, 1], [], []>} : vector<16x16xf32>, vector<16x16xf32>, vector<16x16xf32> -> vector<16x16xf32>
    %152 = arith.addf %151, %1 : vector<16x16xf32>
    %cst_55 = arith.constant dense<0xFF800000> : vector<16xf32>
    %153 = vector.multi_reduction <maximumf>, %152, %cst_55 [1] : vector<16x16xf32> to vector<16xf32>
    %154 = vector.shape_cast %153 : vector<16xf32> to vector<16x1xf32>
    %155 = vector.broadcast %154 : vector<16x1xf32> to vector<16x16xf32>
    %156 = arith.subf %152, %155 : vector<16x16xf32>
    %157 = math.exp %156 : vector<16x16xf32>
    %cst_56 = arith.constant dense<0.000000e+00> : vector<16xf32>
    %158 = vector.multi_reduction <add>, %157, %cst_56 [1] : vector<16x16xf32> to vector<16xf32>
    %159 = vector.shape_cast %158 : vector<16xf32> to vector<16x1xf32>
    %160 = vector.broadcast %159 : vector<16x1xf32> to vector<16x16xf32>
    %161 = arith.divf %157, %160 : vector<16x16xf32>
    %cst_57 = arith.constant dense<0.000000e+00> : vector<16x16xf32>
    %162 = tpu.matmul %161, %149, %cst_57 {dimension_numbers = #tpu.dot_dimension_numbers<[1], [0], [0], [1], [0, 0, 1, 1], [], []>} : vector<16x16xf32>, vector<16x16xf32>, vector<16x16xf32> -> vector<16x16xf32>
    %163 = vector.extract_strided_slice %146 {offsets = [0, 16], sizes = [16, 16], strides = [1, 1]} : vector<16x96xf32> to vector<16x16xf32>
    %164 = vector.extract_strided_slice %146 {offsets = [0, 48], sizes = [16, 16], strides = [1, 1]} : vector<16x96xf32> to vector<16x16xf32>
    %165 = vector.extract_strided_slice %146 {offsets = [0, 80], sizes = [16, 16], strides = [1, 1]} : vector<16x96xf32> to vector<16x16xf32>
    %166 = tpu.transpose %164, [1, 0] : vector<16x16xf32> -> vector<16x16xf32>
    %cst_58 = arith.constant dense<0.000000e+00> : vector<16x16xf32>
    %167 = tpu.matmul %163, %166, %cst_58 {dimension_numbers = #tpu.dot_dimension_numbers<[1], [0], [0], [1], [0, 0, 1, 1], [], []>} : vector<16x16xf32>, vector<16x16xf32>, vector<16x16xf32> -> vector<16x16xf32>
    %168 = arith.addf %167, %1 : vector<16x16xf32>
    %cst_59 = arith.constant dense<0xFF800000> : vector<16xf32>
    %169 = vector.multi_reduction <maximumf>, %168, %cst_59 [1] : vector<16x16xf32> to vector<16xf32>
    %170 = vector.shape_cast %169 : vector<16xf32> to vector<16x1xf32>
    %171 = vector.broadcast %170 : vector<16x1xf32> to vector<16x16xf32>
    %172 = arith.subf %168, %171 : vector<16x16xf32>
    %173 = math.exp %172 : vector<16x16xf32>
    %cst_60 = arith.constant dense<0.000000e+00> : vector<16xf32>
    %174 = vector.multi_reduction <add>, %173, %cst_60 [1] : vector<16x16xf32> to vector<16xf32>
    %175 = vector.shape_cast %174 : vector<16xf32> to vector<16x1xf32>
    %176 = vector.broadcast %175 : vector<16x1xf32> to vector<16x16xf32>
    %177 = arith.divf %173, %176 : vector<16x16xf32>
    %cst_61 = arith.constant dense<0.000000e+00> : vector<16x16xf32>
    %178 = tpu.matmul %177, %165, %cst_61 {dimension_numbers = #tpu.dot_dimension_numbers<[1], [0], [0], [1], [0, 0, 1, 1], [], []>} : vector<16x16xf32>, vector<16x16xf32>, vector<16x16xf32> -> vector<16x16xf32>
    %179 = tpu.concatenate %162, %178 in 1 : vector<16x16xf32>, vector<16x16xf32> -> vector<16x32xf32>
    %c1_62 = arith.constant 1 : index
    %c0_63 = arith.constant 0 : index
    %c0_64 = arith.constant 0 : index
    %180 = vector.load %arg3[%c1_62, %c0_63, %c0_64] : memref<4x32x32xf32, #tpu.memory_space<vmem>>, vector<1x32x32xf32>
    %181 = vector.shape_cast %180 : vector<1x32x32xf32> to vector<32x32xf32>
    %cst_65 = arith.constant dense<0.000000e+00> : vector<16x32xf32>
    %182 = tpu.matmul %179, %181, %cst_65 {dimension_numbers = #tpu.dot_dimension_numbers<[1], [0], [0], [1], [0, 0, 1, 1], [], []>} : vector<16x32xf32>, vector<32x32xf32>, vector<16x32xf32> -> vector<16x32xf32>
    %183 = vector.broadcast %135 : vector<1x32xf32> to vector<16x32xf32>
    %184 = arith.addf %182, %183 : vector<16x32xf32>
    %185 = arith.addf %124, %184 : vector<16x32xf32>
    %cst_66 = arith.constant dense<0.000000e+00> : vector<16xf32>
    %186 = vector.multi_reduction <add>, %185, %cst_66 [1] : vector<16x32xf32> to vector<16xf32>
    %187 = vector.shape_cast %186 : vector<16xf32> to vector<16x1xf32>
    %cst_67 = arith.constant 3.200000e+01 : f32
    %188 = vector.broadcast %cst_67 : f32 to vector<16x1xf32>
    %189 = arith.divf %187, %188 : vector<16x1xf32>
    %190 = vector.broadcast %189 : vector<16x1xf32> to vector<16x32xf32>
    %191 = arith.subf %185, %190 : vector<16x32xf32>
    %192 = arith.mulf %191, %191 : vector<16x32xf32>
    %cst_68 = arith.constant dense<0.000000e+00> : vector<16xf32>
    %193 = vector.multi_reduction <add>, %192, %cst_68 [1] : vector<16x32xf32> to vector<16xf32>
    %194 = vector.shape_cast %193 : vector<16xf32> to vector<16x1xf32>
    %cst_69 = arith.constant 3.200000e+01 : f32
    %195 = vector.broadcast %cst_69 : f32 to vector<16x1xf32>
    %196 = arith.divf %194, %195 : vector<16x1xf32>
    %197 = vector.broadcast %189 : vector<16x1xf32> to vector<16x32xf32>
    %198 = arith.subf %185, %197 : vector<16x32xf32>
    %cst_70 = arith.constant 9.99999974E-6 : f32
    %199 = vector.broadcast %cst_70 : f32 to vector<16x1xf32>
    %200 = arith.addf %196, %199 : vector<16x1xf32>
    %201 = math.rsqrt %200 : vector<16x1xf32>
    %202 = vector.broadcast %201 : vector<16x1xf32> to vector<16x32xf32>
    %203 = arith.mulf %198, %202 : vector<16x32xf32>
    %204 = vector.broadcast %136 : vector<1x32xf32> to vector<16x32xf32>
    %205 = arith.mulf %203, %204 : vector<16x32xf32>
    %206 = vector.broadcast %137 : vector<1x32xf32> to vector<16x32xf32>
    %207 = arith.addf %205, %206 : vector<16x32xf32>
    %c1_71 = arith.constant 1 : index
    %c0_72 = arith.constant 0 : index
    %c0_73 = arith.constant 0 : index
    %208 = vector.load %arg4[%c1_71, %c0_72, %c0_73] : memref<4x32x64xf32, #tpu.memory_space<vmem>>, vector<1x32x64xf32>
    %209 = vector.shape_cast %208 : vector<1x32x64xf32> to vector<32x64xf32>
    %cst_74 = arith.constant dense<0.000000e+00> : vector<16x64xf32>
    %210 = tpu.matmul %207, %209, %cst_74 {dimension_numbers = #tpu.dot_dimension_numbers<[1], [0], [0], [1], [0, 0, 1, 1], [], []>} : vector<16x32xf32>, vector<32x64xf32>, vector<16x64xf32> -> vector<16x64xf32>
    %211 = vector.broadcast %138 : vector<1x64xf32> to vector<16x64xf32>
    %212 = arith.addf %210, %211 : vector<16x64xf32>
    %cst_75 = arith.constant 5.000000e-01 : f32
    %213 = vector.broadcast %cst_75 : f32 to vector<16x64xf32>
    %214 = arith.mulf %213, %212 : vector<16x64xf32>
    %cst_76 = arith.constant 4.471500e-02 : f32
    %215 = vector.broadcast %cst_76 : f32 to vector<16x64xf32>
    %216 = arith.mulf %215, %212 : vector<16x64xf32>
    %217 = arith.mulf %216, %212 : vector<16x64xf32>
    %218 = arith.mulf %217, %212 : vector<16x64xf32>
    %219 = arith.addf %212, %218 : vector<16x64xf32>
    %cst_77 = arith.constant 0.797884583 : f32
    %220 = vector.broadcast %cst_77 : f32 to vector<16x64xf32>
    %221 = arith.mulf %220, %219 : vector<16x64xf32>
    %222 = math.tanh %221 : vector<16x64xf32>
    %cst_78 = arith.constant 1.000000e+00 : f32
    %223 = vector.broadcast %cst_78 : f32 to vector<16x64xf32>
    %224 = arith.addf %223, %222 : vector<16x64xf32>
    %225 = arith.mulf %214, %224 : vector<16x64xf32>
    %c1_79 = arith.constant 1 : index
    %c0_80 = arith.constant 0 : index
    %c0_81 = arith.constant 0 : index
    %226 = vector.load %arg5[%c1_79, %c0_80, %c0_81] : memref<4x64x32xf32, #tpu.memory_space<vmem>>, vector<1x64x32xf32>
    %227 = vector.shape_cast %226 : vector<1x64x32xf32> to vector<64x32xf32>
    %cst_82 = arith.constant dense<0.000000e+00> : vector<16x32xf32>
    %228 = tpu.matmul %225, %227, %cst_82 {dimension_numbers = #tpu.dot_dimension_numbers<[1], [0], [0], [1], [0, 0, 1, 1], [], []>} : vector<16x64xf32>, vector<64x32xf32>, vector<16x32xf32> -> vector<16x32xf32>
    %229 = vector.broadcast %139 : vector<1x32xf32> to vector<16x32xf32>
    %230 = arith.addf %228, %229 : vector<16x32xf32>
    %231 = arith.addf %207, %230 : vector<16x32xf32>
    %cst_83 = arith.constant dense<0.000000e+00> : vector<16xf32>
    %232 = vector.multi_reduction <add>, %231, %cst_83 [1] : vector<16x32xf32> to vector<16xf32>
    %233 = vector.shape_cast %232 : vector<16xf32> to vector<16x1xf32>
    %cst_84 = arith.constant 3.200000e+01 : f32
    %234 = vector.broadcast %cst_84 : f32 to vector<16x1xf32>
    %235 = arith.divf %233, %234 : vector<16x1xf32>
    %236 = vector.broadcast %235 : vector<16x1xf32> to vector<16x32xf32>
    %237 = arith.subf %231, %236 : vector<16x32xf32>
    %238 = arith.mulf %237, %237 : vector<16x32xf32>
    %cst_85 = arith.constant dense<0.000000e+00> : vector<16xf32>
    %239 = vector.multi_reduction <add>, %238, %cst_85 [1] : vector<16x32xf32> to vector<16xf32>
    %240 = vector.shape_cast %239 : vector<16xf32> to vector<16x1xf32>
    %cst_86 = arith.constant 3.200000e+01 : f32
    %241 = vector.broadcast %cst_86 : f32 to vector<16x1xf32>
    %242 = arith.divf %240, %241 : vector<16x1xf32>
    %243 = vector.broadcast %235 : vector<16x1xf32> to vector<16x32xf32>
    %244 = arith.subf %231, %243 : vector<16x32xf32>
    %cst_87 = arith.constant 9.99999974E-6 : f32
    %245 = vector.broadcast %cst_87 : f32 to vector<16x1xf32>
    %246 = arith.addf %242, %245 : vector<16x1xf32>
    %247 = math.rsqrt %246 : vector<16x1xf32>
    %248 = vector.broadcast %247 : vector<16x1xf32> to vector<16x32xf32>
    %249 = arith.mulf %244, %248 : vector<16x32xf32>
    %250 = vector.broadcast %140 : vector<1x32xf32> to vector<16x32xf32>
    %251 = arith.mulf %249, %250 : vector<16x32xf32>
    %252 = vector.broadcast %141 : vector<1x32xf32> to vector<16x32xf32>
    %253 = arith.addf %251, %252 : vector<16x32xf32>
    %254 = vector.extract_strided_slice %253 {offsets = [0, 0], sizes = [1, 32], strides = [1, 1]} : vector<16x32xf32> to vector<1x32xf32>
    %255 = vector.extract_strided_slice %253 {offsets = [8, 0], sizes = [1, 32], strides = [1, 1]} : vector<16x32xf32> to vector<1x32xf32>
    %256 = tpu.concatenate %254, %255 in 0 : vector<1x32xf32>, vector<1x32xf32> -> vector<2x32xf32>
    %c1_88 = arith.constant 1 : index
    %c0_89 = arith.constant 0 : index
    %c0_90 = arith.constant 0 : index
    %257 = vector.load %arg7[%c1_88, %c0_89, %c0_90] : memref<4x32x128xf32, #tpu.memory_space<vmem>>, vector<1x32x128xf32>
    %258 = vector.shape_cast %257 : vector<1x32x128xf32> to vector<32x128xf32>
    %cst_91 = arith.constant dense<0.000000e+00> : vector<2x128xf32>
    %259 = tpu.matmul %256, %258, %cst_91 {dimension_numbers = #tpu.dot_dimension_numbers<[1], [0], [0], [1], [0, 0, 1, 1], [], []>} : vector<2x32xf32>, vector<32x128xf32>, vector<2x128xf32> -> vector<2x128xf32>
    %260 = arith.addf %131, %259 : vector<2x128xf32>
    %c2 = arith.constant 2 : index
    %c0_92 = arith.constant 0 : index
    %c0_93 = arith.constant 0 : index
    %261 = vector.load %arg6[%c2, %c0_92, %c0_93] : memref<4x8x128xf32, #tpu.memory_space<vmem>>, vector<1x8x128xf32>
    %262 = vector.shape_cast %261 : vector<1x8x128xf32> to vector<8x128xf32>
    %263 = vector.extract_strided_slice %262 {offsets = [0, 0], sizes = [1, 96], strides = [1, 1]} : vector<8x128xf32> to vector<1x96xf32>
    %264 = vector.extract_strided_slice %262 {offsets = [1, 0], sizes = [1, 32], strides = [1, 1]} : vector<8x128xf32> to vector<1x32xf32>
    %265 = vector.extract_strided_slice %262 {offsets = [2, 0], sizes = [1, 32], strides = [1, 1]} : vector<8x128xf32> to vector<1x32xf32>
    %266 = vector.extract_strided_slice %262 {offsets = [3, 0], sizes = [1, 32], strides = [1, 1]} : vector<8x128xf32> to vector<1x32xf32>
    %267 = vector.extract_strided_slice %262 {offsets = [4, 0], sizes = [1, 64], strides = [1, 1]} : vector<8x128xf32> to vector<1x64xf32>
    %268 = vector.extract_strided_slice %262 {offsets = [5, 0], sizes = [1, 32], strides = [1, 1]} : vector<8x128xf32> to vector<1x32xf32>
    %269 = vector.extract_strided_slice %262 {offsets = [6, 0], sizes = [1, 32], strides = [1, 1]} : vector<8x128xf32> to vector<1x32xf32>
    %270 = vector.extract_strided_slice %262 {offsets = [7, 0], sizes = [1, 32], strides = [1, 1]} : vector<8x128xf32> to vector<1x32xf32>
    %c2_94 = arith.constant 2 : index
    %c0_95 = arith.constant 0 : index
    %c0_96 = arith.constant 0 : index
    %271 = vector.load %arg2[%c2_94, %c0_95, %c0_96] : memref<4x32x96xf32, #tpu.memory_space<vmem>>, vector<1x32x96xf32>
    %272 = vector.shape_cast %271 : vector<1x32x96xf32> to vector<32x96xf32>
    %cst_97 = arith.constant dense<0.000000e+00> : vector<16x96xf32>
    %273 = tpu.matmul %253, %272, %cst_97 {dimension_numbers = #tpu.dot_dimension_numbers<[1], [0], [0], [1], [0, 0, 1, 1], [], []>} : vector<16x32xf32>, vector<32x96xf32>, vector<16x96xf32> -> vector<16x96xf32>
    %274 = vector.broadcast %263 : vector<1x96xf32> to vector<16x96xf32>
    %275 = arith.addf %273, %274 : vector<16x96xf32>
    %276 = vector.extract_strided_slice %275 {offsets = [0, 0], sizes = [16, 16], strides = [1, 1]} : vector<16x96xf32> to vector<16x16xf32>
    %277 = vector.extract_strided_slice %275 {offsets = [0, 32], sizes = [16, 16], strides = [1, 1]} : vector<16x96xf32> to vector<16x16xf32>
    %278 = vector.extract_strided_slice %275 {offsets = [0, 64], sizes = [16, 16], strides = [1, 1]} : vector<16x96xf32> to vector<16x16xf32>
    %279 = tpu.transpose %277, [1, 0] : vector<16x16xf32> -> vector<16x16xf32>
    %cst_98 = arith.constant dense<0.000000e+00> : vector<16x16xf32>
    %280 = tpu.matmul %276, %279, %cst_98 {dimension_numbers = #tpu.dot_dimension_numbers<[1], [0], [0], [1], [0, 0, 1, 1], [], []>} : vector<16x16xf32>, vector<16x16xf32>, vector<16x16xf32> -> vector<16x16xf32>
    %281 = arith.addf %280, %1 : vector<16x16xf32>
    %cst_99 = arith.constant dense<0xFF800000> : vector<16xf32>
    %282 = vector.multi_reduction <maximumf>, %281, %cst_99 [1] : vector<16x16xf32> to vector<16xf32>
    %283 = vector.shape_cast %282 : vector<16xf32> to vector<16x1xf32>
    %284 = vector.broadcast %283 : vector<16x1xf32> to vector<16x16xf32>
    %285 = arith.subf %281, %284 : vector<16x16xf32>
    %286 = math.exp %285 : vector<16x16xf32>
    %cst_100 = arith.constant dense<0.000000e+00> : vector<16xf32>
    %287 = vector.multi_reduction <add>, %286, %cst_100 [1] : vector<16x16xf32> to vector<16xf32>
    %288 = vector.shape_cast %287 : vector<16xf32> to vector<16x1xf32>
    %289 = vector.broadcast %288 : vector<16x1xf32> to vector<16x16xf32>
    %290 = arith.divf %286, %289 : vector<16x16xf32>
    %cst_101 = arith.constant dense<0.000000e+00> : vector<16x16xf32>
    %291 = tpu.matmul %290, %278, %cst_101 {dimension_numbers = #tpu.dot_dimension_numbers<[1], [0], [0], [1], [0, 0, 1, 1], [], []>} : vector<16x16xf32>, vector<16x16xf32>, vector<16x16xf32> -> vector<16x16xf32>
    %292 = vector.extract_strided_slice %275 {offsets = [0, 16], sizes = [16, 16], strides = [1, 1]} : vector<16x96xf32> to vector<16x16xf32>
    %293 = vector.extract_strided_slice %275 {offsets = [0, 48], sizes = [16, 16], strides = [1, 1]} : vector<16x96xf32> to vector<16x16xf32>
    %294 = vector.extract_strided_slice %275 {offsets = [0, 80], sizes = [16, 16], strides = [1, 1]} : vector<16x96xf32> to vector<16x16xf32>
    %295 = tpu.transpose %293, [1, 0] : vector<16x16xf32> -> vector<16x16xf32>
    %cst_102 = arith.constant dense<0.000000e+00> : vector<16x16xf32>
    %296 = tpu.matmul %292, %295, %cst_102 {dimension_numbers = #tpu.dot_dimension_numbers<[1], [0], [0], [1], [0, 0, 1, 1], [], []>} : vector<16x16xf32>, vector<16x16xf32>, vector<16x16xf32> -> vector<16x16xf32>
    %297 = arith.addf %296, %1 : vector<16x16xf32>
    %cst_103 = arith.constant dense<0xFF800000> : vector<16xf32>
    %298 = vector.multi_reduction <maximumf>, %297, %cst_103 [1] : vector<16x16xf32> to vector<16xf32>
    %299 = vector.shape_cast %298 : vector<16xf32> to vector<16x1xf32>
    %300 = vector.broadcast %299 : vector<16x1xf32> to vector<16x16xf32>
    %301 = arith.subf %297, %300 : vector<16x16xf32>
    %302 = math.exp %301 : vector<16x16xf32>
    %cst_104 = arith.constant dense<0.000000e+00> : vector<16xf32>
    %303 = vector.multi_reduction <add>, %302, %cst_104 [1] : vector<16x16xf32> to vector<16xf32>
    %304 = vector.shape_cast %303 : vector<16xf32> to vector<16x1xf32>
    %305 = vector.broadcast %304 : vector<16x1xf32> to vector<16x16xf32>
    %306 = arith.divf %302, %305 : vector<16x16xf32>
    %cst_105 = arith.constant dense<0.000000e+00> : vector<16x16xf32>
    %307 = tpu.matmul %306, %294, %cst_105 {dimension_numbers = #tpu.dot_dimension_numbers<[1], [0], [0], [1], [0, 0, 1, 1], [], []>} : vector<16x16xf32>, vector<16x16xf32>, vector<16x16xf32> -> vector<16x16xf32>
    %308 = tpu.concatenate %291, %307 in 1 : vector<16x16xf32>, vector<16x16xf32> -> vector<16x32xf32>
    %c2_106 = arith.constant 2 : index
    %c0_107 = arith.constant 0 : index
    %c0_108 = arith.constant 0 : index
    %309 = vector.load %arg3[%c2_106, %c0_107, %c0_108] : memref<4x32x32xf32, #tpu.memory_space<vmem>>, vector<1x32x32xf32>
    %310 = vector.shape_cast %309 : vector<1x32x32xf32> to vector<32x32xf32>
    %cst_109 = arith.constant dense<0.000000e+00> : vector<16x32xf32>
    %311 = tpu.matmul %308, %310, %cst_109 {dimension_numbers = #tpu.dot_dimension_numbers<[1], [0], [0], [1], [0, 0, 1, 1], [], []>} : vector<16x32xf32>, vector<32x32xf32>, vector<16x32xf32> -> vector<16x32xf32>
    %312 = vector.broadcast %264 : vector<1x32xf32> to vector<16x32xf32>
    %313 = arith.addf %311, %312 : vector<16x32xf32>
    %314 = arith.addf %253, %313 : vector<16x32xf32>
    %cst_110 = arith.constant dense<0.000000e+00> : vector<16xf32>
    %315 = vector.multi_reduction <add>, %314, %cst_110 [1] : vector<16x32xf32> to vector<16xf32>
    %316 = vector.shape_cast %315 : vector<16xf32> to vector<16x1xf32>
    %cst_111 = arith.constant 3.200000e+01 : f32
    %317 = vector.broadcast %cst_111 : f32 to vector<16x1xf32>
    %318 = arith.divf %316, %317 : vector<16x1xf32>
    %319 = vector.broadcast %318 : vector<16x1xf32> to vector<16x32xf32>
    %320 = arith.subf %314, %319 : vector<16x32xf32>
    %321 = arith.mulf %320, %320 : vector<16x32xf32>
    %cst_112 = arith.constant dense<0.000000e+00> : vector<16xf32>
    %322 = vector.multi_reduction <add>, %321, %cst_112 [1] : vector<16x32xf32> to vector<16xf32>
    %323 = vector.shape_cast %322 : vector<16xf32> to vector<16x1xf32>
    %cst_113 = arith.constant 3.200000e+01 : f32
    %324 = vector.broadcast %cst_113 : f32 to vector<16x1xf32>
    %325 = arith.divf %323, %324 : vector<16x1xf32>
    %326 = vector.broadcast %318 : vector<16x1xf32> to vector<16x32xf32>
    %327 = arith.subf %314, %326 : vector<16x32xf32>
    %cst_114 = arith.constant 9.99999974E-6 : f32
    %328 = vector.broadcast %cst_114 : f32 to vector<16x1xf32>
    %329 = arith.addf %325, %328 : vector<16x1xf32>
    %330 = math.rsqrt %329 : vector<16x1xf32>
    %331 = vector.broadcast %330 : vector<16x1xf32> to vector<16x32xf32>
    %332 = arith.mulf %327, %331 : vector<16x32xf32>
    %333 = vector.broadcast %265 : vector<1x32xf32> to vector<16x32xf32>
    %334 = arith.mulf %332, %333 : vector<16x32xf32>
    %335 = vector.broadcast %266 : vector<1x32xf32> to vector<16x32xf32>
    %336 = arith.addf %334, %335 : vector<16x32xf32>
    %c2_115 = arith.constant 2 : index
    %c0_116 = arith.constant 0 : index
    %c0_117 = arith.constant 0 : index
    %337 = vector.load %arg4[%c2_115, %c0_116, %c0_117] : memref<4x32x64xf32, #tpu.memory_space<vmem>>, vector<1x32x64xf32>
    %338 = vector.shape_cast %337 : vector<1x32x64xf32> to vector<32x64xf32>
    %cst_118 = arith.constant dense<0.000000e+00> : vector<16x64xf32>
    %339 = tpu.matmul %336, %338, %cst_118 {dimension_numbers = #tpu.dot_dimension_numbers<[1], [0], [0], [1], [0, 0, 1, 1], [], []>} : vector<16x32xf32>, vector<32x64xf32>, vector<16x64xf32> -> vector<16x64xf32>
    %340 = vector.broadcast %267 : vector<1x64xf32> to vector<16x64xf32>
    %341 = arith.addf %339, %340 : vector<16x64xf32>
    %cst_119 = arith.constant 5.000000e-01 : f32
    %342 = vector.broadcast %cst_119 : f32 to vector<16x64xf32>
    %343 = arith.mulf %342, %341 : vector<16x64xf32>
    %cst_120 = arith.constant 4.471500e-02 : f32
    %344 = vector.broadcast %cst_120 : f32 to vector<16x64xf32>
    %345 = arith.mulf %344, %341 : vector<16x64xf32>
    %346 = arith.mulf %345, %341 : vector<16x64xf32>
    %347 = arith.mulf %346, %341 : vector<16x64xf32>
    %348 = arith.addf %341, %347 : vector<16x64xf32>
    %cst_121 = arith.constant 0.797884583 : f32
    %349 = vector.broadcast %cst_121 : f32 to vector<16x64xf32>
    %350 = arith.mulf %349, %348 : vector<16x64xf32>
    %351 = math.tanh %350 : vector<16x64xf32>
    %cst_122 = arith.constant 1.000000e+00 : f32
    %352 = vector.broadcast %cst_122 : f32 to vector<16x64xf32>
    %353 = arith.addf %352, %351 : vector<16x64xf32>
    %354 = arith.mulf %343, %353 : vector<16x64xf32>
    %c2_123 = arith.constant 2 : index
    %c0_124 = arith.constant 0 : index
    %c0_125 = arith.constant 0 : index
    %355 = vector.load %arg5[%c2_123, %c0_124, %c0_125] : memref<4x64x32xf32, #tpu.memory_space<vmem>>, vector<1x64x32xf32>
    %356 = vector.shape_cast %355 : vector<1x64x32xf32> to vector<64x32xf32>
    %cst_126 = arith.constant dense<0.000000e+00> : vector<16x32xf32>
    %357 = tpu.matmul %354, %356, %cst_126 {dimension_numbers = #tpu.dot_dimension_numbers<[1], [0], [0], [1], [0, 0, 1, 1], [], []>} : vector<16x64xf32>, vector<64x32xf32>, vector<16x32xf32> -> vector<16x32xf32>
    %358 = vector.broadcast %268 : vector<1x32xf32> to vector<16x32xf32>
    %359 = arith.addf %357, %358 : vector<16x32xf32>
    %360 = arith.addf %336, %359 : vector<16x32xf32>
    %cst_127 = arith.constant dense<0.000000e+00> : vector<16xf32>
    %361 = vector.multi_reduction <add>, %360, %cst_127 [1] : vector<16x32xf32> to vector<16xf32>
    %362 = vector.shape_cast %361 : vector<16xf32> to vector<16x1xf32>
    %cst_128 = arith.constant 3.200000e+01 : f32
    %363 = vector.broadcast %cst_128 : f32 to vector<16x1xf32>
    %364 = arith.divf %362, %363 : vector<16x1xf32>
    %365 = vector.broadcast %364 : vector<16x1xf32> to vector<16x32xf32>
    %366 = arith.subf %360, %365 : vector<16x32xf32>
    %367 = arith.mulf %366, %366 : vector<16x32xf32>
    %cst_129 = arith.constant dense<0.000000e+00> : vector<16xf32>
    %368 = vector.multi_reduction <add>, %367, %cst_129 [1] : vector<16x32xf32> to vector<16xf32>
    %369 = vector.shape_cast %368 : vector<16xf32> to vector<16x1xf32>
    %cst_130 = arith.constant 3.200000e+01 : f32
    %370 = vector.broadcast %cst_130 : f32 to vector<16x1xf32>
    %371 = arith.divf %369, %370 : vector<16x1xf32>
    %372 = vector.broadcast %364 : vector<16x1xf32> to vector<16x32xf32>
    %373 = arith.subf %360, %372 : vector<16x32xf32>
    %cst_131 = arith.constant 9.99999974E-6 : f32
    %374 = vector.broadcast %cst_131 : f32 to vector<16x1xf32>
    %375 = arith.addf %371, %374 : vector<16x1xf32>
    %376 = math.rsqrt %375 : vector<16x1xf32>
    %377 = vector.broadcast %376 : vector<16x1xf32> to vector<16x32xf32>
    %378 = arith.mulf %373, %377 : vector<16x32xf32>
    %379 = vector.broadcast %269 : vector<1x32xf32> to vector<16x32xf32>
    %380 = arith.mulf %378, %379 : vector<16x32xf32>
    %381 = vector.broadcast %270 : vector<1x32xf32> to vector<16x32xf32>
    %382 = arith.addf %380, %381 : vector<16x32xf32>
    %383 = vector.extract_strided_slice %382 {offsets = [0, 0], sizes = [1, 32], strides = [1, 1]} : vector<16x32xf32> to vector<1x32xf32>
    %384 = vector.extract_strided_slice %382 {offsets = [8, 0], sizes = [1, 32], strides = [1, 1]} : vector<16x32xf32> to vector<1x32xf32>
    %385 = tpu.concatenate %383, %384 in 0 : vector<1x32xf32>, vector<1x32xf32> -> vector<2x32xf32>
    %c2_132 = arith.constant 2 : index
    %c0_133 = arith.constant 0 : index
    %c0_134 = arith.constant 0 : index
    %386 = vector.load %arg7[%c2_132, %c0_133, %c0_134] : memref<4x32x128xf32, #tpu.memory_space<vmem>>, vector<1x32x128xf32>
    %387 = vector.shape_cast %386 : vector<1x32x128xf32> to vector<32x128xf32>
    %cst_135 = arith.constant dense<0.000000e+00> : vector<2x128xf32>
    %388 = tpu.matmul %385, %387, %cst_135 {dimension_numbers = #tpu.dot_dimension_numbers<[1], [0], [0], [1], [0, 0, 1, 1], [], []>} : vector<2x32xf32>, vector<32x128xf32>, vector<2x128xf32> -> vector<2x128xf32>
    %389 = arith.addf %260, %388 : vector<2x128xf32>
    %c3 = arith.constant 3 : index
    %c0_136 = arith.constant 0 : index
    %c0_137 = arith.constant 0 : index
    %390 = vector.load %arg6[%c3, %c0_136, %c0_137] : memref<4x8x128xf32, #tpu.memory_space<vmem>>, vector<1x8x128xf32>
    %391 = vector.shape_cast %390 : vector<1x8x128xf32> to vector<8x128xf32>
    %392 = vector.extract_strided_slice %391 {offsets = [0, 0], sizes = [1, 96], strides = [1, 1]} : vector<8x128xf32> to vector<1x96xf32>
    %393 = vector.extract_strided_slice %391 {offsets = [1, 0], sizes = [1, 32], strides = [1, 1]} : vector<8x128xf32> to vector<1x32xf32>
    %394 = vector.extract_strided_slice %391 {offsets = [2, 0], sizes = [1, 32], strides = [1, 1]} : vector<8x128xf32> to vector<1x32xf32>
    %395 = vector.extract_strided_slice %391 {offsets = [3, 0], sizes = [1, 32], strides = [1, 1]} : vector<8x128xf32> to vector<1x32xf32>
    %396 = vector.extract_strided_slice %391 {offsets = [4, 0], sizes = [1, 64], strides = [1, 1]} : vector<8x128xf32> to vector<1x64xf32>
    %397 = vector.extract_strided_slice %391 {offsets = [5, 0], sizes = [1, 32], strides = [1, 1]} : vector<8x128xf32> to vector<1x32xf32>
    %398 = vector.extract_strided_slice %391 {offsets = [6, 0], sizes = [1, 32], strides = [1, 1]} : vector<8x128xf32> to vector<1x32xf32>
    %399 = vector.extract_strided_slice %391 {offsets = [7, 0], sizes = [1, 32], strides = [1, 1]} : vector<8x128xf32> to vector<1x32xf32>
    %c3_138 = arith.constant 3 : index
    %c0_139 = arith.constant 0 : index
    %c0_140 = arith.constant 0 : index
    %400 = vector.load %arg2[%c3_138, %c0_139, %c0_140] : memref<4x32x96xf32, #tpu.memory_space<vmem>>, vector<1x32x96xf32>
    %401 = vector.shape_cast %400 : vector<1x32x96xf32> to vector<32x96xf32>
    %cst_141 = arith.constant dense<0.000000e+00> : vector<16x96xf32>
    %402 = tpu.matmul %382, %401, %cst_141 {dimension_numbers = #tpu.dot_dimension_numbers<[1], [0], [0], [1], [0, 0, 1, 1], [], []>} : vector<16x32xf32>, vector<32x96xf32>, vector<16x96xf32> -> vector<16x96xf32>
    %403 = vector.broadcast %392 : vector<1x96xf32> to vector<16x96xf32>
    %404 = arith.addf %402, %403 : vector<16x96xf32>
    %405 = vector.extract_strided_slice %404 {offsets = [0, 0], sizes = [16, 16], strides = [1, 1]} : vector<16x96xf32> to vector<16x16xf32>
    %406 = vector.extract_strided_slice %404 {offsets = [0, 32], sizes = [16, 16], strides = [1, 1]} : vector<16x96xf32> to vector<16x16xf32>
    %407 = vector.extract_strided_slice %404 {offsets = [0, 64], sizes = [16, 16], strides = [1, 1]} : vector<16x96xf32> to vector<16x16xf32>
    %408 = tpu.transpose %406, [1, 0] : vector<16x16xf32> -> vector<16x16xf32>
    %cst_142 = arith.constant dense<0.000000e+00> : vector<16x16xf32>
    %409 = tpu.matmul %405, %408, %cst_142 {dimension_numbers = #tpu.dot_dimension_numbers<[1], [0], [0], [1], [0, 0, 1, 1], [], []>} : vector<16x16xf32>, vector<16x16xf32>, vector<16x16xf32> -> vector<16x16xf32>
    %410 = arith.addf %409, %1 : vector<16x16xf32>
    %cst_143 = arith.constant dense<0xFF800000> : vector<16xf32>
    %411 = vector.multi_reduction <maximumf>, %410, %cst_143 [1] : vector<16x16xf32> to vector<16xf32>
    %412 = vector.shape_cast %411 : vector<16xf32> to vector<16x1xf32>
    %413 = vector.broadcast %412 : vector<16x1xf32> to vector<16x16xf32>
    %414 = arith.subf %410, %413 : vector<16x16xf32>
    %415 = math.exp %414 : vector<16x16xf32>
    %cst_144 = arith.constant dense<0.000000e+00> : vector<16xf32>
    %416 = vector.multi_reduction <add>, %415, %cst_144 [1] : vector<16x16xf32> to vector<16xf32>
    %417 = vector.shape_cast %416 : vector<16xf32> to vector<16x1xf32>
    %418 = vector.broadcast %417 : vector<16x1xf32> to vector<16x16xf32>
    %419 = arith.divf %415, %418 : vector<16x16xf32>
    %cst_145 = arith.constant dense<0.000000e+00> : vector<16x16xf32>
    %420 = tpu.matmul %419, %407, %cst_145 {dimension_numbers = #tpu.dot_dimension_numbers<[1], [0], [0], [1], [0, 0, 1, 1], [], []>} : vector<16x16xf32>, vector<16x16xf32>, vector<16x16xf32> -> vector<16x16xf32>
    %421 = vector.extract_strided_slice %404 {offsets = [0, 16], sizes = [16, 16], strides = [1, 1]} : vector<16x96xf32> to vector<16x16xf32>
    %422 = vector.extract_strided_slice %404 {offsets = [0, 48], sizes = [16, 16], strides = [1, 1]} : vector<16x96xf32> to vector<16x16xf32>
    %423 = vector.extract_strided_slice %404 {offsets = [0, 80], sizes = [16, 16], strides = [1, 1]} : vector<16x96xf32> to vector<16x16xf32>
    %424 = tpu.transpose %422, [1, 0] : vector<16x16xf32> -> vector<16x16xf32>
    %cst_146 = arith.constant dense<0.000000e+00> : vector<16x16xf32>
    %425 = tpu.matmul %421, %424, %cst_146 {dimension_numbers = #tpu.dot_dimension_numbers<[1], [0], [0], [1], [0, 0, 1, 1], [], []>} : vector<16x16xf32>, vector<16x16xf32>, vector<16x16xf32> -> vector<16x16xf32>
    %426 = arith.addf %425, %1 : vector<16x16xf32>
    %cst_147 = arith.constant dense<0xFF800000> : vector<16xf32>
    %427 = vector.multi_reduction <maximumf>, %426, %cst_147 [1] : vector<16x16xf32> to vector<16xf32>
    %428 = vector.shape_cast %427 : vector<16xf32> to vector<16x1xf32>
    %429 = vector.broadcast %428 : vector<16x1xf32> to vector<16x16xf32>
    %430 = arith.subf %426, %429 : vector<16x16xf32>
    %431 = math.exp %430 : vector<16x16xf32>
    %cst_148 = arith.constant dense<0.000000e+00> : vector<16xf32>
    %432 = vector.multi_reduction <add>, %431, %cst_148 [1] : vector<16x16xf32> to vector<16xf32>
    %433 = vector.shape_cast %432 : vector<16xf32> to vector<16x1xf32>
    %434 = vector.broadcast %433 : vector<16x1xf32> to vector<16x16xf32>
    %435 = arith.divf %431, %434 : vector<16x16xf32>
    %cst_149 = arith.constant dense<0.000000e+00> : vector<16x16xf32>
    %436 = tpu.matmul %435, %423, %cst_149 {dimension_numbers = #tpu.dot_dimension_numbers<[1], [0], [0], [1], [0, 0, 1, 1], [], []>} : vector<16x16xf32>, vector<16x16xf32>, vector<16x16xf32> -> vector<16x16xf32>
    %437 = tpu.concatenate %420, %436 in 1 : vector<16x16xf32>, vector<16x16xf32> -> vector<16x32xf32>
    %c3_150 = arith.constant 3 : index
    %c0_151 = arith.constant 0 : index
    %c0_152 = arith.constant 0 : index
    %438 = vector.load %arg3[%c3_150, %c0_151, %c0_152] : memref<4x32x32xf32, #tpu.memory_space<vmem>>, vector<1x32x32xf32>
    %439 = vector.shape_cast %438 : vector<1x32x32xf32> to vector<32x32xf32>
    %cst_153 = arith.constant dense<0.000000e+00> : vector<16x32xf32>
    %440 = tpu.matmul %437, %439, %cst_153 {dimension_numbers = #tpu.dot_dimension_numbers<[1], [0], [0], [1], [0, 0, 1, 1], [], []>} : vector<16x32xf32>, vector<32x32xf32>, vector<16x32xf32> -> vector<16x32xf32>
    %441 = vector.broadcast %393 : vector<1x32xf32> to vector<16x32xf32>
    %442 = arith.addf %440, %441 : vector<16x32xf32>
    %443 = arith.addf %382, %442 : vector<16x32xf32>
    %cst_154 = arith.constant dense<0.000000e+00> : vector<16xf32>
    %444 = vector.multi_reduction <add>, %443, %cst_154 [1] : vector<16x32xf32> to vector<16xf32>
    %445 = vector.shape_cast %444 : vector<16xf32> to vector<16x1xf32>
    %cst_155 = arith.constant 3.200000e+01 : f32
    %446 = vector.broadcast %cst_155 : f32 to vector<16x1xf32>
    %447 = arith.divf %445, %446 : vector<16x1xf32>
    %448 = vector.broadcast %447 : vector<16x1xf32> to vector<16x32xf32>
    %449 = arith.subf %443, %448 : vector<16x32xf32>
    %450 = arith.mulf %449, %449 : vector<16x32xf32>
    %cst_156 = arith.constant dense<0.000000e+00> : vector<16xf32>
    %451 = vector.multi_reduction <add>, %450, %cst_156 [1] : vector<16x32xf32> to vector<16xf32>
    %452 = vector.shape_cast %451 : vector<16xf32> to vector<16x1xf32>
    %cst_157 = arith.constant 3.200000e+01 : f32
    %453 = vector.broadcast %cst_157 : f32 to vector<16x1xf32>
    %454 = arith.divf %452, %453 : vector<16x1xf32>
    %455 = vector.broadcast %447 : vector<16x1xf32> to vector<16x32xf32>
    %456 = arith.subf %443, %455 : vector<16x32xf32>
    %cst_158 = arith.constant 9.99999974E-6 : f32
    %457 = vector.broadcast %cst_158 : f32 to vector<16x1xf32>
    %458 = arith.addf %454, %457 : vector<16x1xf32>
    %459 = math.rsqrt %458 : vector<16x1xf32>
    %460 = vector.broadcast %459 : vector<16x1xf32> to vector<16x32xf32>
    %461 = arith.mulf %456, %460 : vector<16x32xf32>
    %462 = vector.broadcast %394 : vector<1x32xf32> to vector<16x32xf32>
    %463 = arith.mulf %461, %462 : vector<16x32xf32>
    %464 = vector.broadcast %395 : vector<1x32xf32> to vector<16x32xf32>
    %465 = arith.addf %463, %464 : vector<16x32xf32>
    %c3_159 = arith.constant 3 : index
    %c0_160 = arith.constant 0 : index
    %c0_161 = arith.constant 0 : index
    %466 = vector.load %arg4[%c3_159, %c0_160, %c0_161] : memref<4x32x64xf32, #tpu.memory_space<vmem>>, vector<1x32x64xf32>
    %467 = vector.shape_cast %466 : vector<1x32x64xf32> to vector<32x64xf32>
    %cst_162 = arith.constant dense<0.000000e+00> : vector<16x64xf32>
    %468 = tpu.matmul %465, %467, %cst_162 {dimension_numbers = #tpu.dot_dimension_numbers<[1], [0], [0], [1], [0, 0, 1, 1], [], []>} : vector<16x32xf32>, vector<32x64xf32>, vector<16x64xf32> -> vector<16x64xf32>
    %469 = vector.broadcast %396 : vector<1x64xf32> to vector<16x64xf32>
    %470 = arith.addf %468, %469 : vector<16x64xf32>
    %cst_163 = arith.constant 5.000000e-01 : f32
    %471 = vector.broadcast %cst_163 : f32 to vector<16x64xf32>
    %472 = arith.mulf %471, %470 : vector<16x64xf32>
    %cst_164 = arith.constant 4.471500e-02 : f32
    %473 = vector.broadcast %cst_164 : f32 to vector<16x64xf32>
    %474 = arith.mulf %473, %470 : vector<16x64xf32>
    %475 = arith.mulf %474, %470 : vector<16x64xf32>
    %476 = arith.mulf %475, %470 : vector<16x64xf32>
    %477 = arith.addf %470, %476 : vector<16x64xf32>
    %cst_165 = arith.constant 0.797884583 : f32
    %478 = vector.broadcast %cst_165 : f32 to vector<16x64xf32>
    %479 = arith.mulf %478, %477 : vector<16x64xf32>
    %480 = math.tanh %479 : vector<16x64xf32>
    %cst_166 = arith.constant 1.000000e+00 : f32
    %481 = vector.broadcast %cst_166 : f32 to vector<16x64xf32>
    %482 = arith.addf %481, %480 : vector<16x64xf32>
    %483 = arith.mulf %472, %482 : vector<16x64xf32>
    %c3_167 = arith.constant 3 : index
    %c0_168 = arith.constant 0 : index
    %c0_169 = arith.constant 0 : index
    %484 = vector.load %arg5[%c3_167, %c0_168, %c0_169] : memref<4x64x32xf32, #tpu.memory_space<vmem>>, vector<1x64x32xf32>
    %485 = vector.shape_cast %484 : vector<1x64x32xf32> to vector<64x32xf32>
    %cst_170 = arith.constant dense<0.000000e+00> : vector<16x32xf32>
    %486 = tpu.matmul %483, %485, %cst_170 {dimension_numbers = #tpu.dot_dimension_numbers<[1], [0], [0], [1], [0, 0, 1, 1], [], []>} : vector<16x64xf32>, vector<64x32xf32>, vector<16x32xf32> -> vector<16x32xf32>
    %487 = vector.broadcast %397 : vector<1x32xf32> to vector<16x32xf32>
    %488 = arith.addf %486, %487 : vector<16x32xf32>
    %489 = arith.addf %465, %488 : vector<16x32xf32>
    %cst_171 = arith.constant dense<0.000000e+00> : vector<16xf32>
    %490 = vector.multi_reduction <add>, %489, %cst_171 [1] : vector<16x32xf32> to vector<16xf32>
    %491 = vector.shape_cast %490 : vector<16xf32> to vector<16x1xf32>
    %cst_172 = arith.constant 3.200000e+01 : f32
    %492 = vector.broadcast %cst_172 : f32 to vector<16x1xf32>
    %493 = arith.divf %491, %492 : vector<16x1xf32>
    %494 = vector.broadcast %493 : vector<16x1xf32> to vector<16x32xf32>
    %495 = arith.subf %489, %494 : vector<16x32xf32>
    %496 = arith.mulf %495, %495 : vector<16x32xf32>
    %cst_173 = arith.constant dense<0.000000e+00> : vector<16xf32>
    %497 = vector.multi_reduction <add>, %496, %cst_173 [1] : vector<16x32xf32> to vector<16xf32>
    %498 = vector.shape_cast %497 : vector<16xf32> to vector<16x1xf32>
    %cst_174 = arith.constant 3.200000e+01 : f32
    %499 = vector.broadcast %cst_174 : f32 to vector<16x1xf32>
    %500 = arith.divf %498, %499 : vector<16x1xf32>
    %501 = vector.broadcast %493 : vector<16x1xf32> to vector<16x32xf32>
    %502 = arith.subf %489, %501 : vector<16x32xf32>
    %cst_175 = arith.constant 9.99999974E-6 : f32
    %503 = vector.broadcast %cst_175 : f32 to vector<16x1xf32>
    %504 = arith.addf %500, %503 : vector<16x1xf32>
    %505 = math.rsqrt %504 : vector<16x1xf32>
    %506 = vector.broadcast %505 : vector<16x1xf32> to vector<16x32xf32>
    %507 = arith.mulf %502, %506 : vector<16x32xf32>
    %508 = vector.broadcast %398 : vector<1x32xf32> to vector<16x32xf32>
    %509 = arith.mulf %507, %508 : vector<16x32xf32>
    %510 = vector.broadcast %399 : vector<1x32xf32> to vector<16x32xf32>
    %511 = arith.addf %509, %510 : vector<16x32xf32>
    %512 = vector.extract_strided_slice %511 {offsets = [0, 0], sizes = [1, 32], strides = [1, 1]} : vector<16x32xf32> to vector<1x32xf32>
    %513 = vector.extract_strided_slice %511 {offsets = [8, 0], sizes = [1, 32], strides = [1, 1]} : vector<16x32xf32> to vector<1x32xf32>
    %514 = tpu.concatenate %512, %513 in 0 : vector<1x32xf32>, vector<1x32xf32> -> vector<2x32xf32>
    %c3_176 = arith.constant 3 : index
    %c0_177 = arith.constant 0 : index
    %c0_178 = arith.constant 0 : index
    %515 = vector.load %arg7[%c3_176, %c0_177, %c0_178] : memref<4x32x128xf32, #tpu.memory_space<vmem>>, vector<1x32x128xf32>
    %516 = vector.shape_cast %515 : vector<1x32x128xf32> to vector<32x128xf32>
    %cst_179 = arith.constant dense<0.000000e+00> : vector<2x128xf32>
    %517 = tpu.matmul %514, %516, %cst_179 {dimension_numbers = #tpu.dot_dimension_numbers<[1], [0], [0], [1], [0, 0, 1, 1], [], []>} : vector<2x32xf32>, vector<32x128xf32>, vector<2x128xf32> -> vector<2x128xf32>
    %518 = arith.addf %389, %517 : vector<2x128xf32>
    %c0_180 = arith.constant 0 : index
    %c0_181 = arith.constant 0 : index
    %519 = vector.load %arg8[%c0_180, %c0_181] : memref<1x128xf32, #tpu.memory_space<vmem>>, vector<1x128xf32>
    %520 = vector.broadcast %519 : vector<1x128xf32> to vector<2x128xf32>
    %521 = arith.addf %518, %520 : vector<2x128xf32>
    %c0_182 = arith.constant 0 : index
    %c0_183 = arith.constant 0 : index
    %522 = vector.load %arg9[%c0_182, %c0_183] : memref<2x128xf32, #tpu.memory_space<vmem>>, vector<2x128xf32>
    tpu.vector_store %arg9[%c0_182, %c0_183], %521 {strides = array<i32>} : memref<2x128xf32, #tpu.memory_space<vmem>>, vector<2x128xf32>,
    return
  }
}

</mosaic_0001>

<bundles_post_ra>
// kernel: _lambda_.1
= control target key start
LH: loop header
LB: loop body
LE: loop exit
PB: predicated region body
PF: predicated region fallthrough
CT: control target
= control target key end

     0   :  { %14 = vsyncpa [#allocation3], 0  ;;  %s5851_s0 = inlined_call_operand.vmem [shape: f32[16,32], index: 0, kind: input, shape index: {}]   ;;  %s5852_s1 = inlined_call_operand.vmem [shape: f32[16,16], index: 1, kind: input, shape index: {}]   ;;  %s5853_s2 = inlined_call_operand.hbm [shape: f32[4,32,96], index: 2, kind: input, shape index: {}]   ;;  %s5854_s3 = inlined_call_operand.hbm [shape: f32[4,32,32], index: 3, kind: input, shape index: {}]   ;;  %s5855_s4 = inlined_call_operand.hbm [shape: f32[4,32,64], index: 4, kind: input, shape index: {}]   ;;  %s5856_s5 = inlined_call_operand.vmem [shape: f32[4,64,32], index: 5, kind: input, shape index: {}]   ;;  %s5857_s6 = inlined_call_operand.vmem [shape: f32[4,8,128], index: 6, kind: input, shape index: {}]   ;;  %s5858_s7 = inlined_call_operand.hbm [shape: f32[4,32,128], index: 7, kind: input, shape index: {}]   ;;  %s5859_s8 = inlined_call_operand.vmem [shape: f32[1,128], index: 8, kind: input, shape index: {}]   ;;  %s5860_s9 = inlined_call_operand.vmem [shape: f32[2,128], index: 9, kind: output, shape index: {}]  }
   0x1   :  { %15 = vsyncpa [#allocation5], 0 }
   0x2   :  { %16 = vsyncpa [#allocation8], 0  ;;  %s5160_s30 = smov [#allocation4]   ;;  %s5161_s11 = smov [#allocation2]  }
   0x3   :  { %s38_s10 = sshll.u32 %s5160_s30, 4  ;;  %s26_s12 = sshll.u32 %s5161_s11, 4  ;;  %s39_s10 = int_to_ptr.vmem [resolvable:$true] %s38_s10  ;;  %s5225_s12 = int_to_ptr.vmem [resolvable:$true] %s26_s12 }
   0x4   :  { %s5066_s15 = scalar_lea.hbm %s5854_s3, 2048 }
   0x5   :  { %p5067_p0 = scmp.ne.s32.totalorder %s5854_s3, %s5066_s15  ;;  %p5070_p1 = scmp.lt.u32.totalorder %s5066_s15, %s5854_s3 }
   0x7   :  { %p5072_p2 = pnand %p5070_p1, %p5067_p0 }
   0x9   :  { %5075 = shalt.err (!%p5072_p2)
}
   0xa   :  { %s5076_s20 = scalar_lea.vmem %s39_s10, 2048  ;;  %p5081_p4 = scmp.lt.s32.totalorder %s39_s10, %s39_s10 }
   0xb   :  { %p5077_p3 = scmp.ne.s32.totalorder %s39_s10, %s5076_s20  ;;  %p5082_p5 = scmp.lt.s32.totalorder %s5076_s20, %s5076_s20 }
   0xd   :  { %p5083_p6 = por %p5082_p5, %p5081_p4 }
   0xf   :  { %p5084_p7 = pnand %p5083_p6, %p5077_p3 }
  0x11   :  { %5087 = shalt.err (!%p5084_p7)
}
  0x12   :  { %s5162_s21 = smov 128   ;;  %s5163_s22 = smov 8  }
  0x13   :  { %44 = dma.hbm_to_vmem [thread:$0]  %s5854_s3, 2048, %s39_s10, [#allocation5], %s5162_s21, %s5162_s21, %s5163_s22  }
  0x14   :  { %s5088_s27 = scalar_lea.hbm %s5853_s2, 2048 }
  0x15   :  { %p5089_p8 = scmp.ne.s32.totalorder %s5853_s2, %s5088_s27  ;;  %p5092_p9 = scmp.lt.u32.totalorder %s5088_s27, %s5853_s2 }
  0x17   :  { %p5094_p10 = pnand %p5092_p9, %p5089_p8 }
  0x19   :  { %5097 = shalt.err (!%p5094_p10)
}
  0x1a   :  { %s5098_s13 = scalar_lea.vmem %s5225_s12, 2048  ;;  %p5103_p12 = scmp.lt.s32.totalorder %s5225_s12, %s5225_s12 }
  0x1b   :  { %p5099_p11 = scmp.ne.s32.totalorder %s5225_s12, %s5098_s13  ;;  %p5104_p13 = scmp.lt.s32.totalorder %s5098_s13, %s5098_s13 }
  0x1d   :  { %p5105_p0 = por %p5104_p13, %p5103_p12 }
  0x1f   :  { %p5106_p1 = pnand %p5105_p0, %p5099_p11 }
  0x21   :  { %5109 = shalt.err (!%p5106_p1)
}
  0x22   :  { %32 = dma.hbm_to_vmem [thread:$0]  %s5853_s2, 2048, %s5225_s12, [#allocation3], %s5162_s21, %s5162_s21, %s5163_s22  }
  0x23   :  { %s5164_s14 = smov [#allocation6]   ;;  %s5165_s16 = smov [#allocation7]  }
  0x24   :  { %s50_s15 = sshll.u32 %s5164_s14, 4  ;;  %s66_s17 = sshll.u32 %s5165_s16, 4  ;;  %s51_s15 = int_to_ptr.vmem [resolvable:$true] %s50_s15  ;;  %s5262_s17 = int_to_ptr.vmem [resolvable:$true] %s66_s17 }
  0x25   :  { %s5110_s20 = scalar_lea.hbm %s5855_s4, 2048 }
  0x26   :  { %p5111_p2 = scmp.ne.s32.totalorder %s5855_s4, %s5110_s20  ;;  %p5114_p3 = scmp.lt.u32.totalorder %s5110_s20, %s5855_s4 }
  0x28   :  { %p5116_p4 = pnand %p5114_p3, %p5111_p2 }
  0x2a   :  { %5119 = shalt.err (!%p5116_p4)
}
  0x2b   :  { %s5120_s2 = scalar_lea.vmem %s51_s15, 2048  ;;  %p5125_p6 = scmp.lt.s32.totalorder %s51_s15, %s51_s15 }
  0x2c   :  { %p5121_p5 = scmp.ne.s32.totalorder %s51_s15, %s5120_s2  ;;  %p5126_p7 = scmp.lt.s32.totalorder %s5120_s2, %s5120_s2 }
  0x2e   :  { %p5127_p8 = por %p5126_p7, %p5125_p6 }
  0x30   :  { %p5128_p9 = pnand %p5127_p8, %p5121_p5 }
  0x32   :  { %5131 = shalt.err (!%p5128_p9)
}
  0x33   :  { %56 = dma.hbm_to_vmem [thread:$0]  %s5855_s4, 2048, %s51_s15, [#allocation5], %s5162_s21, %s5162_s21, %s5163_s22  }
  0x34   :  { %s5132_s30 = scalar_lea.hbm %s5858_s7, 2048 }
  0x35   :  { %p5133_p10 = scmp.ne.s32.totalorder %s5858_s7, %s5132_s30  ;;  %p5136_p11 = scmp.lt.u32.totalorder %s5132_s30, %s5858_s7 }
  0x37   :  { %p5138_p12 = pnand %p5136_p11, %p5133_p10 }
  0x39   :  { %5141 = shalt.err (!%p5138_p12)
}
  0x3a   :  { %s5142_s14 = scalar_lea.vmem %s5262_s17, 2048  ;;  %p5147_p0 = scmp.lt.s32.totalorder %s5262_s17, %s5262_s17 }
  0x3b   :  { %p5143_p13 = scmp.ne.s32.totalorder %s5262_s17, %s5142_s14  ;;  %p5148_p1 = scmp.lt.s32.totalorder %s5142_s14, %s5142_s14 }
  0x3d   :  { %p5149_p2 = por %p5148_p1, %p5147_p0 }
  0x3f   :  { %p5150_p3 = pnand %p5149_p2, %p5143_p13 }
  0x41   :  { %5153 = shalt.err (!%p5150_p3)
}
  0x42   :  { %72 = dma.hbm_to_vmem [thread:$0]  %s5858_s7, 2048, %s5262_s17, [#allocation8], %s5162_s21, %s5162_s21, %s5163_s22  }
  0x43   :  { %5154 = dma.done.wait [#allocation3], 2048  }
  0x44   :  { %5155 = vsyncadd [#allocation3], 4294965248 }
  0x45   :  { %5156 = dma.done.wait [#allocation5], 4096  }
  0x46   :  { %5157 = vsyncadd [#allocation5], 4294963200 }
  0x47   :  { %5158 = dma.done.wait [#allocation8], 2048  }
  0x48   :  { %5159 = vsyncadd [#allocation8], 4294965248  ;;  %vm100_vm0 = vcmask 261120   ;;  %v92_v0 = vld [vmem:[#allocation2] sm:$0xff]  ;;  %v93_v1 = vld [vmem:[#allocation2 + $0x8] sm:$0xff]  ;;  %v96_v8 = vlaneseq  ;;  %vm188_vm1 = vcmask 130048  }
  0x49   :  { %v94_v2 = vld [vmem:[#allocation2 + $0x10] sm:$0xff]  ;;  %v4593_v3 = vpack.c.bf16 %v93_v1, %v92_v0  ;;  %v95_v4 = vld [vmem:[#allocation2 + $0x18] sm:$0xff]  ;;  %v5302_v5 = vld [vmem:[%s5851_s0] sm:$0xff]  ;;  %s5167_s25 = smov 64   ;;  %s5168_s26 = smov 80   ;;  %vm840_vm3 = vcmask 523264  }
  0x4a   :  { %v4597_v6 = vpack.c.bf16 %v95_v4, %v94_v2  ;;  %4237 = vmatprep.mubr.msk.f32.mxu0 %vm100_vm0, %v5302_v5  ;;  %v5309_v7 = vld [vmem:[%s5851_s0 + $0x8] sm:$0xff]  ;;  %v5313_v9 = vshrl.u32 %v96_v8, 7  ;;  %v5321_v11 = vld [vmem:[%s5857_s6] sm:$0xff]  ;;  %s5166_s0 = smov 96   ;;  %vm5332_vm2 = vmpackc.low %vm188_vm1, %vm188_vm1  ;;  %s5169_s2 = smov 112   ;;  %vm5173_vm4 = vmmov 0  }
  0x4b   :  { %4594 = vmatprep.subr.bf16.mxu0 %v4593_v3  ;;  %v5344_v23 = vld [vmem:[%s5852_s1 + $0x8] sm:$0xff]  ;;  %v5349_v24 = vld [vmem:[%s5852_s1] sm:$0xff]  ;;  %s5170_s12 = smov 48   ;;  %s5171_s27 = smov 16   ;;  %vm965_vm5 = vcmask 1040384  }
  0x4c   :  { %4596 = vmatpush3.bf16.msra.mxu0 %v4593_v3  ;;  %v5316_v10 = vsub.s32 0, %v5313_v9 }
  0x4d   :  { %4598 = vmatprep.subr.bf16.mxu0 %v4597_v6 }
  0x4e   :  { %v99_v12 = vrot.slane %v5321_v11, %v5316_v10 }
  0x50   :  { %4600 = vmatpush3.bf16.msra.mxu0 %v4597_v6 }
  0x53   :  { %4238 = vmatmul.mubr.msk.f32.vlgmr.msra.gmra.mrb[0].mxu0 %vm100_vm0, %v5309_v7 }
 0x126   :  { %v4239_v13 = vpop.f32.mrb[0].mxu0 }
 0x127   :  { %v179_v14 = vadd.f32 %v4239_v13, %v99_v12  ;;  %v173_v15 = vpop.f32.mrb[1].mxu0 }
 0x128   :  { %v174_v16 = vadd.f32 %v173_v15, %v99_v12 }
 0x12a   :  { %4244 = vmatprep.mubr.msk.f32.mxu1 %vm188_vm1, %v174_v16  ;;  %v5326_v17 = vpack.i.bf16 %v179_v14, %v174_v16 }
 0x12c   :  { %4873 = vrot.lane.b32.xlu0 %v5326_v17, %s5166_s0 }
 0x19e   :  { %v4874_v18 = vpop.permute.xlu0 %4873 }
 0x19f   :  { %v4876_v19 = vunpack.i.h.bf16 %v4874_v18  ;;  %v4875_v20 = vunpack.i.l.bf16 %v4874_v18 }
 0x1a1   :  { %v4601_v22 = vpack.c.bf16 %v4876_v19, %v4875_v20 }
 0x1a3   :  { %4603 = vmatprep.subr.msk.bf16.mxu1 %vm5332_vm2, %v4601_v22 }
 0x1a4   :  { %4606 = vmatpush3.bf16.xpose.msk.msra.mxu1 %vm5332_vm2, %v4601_v22 }
 0x1ab   :  { %4245 = vmatmul.mubr.msk.f32.vlgmr.msra.gmra.mrb[0].mxu1 %vm188_vm1, %v179_v14 }
 0x27e   :  { %v4246_v25 = vpop.f32.mrb[0].mxu1 }
 0x27f   :  { %v269_v26 = vadd.f32 %v4246_v25, %v5344_v23  ;;  %v263_v27 = vpop.f32.mrb[1].mxu1 }
 0x280   :  { %v264_v28 = vadd.f32 %v263_v27, %v5349_v24 }
 0x281   :  { %v275_v29 = vsel %vm188_vm1, %v269_v26, -inf }
 0x282   :  { %276 = vmax.xlane.f32.xlu1 %v275_v29  ;;  %v272_v30 = vsel %vm188_vm1, %v264_v28, -inf }
 0x283   :  { %273 = vmax.xlane.f32.xlu0 %v272_v30  ;;  %v591_v30 = vld [vmem:[#allocation4] sm:$0xff] }
 0x293   :  { %4878 = vrot.lane.b32.xlu1 %v5326_v17, %s5167_s25 }
 0x297   :  { %4883 = vrot.lane.b32.xlu1 %v5326_v17, %s5168_s26 }
 0x299   :  { %383 = vrot.lane.b32.xlu0 %v179_v14, %s5169_s2 }
 0x30f   :  { %v277_v31 = vpop.xlane.xlu1 %276 }
 0x310   :  { %v279_v32 = vsub.f32 %v269_v26, %v277_v31  ;;  %v274_v33 = vpop.xlane.xlu0 %273  ;;  %v593_v31 = vld [vmem:[#allocation4 + $0x10] sm:$0xff] }
 0x311   :  { %v278_v34 = vsub.f32 %v264_v28, %v274_v33  ;;  %v594_v33 = vld [vmem:[#allocation4 + $0x18] sm:$0xff] }
 0x312   :  { %v282_v35 = vmul.f32 1.442695, %v279_v32 }
 0x313   :  { %v280_v36 = vmul.f32 1.442695, %v278_v34  ;;  %v4879_v37 = vpop.permute.xlu1 %4878  ;;  %v4625_v34 = vpack.c.bf16 %v594_v33, %v593_v31  ;;  %v831_v31 = vld [vmem:[%s5856_s5 + $0x18] sm:$0xff] }
 0x314   :  { %4952 = vpow2.f32 %v282_v35  ;;  %v4881_v38 = vunpack.i.h.bf16 %v4879_v37  ;;  %v4880_v39 = vunpack.i.l.bf16 %v4879_v37  ;;  %v384_v56 = vpop.permute.xlu0 %383 }
 0x315   :  { %4954 = vpow2.f32 %v280_v36 }
 0x316   :  { %v4607_v40 = vpack.c.bf16 %v4881_v38, %v4880_v39 }
 0x317   :  { %v4884_v41 = vpop.permute.xlu1 %4883 }
 0x318   :  { %v4886_v42 = vunpack.i.h.bf16 %v4884_v41  ;;  %v4885_v43 = vunpack.i.l.bf16 %v4884_v41  ;;  %4608 = vmatprep.subr.bf16.mxu1 %v4607_v40  ;;  %v5388_v41 = vsub.s32 1, %v5313_v9 }
 0x319   :  { %4610 = vmatpush3.bf16.msra.mxu1 %v4607_v40 }
 0x31a   :  { %v4611_v44 = vpack.c.bf16 %v4886_v42, %v4885_v43  ;;  %v598_v42 = vrot.slane %v5321_v11, %v5388_v41 }
 0x31c   :  { %4613 = vmatprep.subr.msk.bf16.mxu1 %vm5332_vm2, %v4611_v44 }
 0x31e   :  { %v4953_v45 = vpop.eup %4952 }
 0x31f   :  { %v287_v46 = vsel %vm188_vm1, %v4953_v45, 0.0  ;;  %v4955_v47 = vpop.eup %4954 }
 0x320   :  { %288 = vadd.xlane.f32.xlu1 %v287_v46  ;;  %v284_v48 = vsel %vm188_vm1, %v4955_v47, 0.0 }
 0x324   :  { %285 = vadd.xlane.f32.xlu1 %v284_v48 }
 0x335   :  { %381 = vrot.lane.b32.xlu1 %v174_v16, %s5169_s2 }
 0x3ad   :  { %v289_v49 = vpop.xlane.xlu1 %288 }
 0x3ae   :  { %4956 = vrcp.f32 %v289_v49 }
 0x3b1   :  { %v286_v50 = vpop.xlane.xlu1 %285 }
 0x3b2   :  { %4958 = vrcp.f32 %v286_v50 }
 0x3b5   :  { %v382_v55 = vpop.permute.xlu1 %381 }
 0x3b8   :  { %v4957_v51 = vpop.eup %4956 }
 0x3b9   :  { %v293_v54 = vmul.f32 %v4957_v51, %v4953_v45 }
 0x3bc   :  { %v4959_v52 = vpop.eup %4958 }
 0x3bd   :  { %v291_v53 = vmul.f32 %v4959_v52, %v4955_v47 }
 0x3bf   :  { %4251 = vmatprep.mubr.msk.f32.mxu1 %vm188_vm1, %v291_v53 }
 0x3c0   :  { %4252 = vmatmul.mubr.msk.f32.vlgmr.msra.gmra.mrb[2].mxu1 %vm188_vm1, %v293_v54 }
 0x3c1   :  { %4616 = vmatpush3.bf16.xpose.msk.msra.mxu1 %vm5332_vm2, %v4611_v44  ;;  %4258 = vmatprep.mubr.msk.f32.mxu1 %vm188_vm1, %v382_v55 }
 0x3c8   :  { %4259 = vmatmul.mubr.msk.f32.vlgmr.msra.gmra.mrb[4].mxu1 %vm188_vm1, %v384_v56 }
 0x493   :  { %v4253_v57 = vpop.f32.mrb[2].mxu1 }
 0x494   :  { %v372_v58 = vpop.f32.mrb[3].mxu1 }
 0x49b   :  { %v4260_v59 = vpop.f32.mrb[4].mxu1 }
 0x49c   :  { %v469_v60 = vadd.f32 %v4260_v59, %v5344_v23  ;;  %v463_v61 = vpop.f32.mrb[5].mxu1 }
 0x49d   :  { %v464_v62 = vadd.f32 %v463_v61, %v5349_v24 }
 0x49e   :  { %v475_v63 = vsel %vm188_vm1, %v469_v60, -inf }
 0x49f   :  { %476 = vmax.xlane.f32.xlu0 %v475_v63  ;;  %v472_v0 = vsel %vm188_vm1, %v464_v62, -inf  ;;  %v724_v63 = vld [vmem:[#allocation6 + $0x18] sm:$0xff] }
 0x4a0   :  { %473 = vmax.xlane.f32.xlu1 %v472_v0 }
 0x52c   :  { %v477_v1 = vpop.xlane.xlu0 %476 }
 0x52d   :  { %v479_v2 = vsub.f32 %v469_v60, %v477_v1  ;;  %v474_v3 = vpop.xlane.xlu1 %473  ;;  %v722_v60 = vld [vmem:[#allocation6 + $0x8] sm:$0xff] }
 0x52e   :  { %v478_v4 = vsub.f32 %v464_v62, %v474_v3  ;;  %v723_v62 = vld [vmem:[#allocation6 + $0x10] sm:$0xff] }
 0x52f   :  { %v482_v6 = vmul.f32 1.442695, %v479_v2  ;;  %v4633_v0 = vpack.c.bf16 %v724_v63, %v723_v62  ;;  %v5442_v62 = vsub.s32 5, %v5313_v9 }
 0x530   :  { %v480_v8 = vmul.f32 1.442695, %v478_v4 }
 0x531   :  { %4960 = vpow2.f32 %v482_v6  ;;  %v839_v63 = vrot.slane %v5321_v11, %v5442_v62 }
 0x532   :  { %4962 = vpow2.f32 %v480_v8 }
 0x53b   :  { %v4961_v12 = vpop.eup %4960 }
 0x53c   :  { %v487_v13 = vsel %vm188_vm1, %v4961_v12, 0.0  ;;  %v4963_v14 = vpop.eup %4962 }
 0x53d   :  { %488 = vadd.xlane.f32.xlu1 %v487_v13  ;;  %v484_v15 = vsel %vm188_vm1, %v4963_v14, 0.0  ;;  %v5402_v13 = vsub.s32 3, %v5313_v9 }
 0x541   :  { %485 = vadd.xlane.f32.xlu1 %v484_v15 }
 0x552   :  { %4888 = vrot.lane.b32.xlu1 %v5326_v17, %s5170_s12  ;;  %v592_v17 = vld [vmem:[#allocation4 + $0x8] sm:$0xff] }
 0x553   :  { %v4621_v32 = vpack.c.bf16 %v592_v17, %v591_v30  ;;  %v830_v17 = vld [vmem:[%s5856_s5 + $0x10] sm:$0xff] }
 0x554   :  { %v4641_v33 = vpack.c.bf16 %v831_v31, %v830_v17  ;;  %v976_v31 = vld [vmem:[#allocation2 + $0x30] sm:$0xff] }
 0x5ca   :  { %v489_v16 = vpop.xlane.xlu1 %488 }
 0x5cb   :  { %4964 = vrcp.f32 %v489_v16 }
 0x5ce   :  { %v486_v18 = vpop.xlane.xlu1 %485 }
 0x5cf   :  { %4966 = vrcp.f32 %v486_v18 }
 0x5d2   :  { %v4889_v19 = vpop.permute.xlu1 %4888 }
 0x5d3   :  { %v4891_v20 = vunpack.i.h.bf16 %v4889_v19  ;;  %v4890_v22 = vunpack.i.l.bf16 %v4889_v19 }
 0x5d5   :  { %v4617_v25 = vpack.c.bf16 %v4891_v20, %v4890_v22  ;;  %v4965_v26 = vpop.eup %4964  ;;  %v718_v20 = vrot.slane %v5321_v11, %v5402_v13 }
 0x5d6   :  { %v493_v29 = vmul.f32 %v4965_v26, %v4961_v12  ;;  %v5399_v12 = vsub.s32 2, %v5313_v9 }
 0x5d7   :  { %4618 = vmatprep.subr.bf16.mxu0 %v4617_v25 }
 0x5d8   :  { %4620 = vmatpush3.bf16.msra.mxu0 %v4617_v25 }
 0x5d9   :  { %v4967_v27 = vpop.eup %4966  ;;  %4622 = vmatprep.subr.bf16.mxu0 %v4621_v32 }
 0x5da   :  { %v491_v28 = vmul.f32 %v4967_v27, %v4963_v14  ;;  %v712_v14 = vrot.slane %v5321_v11, %v5399_v12 }
 0x5dc   :  { %4265 = vmatprep.mubr.msk.f32.mxu0 %vm188_vm1, %v491_v28  ;;  %v828_v28 = vld [vmem:[%s5856_s5] sm:$0xff] }
 0x5dd   :  { %4266 = vmatmul.mubr.msk.f32.vlgmr.msra.gmra.mrb[2].mxu0 %vm188_vm1, %v493_v29  ;;  %v829_v29 = vld [vmem:[%s5856_s5 + $0x8] sm:$0xff] }
 0x5de   :  { %4624 = vmatpush3.bf16.msra.mxu0 %v4621_v32  ;;  %v4637_v30 = vpack.c.bf16 %v829_v29, %v828_v28  ;;  %v832_v32 = vld [vmem:[%s5856_s5 + $0x20] sm:$0xff] }
 0x5df   :  { %4626 = vmatprep.subr.bf16.mxu0 %v4625_v34 }
 0x5e2   :  { %4628 = vmatpush3.bf16.msra.mxu0 %v4625_v34  ;;  %v833_v34 = vld [vmem:[%s5856_s5 + $0x28] sm:$0xff] }
 0x5e3   :  { %4638 = vmatprep.subr.bf16.mxu0 %v4637_v30 }
 0x6b0   :  { %v4267_v35 = vpop.f32.mrb[2].mxu0 }
 0x6b1   :  { %585 = vrot.lane.b32.xlu1 %v4267_v35, %s5171_s27  ;;  %v572_v36 = vpop.f32.mrb[3].mxu0  ;;  %v4645_v35 = vpack.c.bf16 %v833_v34, %v832_v32  ;;  %v977_v32 = vld [vmem:[#allocation2 + $0x38] sm:$0xff] }
 0x6b2   :  { %583 = vrot.lane.b32.xlu0 %v572_v36, %s5171_s27  ;;  %v834_v36 = vld [vmem:[%s5856_s5 + $0x30] sm:$0xff] }
 0x723   :  { %v586_v37 = vpop.permute.xlu1 %585 }
 0x724   :  { %v584_v38 = vpop.permute.xlu0 %583  ;;  %v590_v40 = vsel %vm188_vm1, %v4253_v57, %v586_v37  ;;  %v835_v37 = vld [vmem:[%s5856_s5 + $0x38] sm:$0xff] }
 0x725   :  { %v589_v39 = vsel %vm188_vm1, %v372_v58, %v584_v38  ;;  %v4649_v38 = vpack.c.bf16 %v835_v37, %v834_v36 }
 0x726   :  { %4276 = vmatprep.mubr.msk.f32.mxu0 %vm100_vm0, %v589_v39  ;;  %v5435_v39 = vsub.s32 4, %v5313_v9 }
 0x727   :  { %4277 = vmatmul.mubr.msk.f32.vlgmr.msra.gmra.mrb[4].mxu0 %vm100_vm0, %v590_v40 }
 0x728   :  { %4640 = vmatpush3.bf16.msra.mxu0 %v4637_v30  ;;  %v728_v40 = vrot.slane %v5321_v11, %v5435_v39  ;;  %v975_v30 = vld [vmem:[#allocation2 + $0x28] sm:$0xff] }
 0x729   :  { %4642 = vmatprep.subr.bf16.mxu0 %v4641_v33 }
 0x72c   :  { %4644 = vmatpush3.bf16.msra.mxu0 %v4641_v33  ;;  %v4657_v33 = vpack.c.bf16 %v977_v32, %v976_v31 }
 0x72d   :  { %4646 = vmatprep.subr.bf16.mxu0 %v4645_v35 }
 0x730   :  { %4648 = vmatpush3.bf16.msra.mxu0 %v4645_v35 }
 0x731   :  { %4650 = vmatprep.subr.bf16.mxu0 %v4649_v38 }
 0x734   :  { %4652 = vmatpush3.bf16.msra.mxu0 %v4649_v38 }
 0x7fa   :  { %v4278_v43 = vpop.f32.mrb[4].mxu0 }
 0x7fb   :  { %v677_v44 = vadd.f32 %v4278_v43, %v598_v42  ;;  %v671_v45 = vpop.f32.mrb[5].mxu0 }
 0x7fc   :  { %v672_v46 = vadd.f32 %v671_v45, %v598_v42 }
 0x7fd   :  { %v681_v47 = vadd.f32 %v677_v44, %v5309_v7 }
 0x7fe   :  { %v680_v48 = vadd.f32 %v672_v46, %v5302_v5  ;;  %v721_v5 = vld [vmem:[#allocation6] sm:$0xff] }
 0x7ff   :  { %v685_v49 = vsel %vm100_vm0, %v681_v47, 0.0  ;;  %v4629_v61 = vpack.c.bf16 %v722_v60, %v721_v5 }
 0x800   :  { %686 = vadd.xlane.f32.xlu0 %v685_v49  ;;  %v682_v50 = vsel %vm100_vm0, %v680_v48, 0.0 }
 0x801   :  { %683 = vadd.xlane.f32.xlu1 %v682_v50  ;;  %4630 = vmatprep.subr.bf16.mxu1 %v4629_v61 }
 0x802   :  { %4632 = vmatpush3.bf16.msra.mxu1 %v4629_v61 }
 0x803   :  { %4634 = vmatprep.subr.bf16.mxu1 %v4633_v0 }
 0x806   :  { %4636 = vmatpush3.bf16.msra.mxu1 %v4633_v0 }
 0x88d   :  { %v687_v51 = vpop.xlane.xlu0 %686 }
 0x88e   :  { %v690_v52 = vmul.f32 0.03125, %v687_v51  ;;  %v684_v53 = vpop.xlane.xlu1 %683 }
 0x88f   :  { %v689_v54 = vmul.f32 0.03125, %v684_v53 }
 0x890   :  { %v692_v55 = vsub.f32 %v681_v47, %v690_v52 }
 0x891   :  { %v691_v56 = vsub.f32 %v680_v48, %v689_v54 }
 0x892   :  { %v694_v57 = vmul.f32 %v692_v55, %v692_v55 }
 0x893   :  { %v693_v58 = vmul.f32 %v691_v56, %v691_v56 }
 0x894   :  { %v698_v59 = vsel %vm100_vm0, %v694_v57, 0.0 }
 0x895   :  { %699 = vadd.xlane.f32.xlu0 %v698_v59  ;;  %v695_v7 = vsel %vm100_vm0, %v693_v58, 0.0 }
 0x896   :  { %696 = vadd.xlane.f32.xlu1 %v695_v7 }
 0x922   :  { %v700_v1 = vpop.xlane.xlu0 %699 }
 0x923   :  { %v702_v2 = vmul.f32 0.03125, %v700_v1  ;;  %v697_v3 = vpop.xlane.xlu1 %696 }
 0x924   :  { %v701_v4 = vmul.f32 0.03125, %v697_v3 }
 0x925   :  { %v704_v6 = vadd.f32 1e-05, %v702_v2 }
 0x926   :  { %v703_v8 = vadd.f32 1e-05, %v701_v4 }
 0x927   :  { %4968 = vrsqrt.f32 %v704_v6 }
 0x928   :  { %4970 = vrsqrt.f32 %v703_v8 }
 0x931   :  { %v4969_v15 = vpop.eup %4968 }
 0x932   :  { %v4971_v16 = vpop.eup %4970  ;;  %v708_v18 = vmul.f32 %v4969_v15, %v692_v55 }
 0x933   :  { %v707_v19 = vmul.f32 %v4971_v16, %v691_v56 }
 0x934   :  { %v714_v22 = vmul.f32 %v712_v14, %v708_v18 }
 0x935   :  { %v713_v25 = vmul.f32 %v712_v14, %v707_v19 }
 0x936   :  { %v720_v27 = vadd.f32 %v718_v20, %v714_v22 }
 0x937   :  { %v719_v26 = vadd.f32 %v718_v20, %v713_v25 }
 0x939   :  { %4287 = vmatprep.mubr.msk.f32.mxu1 %vm100_vm0, %v719_v26 }
 0x93a   :  { %4288 = vmatmul.mubr.msk.f32.vlgmr.msra.gmra.mrb[6].mxu1 %vm100_vm0, %v720_v27 }
 0xa0d   :  { %v4289_v42 = vpop.f32.mrb[6].mxu1 }
 0xa0e   :  { %v807_v43 = vadd.f32 %v4289_v42, %v728_v40  ;;  %v801_v44 = vpop.f32.mrb[7].mxu1  ;;  %v5451_v42 = vsub.s32 6, %v5313_v9 }
 0xa0f   :  { %v802_v45 = vadd.f32 %v801_v44, %v728_v40 }
 0xa10   :  { %v813_v46 = vmul.f32 0.044715, %v807_v43  ;;  %v811_v5 = vmul.f32 0.5, %v807_v43  ;;  %v953_v44 = vrot.slane %v5321_v11, %v5451_v42 }
 0xa11   :  { %v812_v47 = vmul.f32 0.044715, %v802_v45  ;;  %v810_v59 = vmul.f32 0.5, %v802_v45 }
 0xa12   :  { %v815_v48 = vmul.f32 %v813_v46, %v807_v43 }
 0xa13   :  { %v814_v49 = vmul.f32 %v812_v47, %v802_v45 }
 0xa14   :  { %v817_v50 = vmul.f32 %v815_v48, %v807_v43 }
 0xa15   :  { %v816_v51 = vmul.f32 %v814_v49, %v802_v45 }
 0xa16   :  { %v819_v52 = vadd.f32 %v817_v50, %v807_v43  ;;  %v5454_v43 = vsub.s32 7, %v5313_v9  ;;  %v5471_v9 = vld [vmem:[%s5857_s6 + $0x8] sm:$0xff] }
 0xa17   :  { %v818_v53 = vadd.f32 %v816_v51, %v802_v45 }
 0xa18   :  { %v821_v54 = vmul.f32 0.7978846, %v819_v52  ;;  %v959_v49 = vrot.slane %v5321_v11, %v5454_v43  ;;  %v981_v11 = vrot.slane %v5471_v9, %v5316_v10 }
 0xa19   :  { %v820_v55 = vmul.f32 0.7978846, %v818_v53 }
 0xa1a   :  { %4972 = vtanh.f32 %v821_v54 }
 0xa1b   :  { %4974 = vtanh.f32 %v820_v55 }
 0xa24   :  { %v4973_v56 = vpop.eup %4972 }
 0xa25   :  { %v4975_v57 = vpop.eup %4974  ;;  %v825_v58 = vadd.f32 1.0, %v4973_v56 }
 0xa26   :  { %v824_v7 = vadd.f32 1.0, %v4975_v57 }
 0xa27   :  { %v827_v61 = vmul.f32 %v825_v58, %v811_v5 }
 0xa28   :  { %v826_v60 = vmul.f32 %v824_v7, %v810_v59 }
 0xa2a   :  { %4306 = vmatprep.mubr.msk.f32.mxu0 %vm840_vm3, %v826_v60 }
 0xa2b   :  { %4307 = vmatmul.mubr.msk.f32.vlgmr.msra.gmra.mrb[6].mxu0 %vm840_vm3, %v827_v61 }
 0xafe   :  { %v4308_v0 = vpop.f32.mrb[6].mxu0 }
 0xaff   :  { %v919_v1 = vadd.f32 %v4308_v0, %v839_v63  ;;  %v913_v2 = vpop.f32.mrb[7].mxu0 }
 0xb00   :  { %v914_v3 = vadd.f32 %v913_v2, %v839_v63 }
 0xb01   :  { %v923_v4 = vadd.f32 %v919_v1, %v720_v27 }
 0xb02   :  { %v922_v6 = vadd.f32 %v914_v3, %v719_v26  ;;  %v974_v26 = vld [vmem:[#allocation2 + $0x20] sm:$0xff] }
 0xb03   :  { %v927_v8 = vsel %vm100_vm0, %v923_v4, 0.0  ;;  %v4653_v17 = vpack.c.bf16 %v975_v30, %v974_v26 }
 0xb04   :  { %928 = vadd.xlane.f32.xlu0 %v927_v8  ;;  %v924_v14 = vsel %vm100_vm0, %v922_v6, 0.0 }
 0xb05   :  { %925 = vadd.xlane.f32.xlu1 %v924_v14  ;;  %4654 = vmatprep.subr.bf16.mxu1 %v4653_v17 }
 0xb06   :  { %4656 = vmatpush3.bf16.msra.mxu1 %v4653_v17 }
 0xb07   :  { %4658 = vmatprep.subr.bf16.mxu1 %v4657_v33 }
 0xb0a   :  { %4660 = vmatpush3.bf16.msra.mxu1 %v4657_v33 }
 0xb91   :  { %v929_v15 = vpop.xlane.xlu0 %928 }
 0xb92   :  { %v931_v16 = vmul.f32 0.03125, %v929_v15  ;;  %v926_v18 = vpop.xlane.xlu1 %925 }
 0xb93   :  { %v930_v19 = vmul.f32 0.03125, %v926_v18 }
 0xb94   :  { %v933_v20 = vsub.f32 %v923_v4, %v931_v16 }
 0xb95   :  { %v932_v22 = vsub.f32 %v922_v6, %v930_v19 }
 0xb96   :  { %v935_v25 = vmul.f32 %v933_v20, %v933_v20 }
 0xb97   :  { %v934_v28 = vmul.f32 %v932_v22, %v932_v22 }
 0xb98   :  { %v939_v29 = vsel %vm100_vm0, %v935_v25, 0.0 }
 0xb99   :  { %940 = vadd.xlane.f32.xlu0 %v939_v29  ;;  %v936_v27 = vsel %vm100_vm0, %v934_v28, 0.0 }
 0xb9a   :  { %937 = vadd.xlane.f32.xlu1 %v936_v27 }
 0xc26   :  { %v941_v34 = vpop.xlane.xlu0 %940 }
 0xc27   :  { %v943_v35 = vmul.f32 0.03125, %v941_v34  ;;  %v938_v36 = vpop.xlane.xlu1 %937 }
 0xc28   :  { %v942_v37 = vmul.f32 0.03125, %v938_v36 }
 0xc29   :  { %v945_v38 = vadd.f32 1e-05, %v943_v35 }
 0xc2a   :  { %v944_v40 = vadd.f32 1e-05, %v942_v37 }
 0xc2b   :  { %4976 = vrsqrt.f32 %v945_v38 }
 0xc2c   :  { %4978 = vrsqrt.f32 %v944_v40 }
 0xc35   :  { %v4977_v45 = vpop.eup %4976 }
 0xc36   :  { %v4979_v46 = vpop.eup %4978  ;;  %v949_v47 = vmul.f32 %v4977_v45, %v933_v20 }
 0xc37   :  { %v948_v48 = vmul.f32 %v4979_v46, %v932_v22 }
 0xc38   :  { %v955_v50 = vmul.f32 %v953_v44, %v949_v47 }
 0xc39   :  { %v954_v51 = vmul.f32 %v953_v44, %v948_v48 }
 0xc3a   :  { %v5462_v53 = vadd.f32 %v959_v49, %v955_v50 }
 0xc3b   :  { %v5460_v52 = vadd.f32 %v959_v49, %v954_v51 }
 0xc3d   :  { %4317 = vmatprep.mubr.msk.f32.mxu1 %vm100_vm0, %v5460_v52 }
 0xc3e   :  { %4318 = vmatmul.mubr.msk.f32.vlgmr.msra.gmra.mrb[8].mxu1 %vm100_vm0, %v5462_v53 }
 0xd11   :  { %v4319_v54 = vpop.f32.mrb[8].mxu1 }
 0xd12   :  { %v1059_v55 = vadd.f32 %v4319_v54, %v981_v11  ;;  %v1053_v56 = vpop.f32.mrb[9].mxu1 }
 0xd13   :  { %v1054_v57 = vadd.f32 %v1053_v56, %v981_v11 }
 0xd15   :  { %4324 = vmatprep.mubr.msk.f32.mxu1 %vm188_vm1, %v1054_v57  ;;  %v5476_v58 = vpack.i.bf16 %v1059_v55, %v1054_v57 }
 0xd17   :  { %4898 = vrot.lane.b32.xlu0 %v5476_v58, %s5168_s26  ;;  %4893 = vrot.lane.b32.xlu1 %v5476_v58, %s5166_s0 }
 0xd1b   :  { %1260 = vrot.lane.b32.xlu1 %v1054_v57, %s5169_s2 }
 0xd1f   :  { %1262 = vrot.lane.b32.xlu1 %v1059_v55, %s5169_s2 }
 0xd89   :  { %v4899_v59 = vpop.permute.xlu0 %4898  ;;  %v4894_v7 = vpop.permute.xlu1 %4893 }
 0xd8a   :  { %v4901_v5 = vunpack.i.h.bf16 %v4899_v59  ;;  %v4900_v60 = vunpack.i.l.bf16 %v4899_v59  ;;  %v4896_v61 = vunpack.i.h.bf16 %v4894_v7  ;;  %v4895_v63 = vunpack.i.l.bf16 %v4894_v7 }
 0xd8c   :  { %v4661_v0 = vpack.c.bf16 %v4896_v61, %v4895_v63  ;;  %v4671_v1 = vpack.c.bf16 %v4901_v5, %v4900_v60 }
 0xd8d   :  { %v1261_v2 = vpop.permute.xlu1 %1260 }
 0xd8e   :  { %4663 = vmatprep.subr.msk.bf16.mxu1 %vm5332_vm2, %v4661_v0 }
 0xd8f   :  { %4666 = vmatpush3.bf16.xpose.msk.msra.mxu1 %vm5332_vm2, %v4661_v0 }
 0xd90   :  { %4673 = vmatprep.subr.msk.bf16.mxu1 %vm5332_vm2, %v4671_v1 }
 0xd91   :  { %v1263_v3 = vpop.permute.xlu1 %1262 }
 0xd96   :  { %4325 = vmatmul.mubr.msk.f32.vlgmr.msra.gmra.mrb[10].mxu1 %vm188_vm1, %v1059_v55 }
 0xd97   :  { %4676 = vmatpush3.bf16.xpose.msk.msra.mxu1 %vm5332_vm2, %v4671_v1  ;;  %4338 = vmatprep.mubr.msk.f32.mxu1 %vm188_vm1, %v1261_v2 }
 0xd9e   :  { %4339 = vmatmul.mubr.msk.f32.vlgmr.msra.gmra.mrb[12].mxu1 %vm188_vm1, %v1263_v3 }
 0xe69   :  { %v4326_v4 = vpop.f32.mrb[10].mxu1 }
 0xe6a   :  { %v1148_v6 = vadd.f32 %v4326_v4, %v5344_v23  ;;  %v1142_v8 = vpop.f32.mrb[11].mxu1  ;;  %v1471_v4 = vld [vmem:[#allocation4 + $0x20] sm:$0xff] }
 0xe6b   :  { %v1143_v14 = vadd.f32 %v1142_v8, %v5349_v24 }
 0xe6c   :  { %v1154_v15 = vsel %vm188_vm1, %v1148_v6, -inf }
 0xe6d   :  { %1155 = vmax.xlane.f32.xlu1 %v1154_v15  ;;  %v1151_v16 = vsel %vm188_vm1, %v1143_v14, -inf  ;;  %v1474_v15 = vld [vmem:[#allocation4 + $0x38] sm:$0xff] }
 0xe6e   :  { %1152 = vmax.xlane.f32.xlu0 %v1151_v16 }
 0xe71   :  { %v4340_v18 = vpop.f32.mrb[12].mxu1 }
 0xe72   :  { %v1342_v19 = vpop.f32.mrb[13].mxu1  ;;  %v1348_v22 = vadd.f32 %v4340_v18, %v5344_v23 }
 0xe73   :  { %v1343_v20 = vadd.f32 %v1342_v19, %v5349_v24 }
 0xe74   :  { %v1354_v28 = vsel %vm188_vm1, %v1348_v22, -inf }
 0xe75   :  { %v1351_v25 = vsel %vm188_vm1, %v1343_v20, -inf }
 0xe76   :  { %1352 = vmax.xlane.f32.xlu0 %v1351_v25 }
 0xe7a   :  { %1355 = vmax.xlane.f32.xlu0 %v1354_v28 }
 0xefa   :  { %v1156_v29 = vpop.xlane.xlu1 %1155 }
 0xefb   :  { %v1158_v27 = vsub.f32 %v1148_v6, %v1156_v29  ;;  %v1153_v26 = vpop.xlane.xlu0 %1152  ;;  %v1472_v6 = vld [vmem:[#allocation4 + $0x28] sm:$0xff] }
 0xefc   :  { %v1157_v30 = vsub.f32 %v1143_v14, %v1153_v26  ;;  %v4681_v8 = vpack.c.bf16 %v1472_v6, %v1471_v4  ;;  %v1473_v14 = vld [vmem:[#allocation4 + $0x30] sm:$0xff]  ;;  %v1478_v26 = vrot.slane %v5471_v9, %v5388_v41 }
 0xefd   :  { %v1161_v17 = vmul.f32 1.442695, %v1158_v27  ;;  %v4685_v16 = vpack.c.bf16 %v1474_v15, %v1473_v14  ;;  %v3960_v14 = vld [vmem:[%s5856_s5 + $0x40] sm:$0xff]  ;;  %v3961_v15 = vld [vmem:[%s5856_s5 + $0x48] sm:$0xff] }
 0xefe   :  { %v1159_v31 = vmul.f32 1.442695, %v1157_v30 }
 0xeff   :  { %4980 = vpow2.f32 %v1161_v17 }
 0xf00   :  { %4982 = vpow2.f32 %v1159_v31 }
 0xf03   :  { %v1353_v32 = vpop.xlane.xlu0 %1352 }
 0xf04   :  { %v1357_v33 = vsub.f32 %v1343_v20, %v1353_v32 }
 0xf06   :  { %v1359_v34 = vmul.f32 1.442695, %v1357_v33 }
 0xf07   :  { %v1356_v24 = vpop.xlane.xlu0 %1355 }
 0xf08   :  { %4984 = vpow2.f32 %v1359_v34  ;;  %v1358_v23 = vsub.f32 %v1348_v22, %v1356_v24 }
 0xf09   :  { %v4981_v35 = vpop.eup %4980 }
 0xf0a   :  { %v4983_v36 = vpop.eup %4982  ;;  %v1361_v37 = vmul.f32 1.442695, %v1358_v23  ;;  %v1166_v38 = vsel %vm188_vm1, %v4981_v35, 0.0 }
 0xf0b   :  { %1167 = vadd.xlane.f32.xlu0 %v1166_v38  ;;  %v1163_v40 = vsel %vm188_vm1, %v4983_v36, 0.0 }
 0xf0c   :  { %4986 = vpow2.f32 %v1361_v37  ;;  %1164 = vadd.xlane.f32.xlu1 %v1163_v40 }
 0xf12   :  { %v4985_v44 = vpop.eup %4984 }
 0xf13   :  { %v1363_v45 = vsel %vm188_vm1, %v4985_v44, 0.0 }
 0xf14   :  { %1364 = vadd.xlane.f32.xlu1 %v1363_v45 }
 0xf16   :  { %v4987_v46 = vpop.eup %4986 }
 0xf17   :  { %v1366_v47 = vsel %vm188_vm1, %v4987_v46, 0.0 }
 0xf18   :  { %1367 = vadd.xlane.f32.xlu0 %v1366_v47 }
 0xf25   :  { %4903 = vrot.lane.b32.xlu1 %v5476_v58, %s5167_s25 }
 0xf2e   :  { %4908 = vrot.lane.b32.xlu0 %v5476_v58, %s5170_s12 }
 0xf98   :  { %v1168_v49 = vpop.xlane.xlu0 %1167 }
 0xf99   :  { %v1165_v48 = vpop.xlane.xlu1 %1164 }
 0xf9a   :  { %4988 = vrcp.f32 %v1165_v48 }
 0xf9b   :  { %4990 = vrcp.f32 %v1168_v49  ;;  %v1601_v49 = vld [vmem:[#allocation6 + $0x20] sm:$0xff] }
 0xfa1   :  { %v1365_v50 = vpop.xlane.xlu1 %1364 }
 0xfa2   :  { %4992 = vrcp.f32 %v1365_v50  ;;  %v1602_v50 = vld [vmem:[#allocation6 + $0x28] sm:$0xff] }
 0xfa4   :  { %v4989_v51 = vpop.eup %4988 }
 0xfa5   :  { %v4904_v11 = vpop.permute.xlu1 %4903  ;;  %v1368_v54 = vpop.xlane.xlu0 %1367  ;;  %v1170_v55 = vmul.f32 %v4989_v51, %v4983_v36  ;;  %v4689_v51 = vpack.c.bf16 %v1602_v50, %v1601_v49 }
 0xfa6   :  { %v4906_v56 = vunpack.i.h.bf16 %v4904_v11  ;;  %v4905_v57 = vunpack.i.l.bf16 %v4904_v11  ;;  %4994 = vrcp.f32 %v1368_v54  ;;  %v4991_v7 = vpop.eup %4990  ;;  %v1603_v11 = vld [vmem:[#allocation6 + $0x30] sm:$0xff]  ;;  %v1604_v54 = vld [vmem:[#allocation6 + $0x38] sm:$0xff] }
 0xfa7   :  { %4331 = vmatprep.mubr.msk.f32.mxu0 %vm188_vm1, %v1170_v55  ;;  %v1172_v63 = vmul.f32 %v4991_v7, %v4981_v35  ;;  %4690 = vmatprep.subr.bf16.mxu1 %v4689_v51  ;;  %v4693_v55 = vpack.c.bf16 %v1604_v54, %v1603_v11 }
 0xfa8   :  { %v4667_v59 = vpack.c.bf16 %v4906_v56, %v4905_v57  ;;  %4692 = vmatpush3.bf16.msra.mxu1 %v4689_v51 }
 0xfa9   :  { %v4909_v5 = vpop.permute.xlu0 %4908  ;;  %4694 = vmatprep.subr.bf16.mxu1 %v4693_v55 }
 0xfaa   :  { %v4911_v60 = vunpack.i.h.bf16 %v4909_v5  ;;  %v4910_v58 = vunpack.i.l.bf16 %v4909_v5  ;;  %4668 = vmatprep.subr.bf16.mxu0 %v4667_v59 }
 0xfab   :  { %4670 = vmatpush3.bf16.msra.mxu0 %v4667_v59 }
 0xfac   :  { %v4993_v61 = vpop.eup %4992  ;;  %v4677_v0 = vpack.c.bf16 %v4911_v60, %v4910_v58  ;;  %4696 = vmatpush3.bf16.msra.mxu1 %v4693_v55  ;;  %v1591_v58 = vrot.slane %v5471_v9, %v5399_v12  ;;  %v1720_v55 = vrot.slane %v5471_v9, %v5442_v62 }
 0xfad   :  { %v1370_v1 = vmul.f32 %v4993_v61, %v4985_v44 }
 0xfae   :  { %4332 = vmatmul.mubr.msk.f32.vlgmr.msra.gmra.mrb[8].mxu0 %vm188_vm1, %v1172_v63  ;;  %4678 = vmatprep.subr.bf16.mxu0 %v4677_v0 }
 0xfaf   :  { %4680 = vmatpush3.bf16.msra.mxu0 %v4677_v0  ;;  %4345 = vmatprep.mubr.msk.f32.mxu0 %vm188_vm1, %v1370_v1  ;;  %v1597_v0 = vrot.slane %v5471_v9, %v5402_v13 }
 0xfb0   :  { %v4995_v2 = vpop.eup %4994  ;;  %4682 = vmatprep.subr.bf16.mxu0 %v4681_v8 }
 0xfb1   :  { %v1372_v3 = vmul.f32 %v4995_v2, %v4987_v46 }
 0xfb3   :  { %4346 = vmatmul.mubr.msk.f32.vlgmr.msra.gmra.mrb[10].mxu0 %vm188_vm1, %v1372_v3 }
 0xfb4   :  { %4684 = vmatpush3.bf16.msra.mxu0 %v4681_v8 }
 0xfb5   :  { %4686 = vmatprep.subr.bf16.mxu0 %v4685_v16 }
 0xfb8   :  { %4688 = vmatpush3.bf16.msra.mxu0 %v4685_v16  ;;  %v4697_v16 = vpack.c.bf16 %v3961_v15, %v3960_v14 }
 0xfba   :  { %4698 = vmatprep.subr.bf16.mxu0 %v4697_v16 }
0x1081   :  { %v4333_v18 = vpop.f32.mrb[8].mxu0 }
0x1082   :  { %v1251_v19 = vpop.f32.mrb[9].mxu0 }
0x1086   :  { %v4347_v20 = vpop.f32.mrb[10].mxu0 }
0x1087   :  { %v1451_v22 = vpop.f32.mrb[11].mxu0 }
0x1088   :  { %1462 = vrot.lane.b32.xlu1 %v1451_v22, %s5171_s27 }
0x108c   :  { %1464 = vrot.lane.b32.xlu1 %v4347_v20, %s5171_s27  ;;  %v3964_v20 = vld [vmem:[%s5856_s5 + $0x60] sm:$0xff] }
0x10fa   :  { %v1463_v25 = vpop.permute.xlu1 %1462 }
0x10fb   :  { %v1468_v28 = vsel %vm188_vm1, %v1251_v19, %v1463_v25  ;;  %v3963_v19 = vld [vmem:[%s5856_s5 + $0x58] sm:$0xff]  ;;  %v3965_v25 = vld [vmem:[%s5856_s5 + $0x68] sm:$0xff] }
0x10fc   :  { %4356 = vmatprep.mubr.msk.f32.mxu0 %vm100_vm0, %v1468_v28  ;;  %v4705_v28 = vpack.c.bf16 %v3965_v25, %v3964_v20  ;;  %v1847_v20 = vld [vmem:[#allocation7 + $0x20] sm:$0xff] }
0x10fe   :  { %v1465_v29 = vpop.permute.xlu1 %1464 }
0x10ff   :  { %v1469_v27 = vsel %vm188_vm1, %v4333_v18, %v1465_v29  ;;  %v3962_v18 = vld [vmem:[%s5856_s5 + $0x50] sm:$0xff] }
0x1100   :  { %4357 = vmatmul.mubr.msk.f32.vlgmr.msra.gmra.mrb[12].mxu0 %vm100_vm0, %v1469_v27  ;;  %v4701_v22 = vpack.c.bf16 %v3963_v19, %v3962_v18  ;;  %v3966_v29 = vld [vmem:[%s5856_s5 + $0x70] sm:$0xff]  ;;  %v3967_v27 = vld [vmem:[%s5856_s5 + $0x78] sm:$0xff]  ;;  %v2001_v18 = vld [vmem:[#allocation2 + $0x48] sm:$0xff] }
0x1101   :  { %4700 = vmatpush3.bf16.msra.mxu0 %v4697_v16 }
0x1102   :  { %4702 = vmatprep.subr.bf16.mxu0 %v4701_v22 }
0x1105   :  { %4704 = vmatpush3.bf16.msra.mxu0 %v4701_v22  ;;  %v1848_v22 = vld [vmem:[#allocation7 + $0x28] sm:$0xff] }
0x1106   :  { %4706 = vmatprep.subr.bf16.mxu0 %v4705_v28  ;;  %v4714_v25 = vpack.c.bf16 %v1848_v22, %v1847_v20 }
0x1109   :  { %4708 = vmatpush3.bf16.msra.mxu0 %v4705_v28  ;;  %v5172_v28 = vmov 0.0|0.0  }
0x110a   :  { %4713 = vmatprep.subr.bf16.mxu1 %v5172_v28 }
0x11d3   :  { %v4358_v30 = vpop.f32.mrb[12].mxu0 }
0x11d4   :  { %v1557_v17 = vadd.f32 %v4358_v30, %v1478_v26  ;;  %v1551_v31 = vpop.f32.mrb[13].mxu0  ;;  %v1608_v30 = vrot.slane %v5471_v9, %v5435_v39 }
0x11d5   :  { %v1552_v32 = vadd.f32 %v1551_v31, %v1478_v26  ;;  %v4709_v26 = vpack.c.bf16 %v3967_v27, %v3966_v29  ;;  %v2002_v29 = vld [vmem:[#allocation2 + $0x50] sm:$0xff]  ;;  %v2003_v27 = vld [vmem:[#allocation2 + $0x58] sm:$0xff] }
0x11d6   :  { %v1561_v33 = vadd.f32 %v1557_v17, %v5462_v53 }
0x11d7   :  { %v1560_v34 = vadd.f32 %v1552_v32, %v5460_v52  ;;  %4710 = vmatprep.subr.bf16.mxu0 %v4709_v26 }
0x11d8   :  { %v1565_v24 = vsel %vm100_vm0, %v1561_v33, 0.0  ;;  %4712 = vmatpush3.bf16.msra.mxu0 %v4709_v26  ;;  %v1849_v26 = vld [vmem:[#allocation7 + $0x30] sm:$0xff] }
0x11d9   :  { %1566 = vadd.xlane.f32.xlu1 %v1565_v24  ;;  %v1562_v23 = vsel %vm100_vm0, %v1560_v34, 0.0 }
0x11da   :  { %1563 = vadd.xlane.f32.xlu0 %v1562_v23 }
0x1266   :  { %v1567_v35 = vpop.xlane.xlu1 %1566 }
0x1267   :  { %v1569_v36 = vmul.f32 0.03125, %v1567_v35  ;;  %v1564_v37 = vpop.xlane.xlu0 %1563 }
0x1268   :  { %v1568_v38 = vmul.f32 0.03125, %v1564_v37 }
0x1269   :  { %v1571_v40 = vsub.f32 %v1561_v33, %v1569_v36 }
0x126a   :  { %v1570_v44 = vsub.f32 %v1560_v34, %v1568_v38 }
0x126b   :  { %v1573_v47 = vmul.f32 %v1571_v40, %v1571_v40 }
0x126c   :  { %v1572_v45 = vmul.f32 %v1570_v44, %v1570_v44 }
0x126d   :  { %v1577_v48 = vsel %vm100_vm0, %v1573_v47, 0.0 }
0x126e   :  { %v1574_v46 = vsel %vm100_vm0, %v1572_v45, 0.0 }
0x126f   :  { %1575 = vadd.xlane.f32.xlu0 %v1574_v46 }
0x1273   :  { %1578 = vadd.xlane.f32.xlu0 %v1577_v48 }
0x12fc   :  { %v1576_v56 = vpop.xlane.xlu0 %1575 }
0x12fd   :  { %v1580_v57 = vmul.f32 0.03125, %v1576_v56 }
0x12ff   :  { %v1582_v59 = vadd.f32 1e-05, %v1580_v57 }
0x1300   :  { %v1579_v7 = vpop.xlane.xlu0 %1578 }
0x1301   :  { %4996 = vrsqrt.f32 %v1582_v59  ;;  %v1581_v5 = vmul.f32 0.03125, %v1579_v7 }
0x1303   :  { %v1583_v60 = vadd.f32 1e-05, %v1581_v5 }
0x1305   :  { %4998 = vrsqrt.f32 %v1583_v60 }
0x130b   :  { %v4997_v61 = vpop.eup %4996 }
0x130c   :  { %v1586_v63 = vmul.f32 %v4997_v61, %v1570_v44 }
0x130e   :  { %v1592_v1 = vmul.f32 %v1591_v58, %v1586_v63 }
0x130f   :  { %v4999_v2 = vpop.eup %4998 }
0x1310   :  { %v1587_v3 = vmul.f32 %v4999_v2, %v1571_v40  ;;  %v1598_v4 = vadd.f32 %v1597_v0, %v1592_v1 }
0x1312   :  { %v1593_v6 = vmul.f32 %v1591_v58, %v1587_v3  ;;  %4367 = vmatprep.mubr.msk.f32.mxu1 %vm100_vm0, %v1598_v4 }
0x1314   :  { %v1599_v8 = vadd.f32 %v1597_v0, %v1593_v6 }
0x1316   :  { %4368 = vmatmul.mubr.msk.f32.vlgmr.msra.gmra.mrb[14].mxu1 %vm100_vm0, %v1599_v8 }
0x1317   :  { %4715 = vmatpush3.bf16.msra.mxu1 %v4714_v25 }
0x1318   :  { %4716 = vmatprep.subr.bf16.mxu1 %v5172_v28 }
0x13e9   :  { %v4369_v17 = vpop.f32.mrb[14].mxu1 }
0x13ea   :  { %v1687_v31 = vadd.f32 %v4369_v17, %v1608_v30  ;;  %v1681_v32 = vpop.f32.mrb[15].mxu1  ;;  %v1850_v17 = vld [vmem:[#allocation7 + $0x38] sm:$0xff] }
0x13eb   :  { %v1682_v33 = vadd.f32 %v1681_v32, %v1608_v30  ;;  %v4729_v30 = vpack.c.bf16 %v2003_v27, %v2002_v29  ;;  %v5174_v32 = vmov 0.0  }
0x13ec   :  { %v1693_v34 = vmul.f32 0.044715, %v1687_v31  ;;  %v1691_v51 = vmul.f32 0.5, %v1687_v31  ;;  %4397 = vmatprep.mubr.msk.f32.mxu1 %vm5173_vm4, %v5174_v32 }
0x13ed   :  { %v1692_v24 = vmul.f32 0.044715, %v1682_v33  ;;  %v1690_v49 = vmul.f32 0.5, %v1682_v33 }
0x13ee   :  { %v1695_v23 = vmul.f32 %v1693_v34, %v1687_v31 }
0x13ef   :  { %v1694_v35 = vmul.f32 %v1692_v24, %v1682_v33 }
0x13f0   :  { %v1697_v36 = vmul.f32 %v1695_v23, %v1687_v31 }
0x13f1   :  { %v1696_v37 = vmul.f32 %v1694_v35, %v1682_v33 }
0x13f2   :  { %v1699_v38 = vadd.f32 %v1697_v36, %v1687_v31  ;;  %v4717_v31 = vpack.c.bf16 %v1850_v17, %v1849_v26  ;;  %v5629_v26 = vld [vmem:[%s5852_s1 + $0x8] sm:$0xff] }
0x13f3   :  { %v1698_v40 = vadd.f32 %v1696_v37, %v1682_v33  ;;  %v1833_v37 = vrot.slane %v5471_v9, %v5451_v42 }
0x13f4   :  { %v1701_v44 = vmul.f32 0.7978846, %v1699_v38  ;;  %4718 = vmatpush3.bf16.msra.mxu1 %v4717_v31  ;;  %v5635_v31 = vld [vmem:[%s5852_s1] sm:$0xff] }
0x13f5   :  { %v1700_v45 = vmul.f32 0.7978846, %v1698_v40  ;;  %4719 = vmatprep.subr.bf16.mxu1 %v5172_v28 }
0x13f6   :  { %5000 = vtanh.f32 %v1701_v44 }
0x13f7   :  { %5002 = vtanh.f32 %v1700_v45  ;;  %v1839_v45 = vrot.slane %v5471_v9, %v5454_v43 }
0x1400   :  { %v5001_v46 = vpop.eup %5000 }
0x1401   :  { %v5003_v47 = vpop.eup %5002  ;;  %v1705_v48 = vadd.f32 1.0, %v5001_v46 }
0x1402   :  { %v1704_v50 = vadd.f32 1.0, %v5003_v47 }
0x1403   :  { %v1707_v54 = vmul.f32 %v1705_v48, %v1691_v51 }
0x1404   :  { %v1706_v11 = vmul.f32 %v1704_v50, %v1690_v49  ;;  %v967_v49 = vld [vmem:[#allocation7] sm:$0xff]  ;;  %v968_v50 = vld [vmem:[#allocation7 + $0x8] sm:$0xff] }
0x1406   :  { %4386 = vmatprep.mubr.msk.f32.mxu0 %vm840_vm3, %v1706_v11 }
0x1407   :  { %4387 = vmatmul.mubr.msk.f32.vlgmr.msra.gmra.mrb[14].mxu0 %vm840_vm3, %v1707_v54 }
0x14da   :  { %v4388_v56 = vpop.f32.mrb[14].mxu0 }
0x14db   :  { %v1799_v57 = vadd.f32 %v4388_v56, %v1720_v55  ;;  %v1793_v59 = vpop.f32.mrb[15].mxu0  ;;  %v969_v56 = vld [vmem:[#allocation7 + $0x10] sm:$0xff] }
0x14dc   :  { %v1794_v7 = vadd.f32 %v1793_v59, %v1720_v55  ;;  %v4720_v55 = vpack.c.bf16 %v968_v50, %v967_v49 }
0x14dd   :  { %v1803_v5 = vadd.f32 %v1799_v57, %v1599_v8  ;;  %v970_v57 = vld [vmem:[#allocation7 + $0x18] sm:$0xff] }
0x14de   :  { %v1802_v60 = vadd.f32 %v1794_v7, %v1598_v4  ;;  %v2000_v4 = vld [vmem:[#allocation2 + $0x40] sm:$0xff]  ;;  %v4723_v59 = vpack.c.bf16 %v970_v57, %v969_v56  ;;  %v963_v7 = vrot.slane %v5462_v53, 7 }
0x14df   :  { %v1807_v58 = vsel %vm100_vm0, %v1803_v5, 0.0  ;;  %v4725_v19 = vpack.c.bf16 %v2001_v18, %v2000_v4 }
0x14e0   :  { %1808 = vadd.xlane.f32.xlu0 %v1807_v58  ;;  %v1804_v61 = vsel %vm100_vm0, %v1802_v60, 0.0 }
0x14e1   :  { %1805 = vadd.xlane.f32.xlu1 %v1804_v61  ;;  %4726 = vmatprep.subr.bf16.mxu0 %v4725_v19 }
0x14e2   :  { %4728 = vmatpush3.bf16.msra.mxu0 %v4725_v19 }
0x14e3   :  { %4730 = vmatprep.subr.bf16.mxu0 %v4729_v30 }
0x14e6   :  { %4732 = vmatpush3.bf16.msra.mxu0 %v4729_v30 }
0x156d   :  { %v1809_v63 = vpop.xlane.xlu0 %1808 }
0x156e   :  { %v1811_v0 = vmul.f32 0.03125, %v1809_v63  ;;  %v1806_v1 = vpop.xlane.xlu1 %1805 }
0x156f   :  { %v1810_v2 = vmul.f32 0.03125, %v1806_v1 }
0x1570   :  { %v1813_v3 = vsub.f32 %v1803_v5, %v1811_v0  ;;  %v966_v5 = vsel %vm965_vm5, %v5460_v52, %v963_v7 }
0x1571   :  { %v1812_v6 = vsub.f32 %v1802_v60, %v1810_v2  ;;  %v5600_v60 = vld [vmem:[%s5857_s6 + $0x10] sm:$0xff] }
0x1572   :  { %v1815_v14 = vmul.f32 %v1813_v3, %v1813_v3  ;;  %v2007_v58 = vrot.slane %v5600_v60, %v5316_v10 }
0x1573   :  { %v1814_v15 = vmul.f32 %v1812_v6, %v1812_v6 }
0x1574   :  { %v1819_v16 = vsel %vm100_vm0, %v1815_v14, 0.0 }
0x1575   :  { %1820 = vadd.xlane.f32.xlu0 %v1819_v16  ;;  %v1816_v8 = vsel %vm100_vm0, %v1814_v15, 0.0 }
0x1576   :  { %1817 = vadd.xlane.f32.xlu1 %v1816_v8 }
0x1602   :  { %v1821_v33 = vpop.xlane.xlu0 %1820 }
0x1603   :  { %v1823_v34 = vmul.f32 0.03125, %v1821_v33  ;;  %v1818_v24 = vpop.xlane.xlu1 %1817 }
0x1604   :  { %v1822_v23 = vmul.f32 0.03125, %v1818_v24 }
0x1605   :  { %v1825_v35 = vadd.f32 1e-05, %v1823_v34 }
0x1606   :  { %v1824_v36 = vadd.f32 1e-05, %v1822_v23 }
0x1607   :  { %5004 = vrsqrt.f32 %v1825_v35 }
0x1608   :  { %5006 = vrsqrt.f32 %v1824_v36 }
0x1611   :  { %v5005_v38 = vpop.eup %5004 }
0x1612   :  { %v5007_v40 = vpop.eup %5006  ;;  %v1829_v44 = vmul.f32 %v5005_v38, %v1813_v3 }
0x1613   :  { %v1828_v46 = vmul.f32 %v5007_v40, %v1812_v6 }
0x1614   :  { %v1835_v47 = vmul.f32 %v1833_v37, %v1829_v44 }
0x1615   :  { %v1834_v48 = vmul.f32 %v1833_v37, %v1828_v46 }
0x1616   :  { %v5578_v51 = vadd.f32 %v1839_v45, %v1835_v47 }
0x1617   :  { %v5580_v11 = vadd.f32 %v1839_v45, %v1834_v48 }
0x1618   :  { %v1843_v54 = vrot.slane %v5578_v51, 7 }
0x1619   :  { %4419 = vmatprep.mubr.msk.f32.mxu0 %vm100_vm0, %v5580_v11 }
0x161a   :  { %4420 = vmatmul.mubr.msk.f32.vlgmr.msra.gmra.mrb[16].mxu0 %vm100_vm0, %v5578_v51  ;;  %v1845_v9 = vsel %vm965_vm5, %v5580_v11, %v1843_v54 }
0x161b   :  { %4398 = vmatmul.mubr.msk.f32.vlgmr.msra.gmra.mrb[16].mxu1 %vm100_vm0, %v1845_v9 }
0x161c   :  { %4721 = vmatpush3.bf16.msra.mxu1 %v4720_v55  ;;  %4408 = vmatprep.mubr.msk.f32.mxu1 %vm5173_vm4, %v5174_v32 }
0x161d   :  { %4722 = vmatprep.subr.bf16.mxu1 %v5172_v28 }
0x1620   :  { %4724 = vmatpush3.bf16.msra.mxu1 %v4723_v59 }
0x1623   :  { %4409 = vmatmul.mubr.msk.f32.vlgmr.msra.gmra.mrb[18].mxu1 %vm100_vm0, %v966_v5 }
0x16ed   :  { %v4421_v61 = vpop.f32.mrb[16].mxu0 }
0x16ee   :  { %v2085_v63 = vadd.f32 %v4421_v61, %v2007_v58  ;;  %v1920_v0 = vpop.f32.mrb[16].mxu1  ;;  %v2079_v1 = vpop.f32.mrb[17].mxu0 }
0x16ef   :  { %v2080_v2 = vadd.f32 %v2079_v1, %v2007_v58  ;;  %v4399_v53 = vpop.f32.mrb[17].mxu1 }
0x16f1   :  { %4426 = vmatprep.mubr.msk.f32.mxu1 %vm188_vm1, %v2080_v2  ;;  %v5605_v3 = vpack.i.bf16 %v2085_v63, %v2080_v2 }
0x16f3   :  { %4918 = vrot.lane.b32.xlu0 %v5605_v3, %s5168_s26  ;;  %4913 = vrot.lane.b32.xlu1 %v5605_v3, %s5166_s0 }
0x16f6   :  { %v1993_v52 = vpop.f32.mrb[18].mxu1 }
0x16f7   :  { %v5611_v6 = vadd.f32 %v1993_v52, %v1920_v0  ;;  %v4410_v14 = vpop.f32.mrb[19].mxu1  ;;  %2286 = vrot.lane.b32.xlu1 %v2080_v2, %s5169_s2 }
0x16fb   :  { %2288 = vrot.lane.b32.xlu1 %v2085_v63, %s5169_s2 }
0x1765   :  { %v4919_v15 = vpop.permute.xlu0 %4918  ;;  %v4914_v16 = vpop.permute.xlu1 %4913 }
0x1766   :  { %v4921_v8 = vunpack.i.h.bf16 %v4919_v15  ;;  %v4920_v4 = vunpack.i.l.bf16 %v4919_v15  ;;  %v4916_v18 = vunpack.i.h.bf16 %v4914_v16  ;;  %v4915_v19 = vunpack.i.l.bf16 %v4914_v16 }
0x1768   :  { %v4733_v20 = vpack.c.bf16 %v4916_v18, %v4915_v19  ;;  %v4743_v22 = vpack.c.bf16 %v4921_v8, %v4920_v4 }
0x1769   :  { %v2287_v25 = vpop.permute.xlu1 %2286 }
0x176a   :  { %4735 = vmatprep.subr.msk.bf16.mxu1 %vm5332_vm2, %v4733_v20 }
0x176b   :  { %4738 = vmatpush3.bf16.xpose.msk.msra.mxu1 %vm5332_vm2, %v4733_v20 }
0x176c   :  { %4745 = vmatprep.subr.msk.bf16.mxu1 %vm5332_vm2, %v4743_v22 }
0x176d   :  { %v2289_v29 = vpop.permute.xlu1 %2288 }
0x1772   :  { %4427 = vmatmul.mubr.msk.f32.vlgmr.msra.gmra.mrb[20].mxu1 %vm188_vm1, %v2085_v63 }
0x1773   :  { %4748 = vmatpush3.bf16.xpose.msk.msra.mxu1 %vm5332_vm2, %v4743_v22  ;;  %4440 = vmatprep.mubr.msk.f32.mxu1 %vm188_vm1, %v2287_v25 }
0x177a   :  { %4441 = vmatmul.mubr.msk.f32.vlgmr.msra.gmra.mrb[22].mxu1 %vm188_vm1, %v2289_v29 }
0x1845   :  { %v4428_v27 = vpop.f32.mrb[20].mxu1 }
0x1846   :  { %v2174_v30 = vadd.f32 %v5629_v26, %v4428_v27  ;;  %v2168_v17 = vpop.f32.mrb[21].mxu1 }
0x1847   :  { %v2169_v33 = vadd.f32 %v5635_v31, %v2168_v17 }
0x1848   :  { %v2180_v34 = vsel %vm188_vm1, %v2174_v30, -inf }
0x1849   :  { %2181 = vmax.xlane.f32.xlu1 %v2180_v34  ;;  %v2177_v24 = vsel %vm188_vm1, %v2169_v33, -inf }
0x184a   :  { %2178 = vmax.xlane.f32.xlu0 %v2177_v24  ;;  %v2497_v24 = vld [vmem:[#allocation4 + $0x40] sm:$0xff] }
0x184d   :  { %v4442_v23 = vpop.f32.mrb[22].mxu1 }
0x184e   :  { %v2368_v35 = vpop.f32.mrb[23].mxu1  ;;  %v2374_v37 = vadd.f32 %v5629_v26, %v4442_v23  ;;  %v2498_v23 = vld [vmem:[#allocation4 + $0x48] sm:$0xff] }
0x184f   :  { %v2369_v36 = vadd.f32 %v5635_v31, %v2368_v35  ;;  %v4753_v35 = vpack.c.bf16 %v2498_v23, %v2497_v24 }
0x1850   :  { %v2380_v40 = vsel %vm188_vm1, %v2374_v37, -inf }
0x1851   :  { %v2377_v38 = vsel %vm188_vm1, %v2369_v36, -inf }
0x1852   :  { %2378 = vmax.xlane.f32.xlu0 %v2377_v38 }
0x1856   :  { %2381 = vmax.xlane.f32.xlu0 %v2380_v40 }
0x18d6   :  { %v2182_v44 = vpop.xlane.xlu1 %2181 }
0x18d7   :  { %v2184_v45 = vsub.f32 %v2174_v30, %v2182_v44  ;;  %v2179_v46 = vpop.xlane.xlu0 %2178 }
0x18d8   :  { %v2183_v47 = vsub.f32 %v2169_v33, %v2179_v46 }
0x18d9   :  { %v2187_v48 = vmul.f32 1.442695, %v2184_v45 }
0x18da   :  { %v2185_v49 = vmul.f32 1.442695, %v2183_v47 }
0x18db   :  { %5008 = vpow2.f32 %v2187_v48 }
0x18dc   :  { %5010 = vpow2.f32 %v2185_v49 }
0x18df   :  { %v2379_v50 = vpop.xlane.xlu0 %2378 }
0x18e0   :  { %v2383_v54 = vsub.f32 %v2369_v36, %v2379_v50  ;;  %v2499_v36 = vld [vmem:[#allocation4 + $0x50] sm:$0xff] }
0x18e2   :  { %v2385_v55 = vmul.f32 1.442695, %v2383_v54  ;;  %v2504_v54 = vrot.slane %v5600_v60, %v5388_v41 }
0x18e3   :  { %v2382_v56 = vpop.xlane.xlu0 %2381 }
0x18e4   :  { %5012 = vpow2.f32 %v2385_v55  ;;  %v2384_v57 = vsub.f32 %v2374_v37, %v2382_v56  ;;  %v2500_v37 = vld [vmem:[#allocation4 + $0x58] sm:$0xff] }
0x18e5   :  { %v5009_v9 = vpop.eup %5008  ;;  %v4757_v38 = vpack.c.bf16 %v2500_v37, %v2499_v36 }
0x18e6   :  { %v5011_v59 = vpop.eup %5010  ;;  %v2387_v7 = vmul.f32 1.442695, %v2384_v57  ;;  %v2192_v5 = vsel %vm188_vm1, %v5009_v9, 0.0 }
0x18e7   :  { %2193 = vadd.xlane.f32.xlu0 %v2192_v5  ;;  %v2189_v58 = vsel %vm188_vm1, %v5011_v59, 0.0 }
0x18e8   :  { %5014 = vpow2.f32 %v2387_v7  ;;  %2190 = vadd.xlane.f32.xlu1 %v2189_v58 }
0x18ee   :  { %v5013_v61 = vpop.eup %5012 }
0x18ef   :  { %v2389_v63 = vsel %vm188_vm1, %v5013_v61, 0.0 }
0x18f0   :  { %2390 = vadd.xlane.f32.xlu1 %v2389_v63 }
0x18f2   :  { %v5015_v0 = vpop.eup %5014 }
0x18f3   :  { %v2392_v1 = vsel %vm188_vm1, %v5015_v0, 0.0 }
0x18f4   :  { %2393 = vadd.xlane.f32.xlu0 %v2392_v1 }
0x1901   :  { %4923 = vrot.lane.b32.xlu1 %v5605_v3, %s5167_s25 }
0x190a   :  { %4928 = vrot.lane.b32.xlu0 %v5605_v3, %s5170_s12 }
0x1974   :  { %v2194_v53 = vpop.xlane.xlu0 %2193 }
0x1975   :  { %v2191_v2 = vpop.xlane.xlu1 %2190 }
0x1976   :  { %5016 = vrcp.f32 %v2191_v2 }
0x1977   :  { %5018 = vrcp.f32 %v2194_v53 }
0x197d   :  { %v2391_v52 = vpop.xlane.xlu1 %2390 }
0x197e   :  { %5020 = vrcp.f32 %v2391_v52 }
0x1980   :  { %v5017_v14 = vpop.eup %5016 }
0x1981   :  { %v4924_v15 = vpop.permute.xlu1 %4923  ;;  %v2394_v16 = vpop.xlane.xlu0 %2393  ;;  %v2196_v8 = vmul.f32 %v5017_v14, %v5011_v59 }
0x1982   :  { %v4926_v4 = vunpack.i.h.bf16 %v4924_v15  ;;  %v4925_v18 = vunpack.i.l.bf16 %v4924_v15  ;;  %5022 = vrcp.f32 %v2394_v16  ;;  %v5019_v20 = vpop.eup %5018  ;;  %v2628_v16 = vld [vmem:[#allocation6 + $0x48] sm:$0xff] }
0x1983   :  { %4433 = vmatprep.mubr.msk.f32.mxu0 %vm188_vm1, %v2196_v8  ;;  %v2198_v27 = vmul.f32 %v5019_v20, %v5009_v9 }
0x1984   :  { %v4739_v19 = vpack.c.bf16 %v4926_v4, %v4925_v18  ;;  %v2629_v4 = vld [vmem:[#allocation6 + $0x50] sm:$0xff]  ;;  %v2630_v18 = vld [vmem:[#allocation6 + $0x58] sm:$0xff] }
0x1985   :  { %v4929_v22 = vpop.permute.xlu0 %4928 }
0x1986   :  { %v4931_v25 = vunpack.i.h.bf16 %v4929_v22  ;;  %v4930_v3 = vunpack.i.l.bf16 %v4929_v22  ;;  %4740 = vmatprep.subr.bf16.mxu0 %v4739_v19 }
0x1987   :  { %4742 = vmatpush3.bf16.msra.mxu0 %v4739_v19  ;;  %v4765_v19 = vpack.c.bf16 %v2630_v18, %v2629_v4 }
0x1988   :  { %v5021_v29 = vpop.eup %5020  ;;  %v4749_v30 = vpack.c.bf16 %v4931_v25, %v4930_v3 }
0x1989   :  { %v2396_v17 = vmul.f32 %v5021_v29, %v5013_v61 }
0x198a   :  { %4434 = vmatmul.mubr.msk.f32.vlgmr.msra.gmra.mrb[18].mxu0 %vm188_vm1, %v2198_v27  ;;  %4750 = vmatprep.subr.bf16.mxu0 %v4749_v30 }
0x198b   :  { %4752 = vmatpush3.bf16.msra.mxu0 %v4749_v30  ;;  %4447 = vmatprep.mubr.msk.f32.mxu0 %vm188_vm1, %v2396_v17  ;;  %v2617_v30 = vrot.slane %v5600_v60, %v5399_v12 }
0x198c   :  { %v5023_v33 = vpop.eup %5022  ;;  %4754 = vmatprep.subr.bf16.mxu0 %v4753_v35 }
0x198d   :  { %v2398_v34 = vmul.f32 %v5023_v33, %v5015_v0 }
0x198f   :  { %4448 = vmatmul.mubr.msk.f32.vlgmr.msra.gmra.mrb[20].mxu0 %vm188_vm1, %v2398_v34  ;;  %v2623_v34 = vrot.slane %v5600_v60, %v5402_v13 }
0x1990   :  { %4756 = vmatpush3.bf16.msra.mxu0 %v4753_v35 }
0x1991   :  { %4758 = vmatprep.subr.bf16.mxu0 %v4757_v38 }
0x1994   :  { %4760 = vmatpush3.bf16.msra.mxu0 %v4757_v38 }
0x1a5d   :  { %v4435_v40 = vpop.f32.mrb[18].mxu0 }
0x1a5e   :  { %v2277_v44 = vpop.f32.mrb[19].mxu0 }
0x1a62   :  { %v4449_v45 = vpop.f32.mrb[20].mxu0 }
0x1a63   :  { %v2477_v46 = vpop.f32.mrb[21].mxu0 }
0x1a64   :  { %2488 = vrot.lane.b32.xlu1 %v2477_v46, %s5171_s27  ;;  %v3993_v46 = vld [vmem:[%s5856_s5 + $0x90] sm:$0xff] }
0x1a68   :  { %2490 = vrot.lane.b32.xlu1 %v4449_v45, %s5171_s27 }
0x1ad6   :  { %v2489_v47 = vpop.permute.xlu1 %2488 }
0x1ad7   :  { %v2494_v48 = vsel %vm188_vm1, %v2277_v44, %v2489_v47  ;;  %v3992_v44 = vld [vmem:[%s5856_s5 + $0x88] sm:$0xff]  ;;  %v3994_v47 = vld [vmem:[%s5856_s5 + $0x98] sm:$0xff] }
0x1ad8   :  { %4458 = vmatprep.mubr.msk.f32.mxu0 %vm100_vm0, %v2494_v48  ;;  %v4773_v48 = vpack.c.bf16 %v3994_v47, %v3993_v46 }
0x1ada   :  { %v2491_v49 = vpop.permute.xlu1 %2490 }
0x1adb   :  { %v2495_v50 = vsel %vm188_vm1, %v4435_v40, %v2491_v49  ;;  %v3991_v40 = vld [vmem:[%s5856_s5 + $0x80] sm:$0xff] }
0x1adc   :  { %4459 = vmatmul.mubr.msk.f32.vlgmr.msra.gmra.mrb[22].mxu0 %vm100_vm0, %v2495_v50  ;;  %v4769_v45 = vpack.c.bf16 %v3992_v44, %v3991_v40  ;;  %v3995_v49 = vld [vmem:[%s5856_s5 + $0xa0] sm:$0xff]  ;;  %v3996_v50 = vld [vmem:[%s5856_s5 + $0xa8] sm:$0xff] }
0x1ade   :  { %4770 = vmatprep.subr.bf16.mxu0 %v4769_v45 }
0x1adf   :  { %4772 = vmatpush3.bf16.msra.mxu0 %v4769_v45 }
0x1ae0   :  { %4774 = vmatprep.subr.bf16.mxu0 %v4773_v48 }
0x1ae3   :  { %4776 = vmatpush3.bf16.msra.mxu0 %v4773_v48 }
0x1baf   :  { %v4460_v55 = vpop.f32.mrb[22].mxu0 }
0x1bb0   :  { %v2583_v56 = vadd.f32 %v4460_v55, %v2504_v54  ;;  %v2577_v57 = vpop.f32.mrb[23].mxu0  ;;  %v3997_v55 = vld [vmem:[%s5856_s5 + $0xb0] sm:$0xff] }
0x1bb1   :  { %v2578_v9 = vadd.f32 %v2577_v57, %v2504_v54  ;;  %v4777_v54 = vpack.c.bf16 %v3996_v50, %v3995_v49  ;;  %v2874_v49 = vld [vmem:[#allocation7 + $0x48] sm:$0xff] }
0x1bb2   :  { %v2587_v59 = vadd.f32 %v2583_v56, %v5578_v51  ;;  %v3998_v56 = vld [vmem:[%s5856_s5 + $0xb8] sm:$0xff] }
0x1bb3   :  { %v2586_v7 = vadd.f32 %v2578_v9, %v5580_v11  ;;  %v2627_v11 = vld [vmem:[#allocation6 + $0x40] sm:$0xff]  ;;  %4778 = vmatprep.subr.bf16.mxu0 %v4777_v54  ;;  %v4781_v57 = vpack.c.bf16 %v3998_v56, %v3997_v55  ;;  %v2634_v9 = vrot.slane %v5600_v60, %v5435_v39  ;;  %v2876_v55 = vld [vmem:[#allocation7 + $0x58] sm:$0xff] }
0x1bb4   :  { %v2591_v5 = vsel %vm100_vm0, %v2587_v59, 0.0  ;;  %v4761_v8 = vpack.c.bf16 %v2628_v16, %v2627_v11  ;;  %4780 = vmatpush3.bf16.msra.mxu0 %v4777_v54  ;;  %v2875_v54 = vld [vmem:[#allocation7 + $0x50] sm:$0xff]  ;;  %v2954_v56 = vld [vmem:[#allocation2 + $0x60] sm:$0xff] }
0x1bb5   :  { %2592 = vadd.xlane.f32.xlu1 %v2591_v5  ;;  %v2588_v58 = vsel %vm100_vm0, %v2586_v7, 0.0  ;;  %4782 = vmatprep.subr.bf16.mxu0 %v4781_v57 }
0x1bb6   :  { %2589 = vadd.xlane.f32.xlu0 %v2588_v58  ;;  %4762 = vmatprep.subr.bf16.mxu1 %v4761_v8 }
0x1bb7   :  { %4764 = vmatpush3.bf16.msra.mxu1 %v4761_v8 }
0x1bb8   :  { %4766 = vmatprep.subr.bf16.mxu1 %v4765_v19  ;;  %4784 = vmatpush3.bf16.msra.mxu0 %v4781_v57  ;;  %v4789_v57 = vpack.c.bf16 %v2876_v55, %v2875_v54 }
0x1bbb   :  { %4768 = vmatpush3.bf16.msra.mxu1 %v4765_v19 }
0x1bbc   :  { %4785 = vmatprep.subr.bf16.mxu1 %v5172_v28 }
0x1c42   :  { %v2593_v61 = vpop.xlane.xlu1 %2592 }
0x1c43   :  { %v2595_v63 = vmul.f32 0.03125, %v2593_v61  ;;  %v2590_v0 = vpop.xlane.xlu0 %2589 }
0x1c44   :  { %v2594_v1 = vmul.f32 0.03125, %v2590_v0 }
0x1c45   :  { %v2597_v2 = vsub.f32 %v2587_v59, %v2595_v63 }
0x1c46   :  { %v2596_v53 = vsub.f32 %v2586_v7, %v2594_v1 }
0x1c47   :  { %v2599_v15 = vmul.f32 %v2597_v2, %v2597_v2 }
0x1c48   :  { %v2598_v52 = vmul.f32 %v2596_v53, %v2596_v53 }
0x1c49   :  { %v2603_v51 = vsel %vm100_vm0, %v2599_v15, 0.0 }
0x1c4a   :  { %v2600_v14 = vsel %vm100_vm0, %v2598_v52, 0.0 }
0x1c4b   :  { %2601 = vadd.xlane.f32.xlu0 %v2600_v14 }
0x1c4f   :  { %2604 = vadd.xlane.f32.xlu0 %v2603_v51 }
0x1cd8   :  { %v2602_v20 = vpop.xlane.xlu0 %2601 }
0x1cd9   :  { %v2606_v22 = vmul.f32 0.03125, %v2602_v20 }
0x1cdb   :  { %v2608_v25 = vadd.f32 1e-05, %v2606_v22 }
0x1cdc   :  { %v2605_v3 = vpop.xlane.xlu0 %2604 }
0x1cdd   :  { %5024 = vrsqrt.f32 %v2608_v25  ;;  %v2607_v29 = vmul.f32 0.03125, %v2605_v3  ;;  %v2746_v25 = vrot.slane %v5600_v60, %v5442_v62 }
0x1cdf   :  { %v2609_v27 = vadd.f32 1e-05, %v2607_v29 }
0x1ce1   :  { %5026 = vrsqrt.f32 %v2609_v27 }
0x1ce7   :  { %v5025_v17 = vpop.eup %5024 }
0x1ce8   :  { %v2612_v33 = vmul.f32 %v5025_v17, %v2596_v53 }
0x1cea   :  { %v2618_v24 = vmul.f32 %v2617_v30, %v2612_v33 }
0x1ceb   :  { %v5027_v23 = vpop.eup %5026 }
0x1cec   :  { %v2613_v35 = vmul.f32 %v5027_v23, %v2597_v2  ;;  %v2624_v36 = vadd.f32 %v2623_v34, %v2618_v24 }
0x1cee   :  { %v2619_v37 = vmul.f32 %v2617_v30, %v2613_v35  ;;  %4469 = vmatprep.mubr.msk.f32.mxu1 %vm100_vm0, %v2624_v36 }
0x1cf0   :  { %v2625_v38 = vadd.f32 %v2623_v34, %v2619_v37 }
0x1cf2   :  { %4470 = vmatmul.mubr.msk.f32.vlgmr.msra.gmra.mrb[24].mxu1 %vm100_vm0, %v2625_v38 }
0x1cf3   :  { %4499 = vmatprep.mubr.msk.f32.mxu1 %vm5173_vm4, %v5174_v32 }
0x1dc5   :  { %v4471_v59 = vpop.f32.mrb[24].mxu1 }
0x1dc6   :  { %v2713_v7 = vadd.f32 %v4471_v59, %v2634_v9  ;;  %v2707_v5 = vpop.f32.mrb[25].mxu1 }
0x1dc7   :  { %v2708_v58 = vadd.f32 %v2707_v5, %v2634_v9  ;;  %v2955_v9 = vld [vmem:[#allocation2 + $0x68] sm:$0xff] }
0x1dc8   :  { %v2719_v61 = vmul.f32 0.044715, %v2713_v7  ;;  %v2717_v19 = vmul.f32 0.5, %v2713_v7  ;;  %v4791_v59 = vpack.c.bf16 %v2955_v9, %v2954_v56 }
0x1dc9   :  { %v2718_v63 = vmul.f32 0.044715, %v2708_v58  ;;  %v2716_v4 = vmul.f32 0.5, %v2708_v58 }
0x1dca   :  { %v2721_v0 = vmul.f32 %v2719_v61, %v2713_v7 }
0x1dcb   :  { %v2720_v1 = vmul.f32 %v2718_v63, %v2708_v58 }
0x1dcc   :  { %v2723_v2 = vmul.f32 %v2721_v0, %v2713_v7 }
0x1dcd   :  { %v2722_v53 = vmul.f32 %v2720_v1, %v2708_v58  ;;  %v2859_v1 = vrot.slane %v5600_v60, %v5451_v42 }
0x1dce   :  { %v2725_v52 = vadd.f32 %v2723_v2, %v2713_v7 }
0x1dcf   :  { %v2724_v14 = vadd.f32 %v2722_v53, %v2708_v58 }
0x1dd0   :  { %v2727_v15 = vmul.f32 0.7978846, %v2725_v52 }
0x1dd1   :  { %v2726_v51 = vmul.f32 0.7978846, %v2724_v14  ;;  %v2865_v14 = vrot.slane %v5600_v60, %v5454_v43 }
0x1dd2   :  { %5028 = vtanh.f32 %v2727_v15 }
0x1dd3   :  { %5030 = vtanh.f32 %v2726_v51 }
0x1ddc   :  { %v5029_v11 = vpop.eup %5028 }
0x1ddd   :  { %v5031_v16 = vpop.eup %5030  ;;  %v2731_v8 = vadd.f32 1.0, %v5029_v11 }
0x1dde   :  { %v2730_v18 = vadd.f32 1.0, %v5031_v16 }
0x1ddf   :  { %v2733_v22 = vmul.f32 %v2731_v8, %v2717_v19  ;;  %v2956_v8 = vld [vmem:[#allocation2 + $0x70] sm:$0xff] }
0x1de0   :  { %v2732_v20 = vmul.f32 %v2730_v18, %v2716_v4  ;;  %v2957_v4 = vld [vmem:[#allocation2 + $0x78] sm:$0xff] }
0x1de2   :  { %4488 = vmatprep.mubr.msk.f32.mxu0 %vm840_vm3, %v2732_v20  ;;  %v4795_v20 = vpack.c.bf16 %v2957_v4, %v2956_v8 }
0x1de3   :  { %4489 = vmatmul.mubr.msk.f32.vlgmr.msra.gmra.mrb[24].mxu0 %vm840_vm3, %v2733_v22 }
0x1eb6   :  { %v4490_v3 = vpop.f32.mrb[24].mxu0 }
0x1eb7   :  { %v2825_v29 = vadd.f32 %v4490_v3, %v2746_v25  ;;  %v2819_v27 = vpop.f32.mrb[25].mxu0 }
0x1eb8   :  { %v2820_v30 = vadd.f32 %v2819_v27, %v2746_v25 }
0x1eb9   :  { %v2829_v17 = vadd.f32 %v2825_v29, %v2625_v38  ;;  %v5736_v29 = vld [vmem:[%s5857_s6 + $0x18] sm:$0xff] }
0x1eba   :  { %v2828_v33 = vadd.f32 %v2820_v30, %v2624_v36  ;;  %v2873_v36 = vld [vmem:[#allocation7 + $0x40] sm:$0xff]  ;;  %v2961_v27 = vrot.slane %v5736_v29, %v5316_v10 }
0x1ebb   :  { %v2833_v34 = vsel %vm100_vm0, %v2829_v17, 0.0  ;;  %v4786_v50 = vpack.c.bf16 %v2874_v49, %v2873_v36 }
0x1ebc   :  { %2834 = vadd.xlane.f32.xlu1 %v2833_v34  ;;  %v2830_v24 = vsel %vm100_vm0, %v2828_v33, 0.0 }
0x1ebd   :  { %2831 = vadd.xlane.f32.xlu0 %v2830_v24  ;;  %4787 = vmatpush3.bf16.msra.mxu1 %v4786_v50 }
0x1ebe   :  { %4788 = vmatprep.subr.bf16.mxu1 %v5172_v28 }
0x1ec1   :  { %4790 = vmatpush3.bf16.msra.mxu1 %v4789_v57 }
0x1ec2   :  { %4792 = vmatprep.subr.bf16.mxu1 %v4791_v59 }
0x1f49   :  { %v2835_v23 = vpop.xlane.xlu1 %2834 }
0x1f4a   :  { %v2837_v35 = vmul.f32 0.03125, %v2835_v23  ;;  %v2832_v37 = vpop.xlane.xlu0 %2831 }
0x1f4b   :  { %v2836_v40 = vmul.f32 0.03125, %v2832_v37 }
0x1f4c   :  { %v2839_v44 = vsub.f32 %v2829_v17, %v2837_v35 }
0x1f4d   :  { %v2838_v45 = vsub.f32 %v2828_v33, %v2836_v40 }
0x1f4e   :  { %v2841_v46 = vmul.f32 %v2839_v44, %v2839_v44 }
0x1f4f   :  { %v2840_v47 = vmul.f32 %v2838_v45, %v2838_v45 }
0x1f50   :  { %v2845_v48 = vsel %vm100_vm0, %v2841_v46, 0.0 }
0x1f51   :  { %2846 = vadd.xlane.f32.xlu1 %v2845_v48  ;;  %v2842_v38 = vsel %vm100_vm0, %v2840_v47, 0.0 }
0x1f52   :  { %2843 = vadd.xlane.f32.xlu0 %v2842_v38 }
0x1fde   :  { %v2847_v7 = vpop.xlane.xlu1 %2846 }
0x1fdf   :  { %v2849_v5 = vmul.f32 0.03125, %v2847_v7  ;;  %v2844_v58 = vpop.xlane.xlu0 %2843 }
0x1fe0   :  { %v2848_v61 = vmul.f32 0.03125, %v2844_v58 }
0x1fe1   :  { %v2851_v63 = vadd.f32 1e-05, %v2849_v5 }
0x1fe2   :  { %v2850_v0 = vadd.f32 1e-05, %v2848_v61 }
0x1fe3   :  { %5032 = vrsqrt.f32 %v2851_v63 }
0x1fe4   :  { %5034 = vrsqrt.f32 %v2850_v0 }
0x1fed   :  { %v5033_v2 = vpop.eup %5032 }
0x1fee   :  { %v5035_v53 = vpop.eup %5034  ;;  %v2855_v52 = vmul.f32 %v5033_v2, %v2839_v44 }
0x1fef   :  { %v2854_v15 = vmul.f32 %v5035_v53, %v2838_v45 }
0x1ff0   :  { %v2861_v51 = vmul.f32 %v2859_v1, %v2855_v52 }
0x1ff1   :  { %v2860_v11 = vmul.f32 %v2859_v1, %v2854_v15 }
0x1ff2   :  { %v5718_v16 = vadd.f32 %v2865_v14, %v2861_v51 }
0x1ff3   :  { %v5720_v18 = vadd.f32 %v2865_v14, %v2860_v11 }
0x1ff4   :  { %v2869_v19 = vrot.slane %v5718_v16, 7 }
0x1ff6   :  { %v2871_v22 = vsel %vm965_vm5, %v5720_v18, %v2869_v19 }
0x1ff7   :  { %4500 = vmatmul.mubr.msk.f32.vlgmr.msra.gmra.mrb[26].mxu1 %vm100_vm0, %v2871_v22 }
0x1ff8   :  { %4794 = vmatpush3.bf16.msra.mxu1 %v4791_v59  ;;  %4510 = vmatprep.mubr.msk.f32.mxu1 %vm100_vm0, %v5720_v18 }
0x1ff9   :  { %4796 = vmatprep.subr.bf16.mxu1 %v4795_v20 }
0x1ffc   :  { %4798 = vmatpush3.bf16.msra.mxu1 %v4795_v20 }
0x1fff   :  { %4511 = vmatmul.mubr.msk.f32.vlgmr.msra.gmra.mrb[28].mxu1 %vm100_vm0, %v5718_v16 }
0x20ca   :  { %v2946_v60 = vpop.f32.mrb[26].mxu1 }
0x20cb   :  { %v5731_v25 = vadd.f32 %v2946_v60, %v5611_v6  ;;  %v4501_v3 = vpop.f32.mrb[27].mxu1 }
0x20d2   :  { %v4512_v30 = vpop.f32.mrb[28].mxu1 }
0x20d3   :  { %v3039_v17 = vadd.f32 %v4512_v30, %v2961_v27  ;;  %v3033_v33 = vpop.f32.mrb[29].mxu1 }
0x20d4   :  { %v3034_v34 = vadd.f32 %v3033_v33, %v2961_v27 }
0x20d6   :  { %4517 = vmatprep.mubr.msk.f32.mxu0 %vm188_vm1, %v3034_v34  ;;  %v5741_v24 = vpack.i.bf16 %v3039_v17, %v3034_v34 }
0x20d8   :  { %4933 = vrot.lane.b32.xlu1 %v5741_v24, %s5166_s0 }
0x20dc   :  { %4938 = vrot.lane.b32.xlu1 %v5741_v24, %s5167_s25 }
0x20e0   :  { %3240 = vrot.lane.b32.xlu1 %v3034_v34, %s5169_s2 }
0x20e4   :  { %3242 = vrot.lane.b32.xlu1 %v3039_v17, %s5169_s2 }
0x214a   :  { %v4934_v6 = vpop.permute.xlu1 %4933 }
0x214b   :  { %v4936_v10 = vunpack.i.h.bf16 %v4934_v6  ;;  %v4935_v23 = vunpack.i.l.bf16 %v4934_v6 }
0x214d   :  { %v4799_v35 = vpack.c.bf16 %v4936_v10, %v4935_v23 }
0x214e   :  { %v4939_v37 = vpop.permute.xlu1 %4938 }
0x214f   :  { %v4941_v40 = vunpack.i.h.bf16 %v4939_v37  ;;  %v4940_v44 = vunpack.i.l.bf16 %v4939_v37  ;;  %4801 = vmatprep.subr.msk.bf16.mxu0 %vm5332_vm2, %v4799_v35 }
0x2150   :  { %4804 = vmatpush3.bf16.xpose.msk.msra.mxu0 %vm5332_vm2, %v4799_v35 }
0x2151   :  { %v4805_v45 = vpack.c.bf16 %v4941_v40, %v4940_v44 }
0x2152   :  { %v3241_v11 = vpop.permute.xlu1 %3240 }
0x2153   :  { %4806 = vmatprep.subr.bf16.mxu1 %v4805_v45 }
0x2154   :  { %4808 = vmatpush3.bf16.msra.mxu1 %v4805_v45 }
0x2156   :  { %v3243_v8 = vpop.permute.xlu1 %3242 }
0x2157   :  { %4518 = vmatmul.mubr.msk.f32.vlgmr.msra.gmra.mrb[26].mxu0 %vm188_vm1, %v3039_v17 }
0x222a   :  { %v4519_v46 = vpop.f32.mrb[26].mxu0 }
0x222b   :  { %v3122_v47 = vpop.f32.mrb[27].mxu0  ;;  %v3128_v38 = vadd.f32 %v5629_v26, %v4519_v46 }
0x222c   :  { %v3123_v48 = vadd.f32 %v5635_v31, %v3122_v47 }
0x222d   :  { %v3134_v49 = vsel %vm188_vm1, %v3128_v38, -inf }
0x222e   :  { %v3131_v36 = vsel %vm188_vm1, %v3123_v48, -inf }
0x222f   :  { %3132 = vmax.xlane.f32.xlu0 %v3131_v36 }
0x2233   :  { %3135 = vmax.xlane.f32.xlu0 %v3134_v49  ;;  %v3451_v49 = vld [vmem:[#allocation4 + $0x60] sm:$0xff] }
0x22bc   :  { %v3133_v50 = vpop.xlane.xlu0 %3132 }
0x22bd   :  { %v3137_v54 = vsub.f32 %v3123_v48, %v3133_v50  ;;  %v3452_v50 = vld [vmem:[#allocation4 + $0x68] sm:$0xff] }
0x22bf   :  { %v3139_v57 = vmul.f32 1.442695, %v3137_v54  ;;  %v4819_v54 = vpack.c.bf16 %v3452_v50, %v3451_v49  ;;  %v4023_v49 = vld [vmem:[%s5856_s5 + $0xd0] sm:$0xff]  ;;  %v4024_v50 = vld [vmem:[%s5856_s5 + $0xd8] sm:$0xff] }
0x22c0   :  { %v3136_v55 = vpop.xlane.xlu0 %3135 }
0x22c1   :  { %v3138_v56 = vsub.f32 %v3128_v38, %v3136_v55  ;;  %v3453_v55 = vld [vmem:[#allocation4 + $0x70] sm:$0xff] }
0x22c3   :  { %v3141_v9 = vmul.f32 1.442695, %v3138_v56  ;;  %v3454_v56 = vld [vmem:[#allocation4 + $0x78] sm:$0xff] }
0x22c5   :  { %5036 = vpow2.f32 %v3141_v9 }
0x22c6   :  { %5038 = vpow2.f32 %v3139_v57  ;;  %v4823_v57 = vpack.c.bf16 %v3454_v56, %v3453_v55  ;;  %v4026_v55 = vld [vmem:[%s5856_s5 + $0xe8] sm:$0xff] }
0x22cf   :  { %v5037_v59 = vpop.eup %5036 }
0x22d0   :  { %v3146_v7 = vsel %vm188_vm1, %v5037_v59, 0.0  ;;  %v5039_v5 = vpop.eup %5038 }
0x22d1   :  { %3147 = vadd.xlane.f32.xlu0 %v3146_v7  ;;  %v3143_v58 = vsel %vm188_vm1, %v5039_v5, 0.0 }
0x22d5   :  { %3144 = vadd.xlane.f32.xlu0 %v3143_v58 }
0x22eb   :  { %4943 = vrot.lane.b32.xlu0 %v5741_v24, %s5168_s26 }
0x235e   :  { %v3148_v61 = vpop.xlane.xlu0 %3147 }
0x235f   :  { %5040 = vrcp.f32 %v3148_v61 }
0x2362   :  { %v3145_v63 = vpop.xlane.xlu0 %3144 }
0x2363   :  { %5042 = vrcp.f32 %v3145_v63  ;;  %v3458_v63 = vrot.slane %v5736_v29, %v5388_v41 }
0x2366   :  { %v4944_v0 = vpop.permute.xlu0 %4943 }
0x2367   :  { %v4946_v1 = vunpack.i.h.bf16 %v4944_v0  ;;  %v4945_v2 = vunpack.i.l.bf16 %v4944_v0 }
0x2369   :  { %v4809_v53 = vpack.c.bf16 %v4946_v1, %v4945_v2  ;;  %v5041_v52 = vpop.eup %5040 }
0x236a   :  { %v3152_v51 = vmul.f32 %v5041_v52, %v5037_v59 }
0x236b   :  { %4811 = vmatprep.subr.msk.bf16.mxu1 %vm5332_vm2, %v4809_v53 }
0x236d   :  { %v5043_v14 = vpop.eup %5042 }
0x236e   :  { %v3150_v15 = vmul.f32 %v5043_v14, %v5039_v5 }
0x2370   :  { %4524 = vmatprep.mubr.msk.f32.mxu1 %vm188_vm1, %v3150_v15 }
0x2371   :  { %4525 = vmatmul.mubr.msk.f32.vlgmr.msra.gmra.mrb[30].mxu1 %vm188_vm1, %v3152_v51 }
0x2372   :  { %4814 = vmatpush3.bf16.xpose.msk.msra.mxu1 %vm5332_vm2, %v4809_v53  ;;  %4531 = vmatprep.mubr.msk.f32.mxu1 %vm188_vm1, %v3241_v11 }
0x2379   :  { %4532 = vmatmul.mubr.msk.f32.vlgmr.msra.gmra.mrb[32].mxu1 %vm188_vm1, %v3243_v8 }
0x2444   :  { %v4526_v4 = vpop.f32.mrb[30].mxu1 }
0x2445   :  { %v3231_v19 = vpop.f32.mrb[31].mxu1 }
0x244c   :  { %v4533_v20 = vpop.f32.mrb[32].mxu1 }
0x244d   :  { %v3328_v22 = vadd.f32 %v5629_v26, %v4533_v20  ;;  %v3322_v60 = vpop.f32.mrb[33].mxu1 }
0x244e   :  { %v3323_v3 = vadd.f32 %v5635_v31, %v3322_v60 }
0x244f   :  { %v3334_v27 = vsel %vm188_vm1, %v3328_v22, -inf }
0x2450   :  { %3335 = vmax.xlane.f32.xlu0 %v3334_v27  ;;  %v3331_v30 = vsel %vm188_vm1, %v3323_v3, -inf  ;;  %v3582_v27 = vld [vmem:[#allocation6 + $0x68] sm:$0xff] }
0x2451   :  { %3332 = vmax.xlane.f32.xlu1 %v3331_v30 }
0x2466   :  { %4948 = vrot.lane.b32.xlu0 %v5741_v24, %s5170_s12 }
0x24dd   :  { %v3336_v21 = vpop.xlane.xlu0 %3335 }
0x24de   :  { %v3338_v17 = vsub.f32 %v3328_v22, %v3336_v21  ;;  %v3333_v33 = vpop.xlane.xlu1 %3332  ;;  %v3583_v21 = vld [vmem:[#allocation6 + $0x70] sm:$0xff] }
0x24df   :  { %v3337_v34 = vsub.f32 %v3323_v3, %v3333_v33 }
0x24e0   :  { %v3341_v6 = vmul.f32 1.442695, %v3338_v17  ;;  %v3584_v17 = vld [vmem:[#allocation6 + $0x78] sm:$0xff] }
0x24e1   :  { %v3339_v10 = vmul.f32 1.442695, %v3337_v34  ;;  %v4949_v23 = vpop.permute.xlu0 %4948  ;;  %v4831_v33 = vpack.c.bf16 %v3584_v17, %v3583_v21 }
0x24e2   :  { %v4951_v26 = vunpack.i.h.bf16 %v4949_v23  ;;  %v4950_v35 = vunpack.i.l.bf16 %v4949_v23 }
0x24e3   :  { %5044 = vpow2.f32 %v3339_v10 }
0x24e4   :  { %v4815_v31 = vpack.c.bf16 %v4951_v26, %v4950_v35  ;;  %5046 = vpow2.f32 %v3341_v6 }
0x24e6   :  { %4816 = vmatprep.subr.bf16.mxu0 %v4815_v31 }
0x24e7   :  { %4818 = vmatpush3.bf16.msra.mxu0 %v4815_v31  ;;  %v3571_v31 = vrot.slane %v5736_v29, %v5399_v12  ;;  %v4021_v12 = vld [vmem:[%s5856_s5 + $0xc0] sm:$0xff] }
0x24e8   :  { %4820 = vmatprep.subr.bf16.mxu0 %v4819_v54 }
0x24ed   :  { %v5045_v37 = vpop.eup %5044 }
0x24ee   :  { %v3343_v40 = vsel %vm188_vm1, %v5045_v37, 0.0  ;;  %v5047_v44 = vpop.eup %5046 }
0x24ef   :  { %3344 = vadd.xlane.f32.xlu1 %v3343_v40  ;;  %v3346_v24 = vsel %vm188_vm1, %v5047_v44, 0.0 }
0x24f3   :  { %3347 = vadd.xlane.f32.xlu1 %v3346_v24 }
0x257c   :  { %v3345_v45 = vpop.xlane.xlu1 %3344 }
0x257d   :  { %5048 = vrcp.f32 %v3345_v45 }
0x2580   :  { %v3348_v46 = vpop.xlane.xlu1 %3347 }
0x2581   :  { %5050 = vrcp.f32 %v3348_v46 }
0x2587   :  { %v5049_v47 = vpop.eup %5048 }
0x2588   :  { %v3350_v48 = vmul.f32 %v5049_v47, %v5045_v37 }
0x258a   :  { %4538 = vmatprep.mubr.msk.f32.mxu0 %vm188_vm1, %v3350_v48 }
0x258b   :  { %v5051_v38 = vpop.eup %5050 }
0x258c   :  { %v3352_v36 = vmul.f32 %v5051_v38, %v5047_v44  ;;  %v3577_v44 = vrot.slane %v5736_v29, %v5402_v13  ;;  %v4022_v13 = vld [vmem:[%s5856_s5 + $0xc8] sm:$0xff] }
0x258e   :  { %4539 = vmatmul.mubr.msk.f32.vlgmr.msra.gmra.mrb[28].mxu0 %vm188_vm1, %v3352_v36  ;;  %v4835_v36 = vpack.c.bf16 %v4022_v13, %v4021_v12 }
0x258f   :  { %4822 = vmatpush3.bf16.msra.mxu0 %v4819_v54  ;;  %v4839_v54 = vpack.c.bf16 %v4024_v50, %v4023_v49 }
0x2590   :  { %4824 = vmatprep.subr.bf16.mxu0 %v4823_v57 }
0x2593   :  { %4826 = vmatpush3.bf16.msra.mxu0 %v4823_v57  ;;  %v4027_v57 = vld [vmem:[%s5856_s5 + $0xf0] sm:$0xff] }
0x2594   :  { %4836 = vmatprep.subr.bf16.mxu0 %v4835_v36 }
0x2661   :  { %v4540_v9 = vpop.f32.mrb[28].mxu0 }
0x2662   :  { %v3431_v59 = vpop.f32.mrb[29].mxu0 }
0x2663   :  { %3442 = vrot.lane.b32.xlu1 %v3431_v59, %s5171_s27 }
0x2667   :  { %3444 = vrot.lane.b32.xlu1 %v4540_v9, %s5171_s27  ;;  %v4028_v9 = vld [vmem:[%s5856_s5 + $0xf8] sm:$0xff] }
0x2668   :  { %v4847_v59 = vpack.c.bf16 %v4028_v9, %v4027_v57 }
0x26d5   :  { %v3443_v7 = vpop.permute.xlu1 %3442 }
0x26d6   :  { %v3448_v5 = vsel %vm188_vm1, %v3231_v19, %v3443_v7  ;;  %v3588_v7 = vrot.slane %v5736_v29, %v5435_v39 }
0x26d7   :  { %4549 = vmatprep.mubr.msk.f32.mxu0 %vm100_vm0, %v3448_v5 }
0x26d9   :  { %v3445_v58 = vpop.permute.xlu1 %3444 }
0x26da   :  { %v3449_v61 = vsel %vm188_vm1, %v4526_v4, %v3445_v58 }
0x26db   :  { %4550 = vmatmul.mubr.msk.f32.vlgmr.msra.gmra.mrb[30].mxu0 %vm100_vm0, %v3449_v61 }
0x26dc   :  { %4838 = vmatpush3.bf16.msra.mxu0 %v4835_v36 }
0x26dd   :  { %4840 = vmatprep.subr.bf16.mxu0 %v4839_v54 }
0x26e0   :  { %4842 = vmatpush3.bf16.msra.mxu0 %v4839_v54 }
0x27ae   :  { %v4551_v0 = vpop.f32.mrb[30].mxu0 }
0x27af   :  { %v3537_v1 = vadd.f32 %v4551_v0, %v3458_v63  ;;  %v3531_v2 = vpop.f32.mrb[31].mxu0 }
0x27b0   :  { %v3532_v53 = vadd.f32 %v3531_v2, %v3458_v63 }
0x27b1   :  { %v3541_v52 = vadd.f32 %v3537_v1, %v5718_v16 }
0x27b2   :  { %v3540_v14 = vadd.f32 %v3532_v53, %v5720_v18  ;;  %v3581_v18 = vld [vmem:[#allocation6 + $0x60] sm:$0xff] }
0x27b3   :  { %v3545_v15 = vsel %vm100_vm0, %v3541_v52, 0.0  ;;  %v4827_v30 = vpack.c.bf16 %v3582_v27, %v3581_v18 }
0x27b4   :  { %3546 = vadd.xlane.f32.xlu1 %v3545_v15  ;;  %v3542_v51 = vsel %vm100_vm0, %v3540_v14, 0.0 }
0x27b5   :  { %3543 = vadd.xlane.f32.xlu0 %v3542_v51  ;;  %4828 = vmatprep.subr.bf16.mxu1 %v4827_v30 }
0x27b6   :  { %4830 = vmatpush3.bf16.msra.mxu1 %v4827_v30 }
0x27b7   :  { %4832 = vmatprep.subr.bf16.mxu1 %v4831_v33 }
0x27ba   :  { %4834 = vmatpush3.bf16.msra.mxu1 %v4831_v33 }
0x27bb   :  { %4851 = vmatprep.subr.bf16.mxu1 %v5172_v28 }
0x2841   :  { %v3547_v11 = vpop.xlane.xlu1 %3546 }
0x2842   :  { %v3549_v8 = vmul.f32 0.03125, %v3547_v11  ;;  %v3544_v4 = vpop.xlane.xlu0 %3543 }
0x2843   :  { %v3548_v19 = vmul.f32 0.03125, %v3544_v4 }
0x2844   :  { %v3551_v20 = vsub.f32 %v3541_v52, %v3549_v8 }
0x2845   :  { %v3550_v41 = vsub.f32 %v3540_v14, %v3548_v19 }
0x2846   :  { %v3553_v3 = vmul.f32 %v3551_v20, %v3551_v20 }
0x2847   :  { %v3552_v22 = vmul.f32 %v3550_v41, %v3550_v41 }
0x2848   :  { %v3557_v16 = vsel %vm100_vm0, %v3553_v3, 0.0 }
0x2849   :  { %v3554_v60 = vsel %vm100_vm0, %v3552_v22, 0.0 }
0x284a   :  { %3555 = vadd.xlane.f32.xlu0 %v3554_v60 }
0x284e   :  { %3558 = vadd.xlane.f32.xlu0 %v3557_v16  ;;  %v3700_v16 = vrot.slane %v5736_v29, %v5442_v62 }
0x28d7   :  { %v3556_v34 = vpop.xlane.xlu0 %3555 }
0x28d8   :  { %v3560_v6 = vmul.f32 0.03125, %v3556_v34 }
0x28da   :  { %v3562_v10 = vadd.f32 1e-05, %v3560_v6 }
0x28db   :  { %v3559_v23 = vpop.xlane.xlu0 %3558 }
0x28dc   :  { %5052 = vrsqrt.f32 %v3562_v10  ;;  %v3561_v26 = vmul.f32 0.03125, %v3559_v23 }
0x28de   :  { %v3563_v35 = vadd.f32 1e-05, %v3561_v26 }
0x28e0   :  { %5054 = vrsqrt.f32 %v3563_v35 }
0x28e6   :  { %v5053_v37 = vpop.eup %5052 }
0x28e7   :  { %v3566_v40 = vmul.f32 %v5053_v37, %v3550_v41 }
0x28e9   :  { %v3572_v24 = vmul.f32 %v3571_v31, %v3566_v40 }
0x28ea   :  { %v5055_v45 = vpop.eup %5054 }
0x28eb   :  { %v3567_v46 = vmul.f32 %v5055_v45, %v3551_v20  ;;  %v3578_v47 = vadd.f32 %v3577_v44, %v3572_v24  ;;  %v3827_v45 = vld [vmem:[#allocation7 + $0x60] sm:$0xff] }
0x28ed   :  { %v3573_v48 = vmul.f32 %v3571_v31, %v3567_v46  ;;  %4560 = vmatprep.mubr.msk.f32.mxu1 %vm100_vm0, %v3578_v47  ;;  %v3828_v46 = vld [vmem:[#allocation7 + $0x68] sm:$0xff] }
0x28ef   :  { %v3579_v38 = vadd.f32 %v3577_v44, %v3573_v48  ;;  %v3829_v48 = vld [vmem:[#allocation7 + $0x70] sm:$0xff] }
0x28f1   :  { %4561 = vmatmul.mubr.msk.f32.vlgmr.msra.gmra.mrb[34].mxu1 %vm100_vm0, %v3579_v38 }
0x28f2   :  { %4590 = vmatprep.mubr.msk.f32.mxu1 %vm5173_vm4, %v5174_v32  ;;  %v4025_v32 = vld [vmem:[%s5856_s5 + $0xe0] sm:$0xff] }
0x28f3   :  { %v4843_v56 = vpack.c.bf16 %v4026_v55, %v4025_v32  ;;  %v3813_v55 = vrot.slane %v5736_v29, %v5451_v42  ;;  %v4032_v42 = vld [vmem:[%s5859_s8] ss:$0 sm:$0xff] }
0x28f5   :  { %4844 = vmatprep.subr.bf16.mxu0 %v4843_v56 }
0x28f6   :  { %4846 = vmatpush3.bf16.msra.mxu0 %v4843_v56 }
0x28f7   :  { %4848 = vmatprep.subr.bf16.mxu0 %v4847_v59 }
0x28fa   :  { %4850 = vmatpush3.bf16.msra.mxu0 %v4847_v59  ;;  %v3819_v59 = vrot.slane %v5736_v29, %v5454_v43 }
0x29c4   :  { %v4562_v5 = vpop.f32.mrb[34].mxu1 }
0x29c5   :  { %v3667_v58 = vadd.f32 %v4562_v5, %v3588_v7  ;;  %v3661_v61 = vpop.f32.mrb[35].mxu1 }
0x29c6   :  { %v3662_v63 = vadd.f32 %v3661_v61, %v3588_v7 }
0x29c7   :  { %v3673_v0 = vmul.f32 0.044715, %v3667_v58  ;;  %v3671_v22 = vmul.f32 0.5, %v3667_v58 }
0x29c8   :  { %v3672_v1 = vmul.f32 0.044715, %v3662_v63  ;;  %v3670_v39 = vmul.f32 0.5, %v3662_v63 }
0x29c9   :  { %v3675_v2 = vmul.f32 %v3673_v0, %v3667_v58 }
0x29ca   :  { %v3674_v53 = vmul.f32 %v3672_v1, %v3662_v63 }
0x29cb   :  { %v3677_v52 = vmul.f32 %v3675_v2, %v3667_v58 }
0x29cc   :  { %v3676_v14 = vmul.f32 %v3674_v53, %v3662_v63 }
0x29cd   :  { %v3679_v15 = vadd.f32 %v3677_v52, %v3667_v58 }
0x29ce   :  { %v3678_v51 = vadd.f32 %v3676_v14, %v3662_v63 }
0x29cf   :  { %v3681_v11 = vmul.f32 0.7978846, %v3679_v15 }
0x29d0   :  { %v3680_v8 = vmul.f32 0.7978846, %v3678_v51 }
0x29d1   :  { %5056 = vtanh.f32 %v3681_v11 }
0x29d2   :  { %5058 = vtanh.f32 %v3680_v8 }
0x29db   :  { %v5057_v4 = vpop.eup %5056 }
0x29dc   :  { %v5059_v19 = vpop.eup %5058  ;;  %v3685_v20 = vadd.f32 1.0, %v5057_v4 }
0x29dd   :  { %v3684_v41 = vadd.f32 1.0, %v5059_v19 }
0x29de   :  { %v3687_v3 = vmul.f32 %v3685_v20, %v3671_v22 }
0x29df   :  { %v3686_v60 = vmul.f32 %v3684_v41, %v3670_v39 }
0x29e1   :  { %4579 = vmatprep.mubr.msk.f32.mxu0 %vm840_vm3, %v3686_v60 }
0x29e2   :  { %4580 = vmatmul.mubr.msk.f32.vlgmr.msra.gmra.mrb[32].mxu0 %vm840_vm3, %v3687_v3 }
0x2ab5   :  { %v4581_v18 = vpop.f32.mrb[32].mxu0 }
0x2ab6   :  { %v3779_v27 = vadd.f32 %v4581_v18, %v3700_v16  ;;  %v3773_v30 = vpop.f32.mrb[33].mxu0 }
0x2ab7   :  { %v3774_v21 = vadd.f32 %v3773_v30, %v3700_v16 }
0x2ab8   :  { %v3783_v17 = vadd.f32 %v3779_v27, %v3579_v38  ;;  %v3830_v38 = vld [vmem:[#allocation7 + $0x78] sm:$0xff] }
0x2ab9   :  { %v3782_v33 = vadd.f32 %v3774_v21, %v3578_v47  ;;  %v4852_v47 = vpack.c.bf16 %v3828_v46, %v3827_v45  ;;  %v4855_v12 = vpack.c.bf16 %v3830_v38, %v3829_v48 }
0x2aba   :  { %v3787_v34 = vsel %vm100_vm0, %v3783_v17, 0.0 }
0x2abb   :  { %3788 = vadd.xlane.f32.xlu1 %v3787_v34  ;;  %v3784_v6 = vsel %vm100_vm0, %v3782_v33, 0.0  ;;  %4853 = vmatpush3.bf16.msra.mxu1 %v4852_v47 }
0x2abc   :  { %3785 = vadd.xlane.f32.xlu0 %v3784_v6  ;;  %4854 = vmatprep.subr.bf16.mxu1 %v5172_v28 }
0x2abf   :  { %4856 = vmatpush3.bf16.msra.mxu1 %v4855_v12 }
0x2b48   :  { %v3789_v10 = vpop.xlane.xlu1 %3788 }
0x2b49   :  { %v3791_v23 = vmul.f32 0.03125, %v3789_v10  ;;  %v3786_v26 = vpop.xlane.xlu0 %3785 }
0x2b4a   :  { %v3790_v35 = vmul.f32 0.03125, %v3786_v26 }
0x2b4b   :  { %v3793_v31 = vsub.f32 %v3783_v17, %v3791_v23 }
0x2b4c   :  { %v3792_v37 = vsub.f32 %v3782_v33, %v3790_v35 }
0x2b4d   :  { %v3795_v40 = vmul.f32 %v3793_v31, %v3793_v31 }
0x2b4e   :  { %v3794_v62 = vmul.f32 %v3792_v37, %v3792_v37 }
0x2b4f   :  { %v3799_v44 = vsel %vm100_vm0, %v3795_v40, 0.0 }
0x2b50   :  { %3800 = vadd.xlane.f32.xlu1 %v3799_v44  ;;  %v3796_v24 = vsel %vm100_vm0, %v3794_v62, 0.0 }
0x2b51   :  { %3797 = vadd.xlane.f32.xlu0 %v3796_v24 }
0x2bdd   :  { %v3801_v13 = vpop.xlane.xlu1 %3800 }
0x2bde   :  { %v3803_v36 = vmul.f32 0.03125, %v3801_v13  ;;  %v3798_v49 = vpop.xlane.xlu0 %3797 }
0x2bdf   :  { %v3802_v50 = vmul.f32 0.03125, %v3798_v49 }
0x2be0   :  { %v3805_v32 = vadd.f32 1e-05, %v3803_v36 }
0x2be1   :  { %v3804_v54 = vadd.f32 1e-05, %v3802_v50 }
0x2be2   :  { %5060 = vrsqrt.f32 %v3805_v32 }
0x2be3   :  { %5062 = vrsqrt.f32 %v3804_v54 }
0x2bec   :  { %v5061_v56 = vpop.eup %5060 }
0x2bed   :  { %v5063_v57 = vpop.eup %5062  ;;  %v3809_v9 = vmul.f32 %v5061_v56, %v3793_v31 }
0x2bee   :  { %v3808_v7 = vmul.f32 %v5063_v57, %v3792_v37 }
0x2bef   :  { %v3815_v28 = vmul.f32 %v3813_v55, %v3809_v9 }
0x2bf0   :  { %v3814_v5 = vmul.f32 %v3813_v55, %v3808_v7 }
0x2bf1   :  { %v3821_v58 = vadd.f32 %v3819_v59, %v3815_v28 }
0x2bf2   :  { %v3820_v61 = vadd.f32 %v3819_v59, %v3814_v5 }
0x2bf3   :  { %v3823_v63 = vrot.slane %v3821_v58, 7 }
0x2bf5   :  { %v3825_v0 = vsel %vm965_vm5, %v3820_v61, %v3823_v63 }
0x2bf6   :  { %4591 = vmatmul.mubr.msk.f32.vlgmr.msra.gmra.mrb[36].mxu1 %vm100_vm0, %v3825_v0 }
0x2cc9   :  { %v3900_v1 = vpop.f32.mrb[36].mxu1 }
0x2cca   :  { %v3904_v2 = vadd.f32 %v3900_v1, %v5731_v25  ;;  %v4592_v53 = vpop.f32.mrb[37].mxu1 }
0x2ccc   :  { %v3912_v52 = vadd.f32 %v4032_v42, %v3904_v2 }
0x2cce   :  { %3913 = vst [vmem:[%s5860_s9] sm:$0x3] %v3912_v52 }
0x2ccf   :  { %3918 = vsyncpa [#allocation3], 1 }
0x2cd0   :  { %3919 = vsyncpa [#allocation5], 1 }
0x2cd1   :  { %3920 = vsyncpa [#allocation8], 1 }

</bundles_post_ra>
